<compile_context>
chip_gen: v7x
topology: tpu7x:2x2x1
jax: 0.10.0
libtpu: 0.0.40
codegen_flags: <defaults>
</compile_context>

<pallas_src>
import jax
import jax.numpy as jnp
from jax.experimental import pallas as pl
from jax.experimental.pallas import tpu as pltpu


def _sigmoid(x):
    return 1.0 / (1.0 + jnp.exp(-x))          # exp rides the EUP slot


# ----------------------------------------------------------------------------
# Fused decoder kernel: embedding + h0-concat + multi-layer LSTM
# ----------------------------------------------------------------------------
def _rnn_decoder_kernel(*refs):
    ids_ref, table_ref, h0_ref, c0_ref = refs[:4]
    num_layers, batch, H = h0_ref.shape
    rows = ids_ref.shape[0]                    # rows = seq_len * batch
    seq_len = rows // batch
    vocab, emb_dim = table_ref.shape

    n_w = 4 + 3 * (num_layers - 1)             # layer0: (w_e, w_r, w_hh, b); l>0: (w_ih, w_hh, b)
    w_refs = refs[4:4 + n_w]
    out_ref, hN_ref, cN_ref, gates_ref = refs[4 + n_w:4 + n_w + 4]

    # ---- embedding lookup as one-hot @ table (gather-free, MXU path) -------
    ids = ids_ref[...]                                         # (rows, 1) int32
    iota = jax.lax.broadcasted_iota(jnp.int32, (rows, vocab), 1)
    onehot = (ids == iota).astype(jnp.float32)                 # (rows, vocab)
    emb = jnp.dot(onehot, table_ref[...],
                  preferred_element_type=jnp.float32)          # (rows, E)

    def run_layer(w_hh_ref, h, c, layer_idx, g_extra=None):
        """Time loop for one LSTM layer; gates_ref holds x @ W_ih + b."""
        w_hh = w_hh_ref[...]                   # load once, resident in vregs/VMEM
        for t in range(seq_len):               # static unroll (short, fixed trip)
            g = gates_ref[t * batch:(t + 1) * batch, :]
            g = g + jnp.dot(h, w_hh, preferred_element_type=jnp.float32)
            if g_extra is not None:            # hoisted time-constant h0 term
                g = g + g_extra
            i = _sigmoid(g[:, 0 * H:1 * H])    # lane-aligned static slices
            f = _sigmoid(g[:, 1 * H:2 * H])
            gg = jnp.tanh(g[:, 2 * H:3 * H])
            o = _sigmoid(g[:, 3 * H:4 * H])
            c = f * c + i * gg
            h = o * jnp.tanh(c)
            out_ref[t * batch:(t + 1) * batch, :] = h
        hN_ref[layer_idx] = h
        cN_ref[layer_idx] = c

    # ---- layer 0:  cat([emb, h0_all]) @ W_ih0 == emb @ W_e0 + h0 @ W_r0 -----
    w_e0, w_r0, w_hh0, b0 = w_refs[0:4]
    gates_ref[...] = (jnp.dot(emb, w_e0[...], preferred_element_type=jnp.float32)
                      + b0[...])                               # bias hoisted (one broadcast)
    g_h0 = jnp.dot(h0_ref[0], w_r0[...],
                   preferred_element_type=jnp.float32)         # (B, 4H), hoisted
    run_layer(w_hh0, h0_ref[0], c0_ref[0], 0, g_extra=g_h0)

    # ---- layers >= 1: input = previous layer's full output sequence --------
    for l in range(1, num_layers):
        w_ih, w_hh, b = w_refs[4 + 3 * (l - 1):4 + 3 * l]
        x_all = out_ref[...]                                   # (rows, H) read before overwrite
        gates_ref[...] = (jnp.dot(x_all, w_ih[...],
                                  preferred_element_type=jnp.float32)
                          + b[...])
        run_layer(w_hh, h0_ref[l], c0_ref[l], l)


# ----------------------------------------------------------------------------
# Parameters & decoder state stand-in
# ----------------------------------------------------------------------------
class RNNDecoderState:
    """Minimal stand-in for onmt's RNNDecoderState: .hidden = (h, c)."""
    def __init__(self, h, c):
        self.hidden = (h, c)


def make_params(vocab, emb_dim, hidden, num_layers, seed=0):
    keys = jax.random.split(jax.random.PRNGKey(seed), 1 + 3 * num_layers)
    scale = 0.1
    table = scale * jax.random.normal(keys[0], (vocab, emb_dim), jnp.float32)
    layers = []
    k = 1
    for l in range(num_layers):
        in_l = emb_dim + hidden if l == 0 else hidden          # _input_size = emb + hidden
        w_ih = scale * jax.random.normal(keys[k], (in_l, 4 * hidden), jnp.float32)
        w_hh = scale * jax.random.normal(keys[k + 1], (hidden, 4 * hidden), jnp.float32)
        b = scale * jax.random.normal(keys[k + 2], (4 * hidden,), jnp.float32)  # b_ih + b_hh combined
        layers.append({"w_ih": w_ih, "w_hh": w_hh, "b": b})
        k += 3
    return {"table": table, "layers": layers}


# ----------------------------------------------------------------------------
# RNNDecoder.forward
# ----------------------------------------------------------------------------
def rnn_decoder_forward(params, input_tokens, context, state):
    """input_tokens: (len, batch, nfeats) int; context: (src_len, batch, H);
    state: RNNDecoderState with .hidden = (h0, c0) each (num_layers, batch, H).
    Returns (outputs (len, batch, H), (h_n, c_n))."""
    h0, c0 = state.hidden
    num_layers, batch, hidden = h0.shape
    seq_len, input_batch, _ = input_tokens.shape
    _, contxt_batch, _ = context.shape
    assert input_batch == contxt_batch                         # aeq(input_batch, contxt_batch)

    table = params["table"]
    vocab, emb_dim = table.shape
    rows = seq_len * batch
    gate = 4 * hidden

    ids2d = input_tokens.reshape(rows, 1).astype(jnp.int32)    # (T*B, 1), nfeats=1

    # split layer-0 W_ih along its input rows: [embedding part ; h0-concat part]
    w_ih0 = params["layers"][0]["w_ih"]
    weight_args = [w_ih0[:emb_dim], w_ih0[emb_dim:],
                   params["layers"][0]["w_hh"],
                   params["layers"][0]["b"].reshape(1, gate)]
    for l in range(1, num_layers):
        weight_args += [params["layers"][l]["w_ih"],
                        params["layers"][l]["w_hh"],
                        params["layers"][l]["b"].reshape(1, gate)]

    flops = 2 * rows * vocab * emb_dim                         # one-hot embedding matmul
    flops += 2 * rows * emb_dim * gate + 2 * batch * hidden * gate
    flops += (num_layers - 1) * 2 * rows * hidden * gate
    flops += num_layers * seq_len * 2 * batch * hidden * gate  # recurrent matmuls
    transcendentals = num_layers * seq_len * 5 * batch * hidden
    bytes_accessed = 4 * (ids2d.size + table.size + h0.size + c0.size
                          + sum(int(w.size) for w in weight_args)
                          + rows * hidden + 2 * int(h0.size))

    n_inputs = 4 + len(weight_args)
    out_flat, h_n, c_n = pl.pallas_call(
        _rnn_decoder_kernel,
        out_shape=(
            jax.ShapeDtypeStruct((rows, hidden), jnp.float32),
            jax.ShapeDtypeStruct((num_layers, batch, hidden), jnp.float32),
            jax.ShapeDtypeStruct((num_layers, batch, hidden), jnp.float32),
        ),
        in_specs=[pl.BlockSpec(memory_space=pltpu.MemorySpace.VMEM)] * n_inputs,
        out_specs=(pl.BlockSpec(memory_space=pltpu.MemorySpace.VMEM),) * 3,
        scratch_shapes=[pltpu.VMEM((rows, gate), jnp.float32)],
        cost_estimate=pl.CostEstimate(flops=flops,
                                      transcendentals=transcendentals,
                                      bytes_accessed=bytes_accessed),
    )(ids2d, table, h0, c0, *weight_args)

    outputs = out_flat.reshape(seq_len, batch, hidden)
    # TODO(synk): self.dropout / self.worddropout are identity in eval mode.
    return outputs, (h_n, c_n)


# ----------------------------------------------------------------------------
# Pure-JAX reference (mirrors the PyTorch forward exactly, incl. the concat)
# ----------------------------------------------------------------------------
def reference_forward(params, input_tokens, context, state):
    h0, c0 = state.hidden
    num_layers, batch, hidden = h0.shape
    seq_len = input_tokens.shape[0]
    table = params["table"]
    ids = input_tokens.reshape(seq_len, batch)
    emb = table[ids]                                           # (T, B, E)
    h0_all = jnp.broadcast_to(h0[0][None], (seq_len, batch, hidden))
    layer_in = jnp.concatenate([emb, h0_all], axis=-1)         # (T, B, E+H)
    hs, cs = [], []
    for l in range(num_layers):
        w_ih = params["layers"][l]["w_ih"]
        w_hh = params["layers"][l]["w_hh"]
        b = params["layers"][l]["b"]
        h, c = h0[l], c0[l]
        outs = []
        for t in range(seq_len):
            g = layer_in[t] @ w_ih + h @ w_hh + b
            i = _sigmoid(g[:, :hidden])
            f = _sigmoid(g[:, hidden:2 * hidden])
            gg = jnp.tanh(g[:, 2 * hidden:3 * hidden])
            o = _sigmoid(g[:, 3 * hidden:])
            c = f * c + i * gg
            h = o * jnp.tanh(c)
            outs.append(h)
        layer_in = jnp.stack(outs)
        hs.append(h)
        cs.append(c)
    return layer_in, (jnp.stack(hs), jnp.stack(cs))


if __name__ == "__main__":
    seq_len, src_len, batch, nfeats = 8, 10, 8, 1
    vocab, emb_dim, hidden, num_layers = 64, 32, 128, 2

    key = jax.random.PRNGKey(0)
    k_ids, k_ctx, k_h, k_c = jax.random.split(key, 4)
    input_tokens = jax.random.randint(k_ids, (seq_len, batch, nfeats), 0, vocab,
                                      dtype=jnp.int32)
    context = jax.random.normal(k_ctx, (src_len, batch, hidden), jnp.float32)
    h0 = 0.1 * jax.random.normal(k_h, (num_layers, batch, hidden), jnp.float32)
    c0 = 0.1 * jax.random.normal(k_c, (num_layers, batch, hidden), jnp.float32)
    state = RNNDecoderState(h0, c0)
    params = make_params(vocab, emb_dim, hidden, num_layers, seed=0)

    outputs, (h_n, c_n) = rnn_decoder_forward(params, input_tokens, context, state)
    jax.block_until_ready((outputs, h_n, c_n))

    ref_out, (ref_h, ref_c) = reference_forward(params, input_tokens, context, state)

    assert outputs.shape == (seq_len, batch, hidden)
    assert h_n.shape == (num_layers, batch, hidden)
    assert c_n.shape == (num_layers, batch, hidden)
    assert jnp.allclose(outputs, ref_out, atol=2e-3, rtol=2e-3), \
        float(jnp.max(jnp.abs(outputs - ref_out)))
    assert jnp.allclose(h_n, ref_h, atol=2e-3, rtol=2e-3)
    assert jnp.allclose(c_n, ref_c, atol=2e-3, rtol=2e-3)

    print("KERNEL_OK")
</pallas_src>

<mosaic_0001>
module attributes {stable_mosaic.version = 11 : i64} {
  func.func @_rnn_decoder_kernel(%arg0: memref<64x1xi32, #tpu.memory_space<vmem>>, %arg1: memref<64x32xf32, #tpu.memory_space<vmem>>, %arg2: memref<2x8x128xf32, #tpu.memory_space<vmem>>, %arg3: memref<2x8x128xf32, #tpu.memory_space<vmem>>, %arg4: memref<32x512xf32, #tpu.memory_space<vmem>>, %arg5: memref<128x512xf32, #tpu.memory_space<vmem>>, %arg6: memref<128x512xf32, #tpu.memory_space<vmem>>, %arg7: memref<1x512xf32, #tpu.memory_space<vmem>>, %arg8: memref<128x512xf32, #tpu.memory_space<vmem>>, %arg9: memref<128x512xf32, #tpu.memory_space<vmem>>, %arg10: memref<1x512xf32, #tpu.memory_space<vmem>>, %arg11: memref<64x128xf32, #tpu.memory_space<vmem>>, %arg12: memref<2x8x128xf32, #tpu.memory_space<vmem>>, %arg13: memref<2x8x128xf32, #tpu.memory_space<vmem>>, %arg14: memref<64x512xf32, #tpu.memory_space<vmem>>) attributes {dimension_semantics = [], scalar_prefetch = 0 : i64, scratch_operands = 1 : i64, tpu.core_type = #tpu.core_type<tc>} {
    %c0 = arith.constant 0 : index
    %c0_0 = arith.constant 0 : index
    %0 = vector.load %arg0[%c0, %c0_0] : memref<64x1xi32, #tpu.memory_space<vmem>>, vector<64x1xi32>
    %1 = tpu.iota {dimensions = array<i32: 1>} : vector<64x64xi32>
    %2 = vector.broadcast %0 : vector<64x1xi32> to vector<64x64xi32>
    %3 = arith.cmpi eq, %2, %1 : vector<64x64xi32>
    %4 = arith.extui %3 : vector<64x64xi1> to vector<64x64xi32>
    %5 = arith.sitofp %4 : vector<64x64xi32> to vector<64x64xf32>
    %c0_1 = arith.constant 0 : index
    %c0_2 = arith.constant 0 : index
    %6 = vector.load %arg1[%c0_1, %c0_2] : memref<64x32xf32, #tpu.memory_space<vmem>>, vector<64x32xf32>
    %cst = arith.constant dense<0.000000e+00> : vector<64x32xf32>
    %7 = tpu.matmul %5, %6, %cst {dimension_numbers = #tpu.dot_dimension_numbers<[1], [0], [0], [1], [0, 0, 1, 1], [], []>} : vector<64x64xf32>, vector<64x32xf32>, vector<64x32xf32> -> vector<64x32xf32>
    %c0_3 = arith.constant 0 : index
    %c0_4 = arith.constant 0 : index
    %8 = vector.load %arg4[%c0_3, %c0_4] : memref<32x512xf32, #tpu.memory_space<vmem>>, vector<32x512xf32>
    %cst_5 = arith.constant dense<0.000000e+00> : vector<64x512xf32>
    %9 = tpu.matmul %7, %8, %cst_5 {dimension_numbers = #tpu.dot_dimension_numbers<[1], [0], [0], [1], [0, 0, 1, 1], [], []>} : vector<64x32xf32>, vector<32x512xf32>, vector<64x512xf32> -> vector<64x512xf32>
    %c0_6 = arith.constant 0 : index
    %c0_7 = arith.constant 0 : index
    %10 = vector.load %arg7[%c0_6, %c0_7] : memref<1x512xf32, #tpu.memory_space<vmem>>, vector<1x512xf32>
    %11 = vector.broadcast %10 : vector<1x512xf32> to vector<64x512xf32>
    %12 = arith.addf %9, %11 : vector<64x512xf32>
    %c0_8 = arith.constant 0 : index
    %c0_9 = arith.constant 0 : index
    %13 = vector.load %arg14[%c0_8, %c0_9] : memref<64x512xf32, #tpu.memory_space<vmem>>, vector<64x512xf32>
    tpu.vector_store %arg14[%c0_8, %c0_9], %12 {strides = array<i32>} : memref<64x512xf32, #tpu.memory_space<vmem>>, vector<64x512xf32>,
    %c0_10 = arith.constant 0 : index
    %c0_11 = arith.constant 0 : index
    %c0_12 = arith.constant 0 : index
    %14 = vector.load %arg2[%c0_10, %c0_11, %c0_12] : memref<2x8x128xf32, #tpu.memory_space<vmem>>, vector<1x8x128xf32>
    %15 = vector.shape_cast %14 : vector<1x8x128xf32> to vector<8x128xf32>
    %c0_13 = arith.constant 0 : index
    %c0_14 = arith.constant 0 : index
    %16 = vector.load %arg5[%c0_13, %c0_14] : memref<128x512xf32, #tpu.memory_space<vmem>>, vector<128x512xf32>
    %cst_15 = arith.constant dense<0.000000e+00> : vector<8x512xf32>
    %17 = tpu.matmul %15, %16, %cst_15 {dimension_numbers = #tpu.dot_dimension_numbers<[1], [0], [0], [1], [0, 0, 1, 1], [], []>} : vector<8x128xf32>, vector<128x512xf32>, vector<8x512xf32> -> vector<8x512xf32>
    %c0_16 = arith.constant 0 : index
    %c0_17 = arith.constant 0 : index
    %c0_18 = arith.constant 0 : index
    %18 = vector.load %arg2[%c0_16, %c0_17, %c0_18] : memref<2x8x128xf32, #tpu.memory_space<vmem>>, vector<1x8x128xf32>
    %19 = vector.shape_cast %18 : vector<1x8x128xf32> to vector<8x128xf32>
    %c0_19 = arith.constant 0 : index
    %c0_20 = arith.constant 0 : index
    %c0_21 = arith.constant 0 : index
    %20 = vector.load %arg3[%c0_19, %c0_20, %c0_21] : memref<2x8x128xf32, #tpu.memory_space<vmem>>, vector<1x8x128xf32>
    %21 = vector.shape_cast %20 : vector<1x8x128xf32> to vector<8x128xf32>
    %c0_22 = arith.constant 0 : index
    %c0_23 = arith.constant 0 : index
    %22 = vector.load %arg6[%c0_22, %c0_23] : memref<128x512xf32, #tpu.memory_space<vmem>>, vector<128x512xf32>
    %c0_24 = arith.constant 0 : index
    %c0_25 = arith.constant 0 : index
    %23 = vector.load %arg14[%c0_24, %c0_25] : memref<64x512xf32, #tpu.memory_space<vmem>>, vector<8x512xf32>
    %cst_26 = arith.constant dense<0.000000e+00> : vector<8x512xf32>
    %24 = tpu.matmul %19, %22, %cst_26 {dimension_numbers = #tpu.dot_dimension_numbers<[1], [0], [0], [1], [0, 0, 1, 1], [], []>} : vector<8x128xf32>, vector<128x512xf32>, vector<8x512xf32> -> vector<8x512xf32>
    %25 = arith.addf %23, %24 : vector<8x512xf32>
    %26 = arith.addf %25, %17 : vector<8x512xf32>
    %27 = vector.extract_strided_slice %26 {offsets = [0, 0], sizes = [8, 128], strides = [1, 1]} : vector<8x512xf32> to vector<8x128xf32>
    %cst_27 = arith.constant 0.000000e+00 : f32
    %28 = vector.broadcast %cst_27 : f32 to vector<8x128xf32>
    %29 = arith.subf %28, %27 : vector<8x128xf32>
    %30 = math.exp %29 : vector<8x128xf32>
    %cst_28 = arith.constant 1.000000e+00 : f32
    %31 = vector.broadcast %cst_28 : f32 to vector<8x128xf32>
    %32 = arith.addf %31, %30 : vector<8x128xf32>
    %cst_29 = arith.constant 1.000000e+00 : f32
    %33 = vector.broadcast %cst_29 : f32 to vector<8x128xf32>
    %34 = arith.divf %33, %32 : vector<8x128xf32>
    %35 = vector.extract_strided_slice %26 {offsets = [0, 128], sizes = [8, 128], strides = [1, 1]} : vector<8x512xf32> to vector<8x128xf32>
    %cst_30 = arith.constant 0.000000e+00 : f32
    %36 = vector.broadcast %cst_30 : f32 to vector<8x128xf32>
    %37 = arith.subf %36, %35 : vector<8x128xf32>
    %38 = math.exp %37 : vector<8x128xf32>
    %cst_31 = arith.constant 1.000000e+00 : f32
    %39 = vector.broadcast %cst_31 : f32 to vector<8x128xf32>
    %40 = arith.addf %39, %38 : vector<8x128xf32>
    %cst_32 = arith.constant 1.000000e+00 : f32
    %41 = vector.broadcast %cst_32 : f32 to vector<8x128xf32>
    %42 = arith.divf %41, %40 : vector<8x128xf32>
    %43 = vector.extract_strided_slice %26 {offsets = [0, 256], sizes = [8, 128], strides = [1, 1]} : vector<8x512xf32> to vector<8x128xf32>
    %44 = math.tanh %43 : vector<8x128xf32>
    %45 = vector.extract_strided_slice %26 {offsets = [0, 384], sizes = [8, 128], strides = [1, 1]} : vector<8x512xf32> to vector<8x128xf32>
    %cst_33 = arith.constant 0.000000e+00 : f32
    %46 = vector.broadcast %cst_33 : f32 to vector<8x128xf32>
    %47 = arith.subf %46, %45 : vector<8x128xf32>
    %48 = math.exp %47 : vector<8x128xf32>
    %cst_34 = arith.constant 1.000000e+00 : f32
    %49 = vector.broadcast %cst_34 : f32 to vector<8x128xf32>
    %50 = arith.addf %49, %48 : vector<8x128xf32>
    %cst_35 = arith.constant 1.000000e+00 : f32
    %51 = vector.broadcast %cst_35 : f32 to vector<8x128xf32>
    %52 = arith.divf %51, %50 : vector<8x128xf32>
    %53 = arith.mulf %42, %21 : vector<8x128xf32>
    %54 = arith.mulf %34, %44 : vector<8x128xf32>
    %55 = arith.addf %53, %54 : vector<8x128xf32>
    %56 = math.tanh %55 : vector<8x128xf32>
    %57 = arith.mulf %52, %56 : vector<8x128xf32>
    %c0_36 = arith.constant 0 : index
    %c0_37 = arith.constant 0 : index
    %58 = vector.load %arg11[%c0_36, %c0_37] : memref<64x128xf32, #tpu.memory_space<vmem>>, vector<8x128xf32>
    tpu.vector_store %arg11[%c0_36, %c0_37], %57 {strides = array<i32>} : memref<64x128xf32, #tpu.memory_space<vmem>>, vector<8x128xf32>,
    %c8 = arith.constant 8 : index
    %c0_38 = arith.constant 0 : index
    %59 = vector.load %arg14[%c8, %c0_38] : memref<64x512xf32, #tpu.memory_space<vmem>>, vector<8x512xf32>
    %cst_39 = arith.constant dense<0.000000e+00> : vector<8x512xf32>
    %60 = tpu.matmul %57, %22, %cst_39 {dimension_numbers = #tpu.dot_dimension_numbers<[1], [0], [0], [1], [0, 0, 1, 1], [], []>} : vector<8x128xf32>, vector<128x512xf32>, vector<8x512xf32> -> vector<8x512xf32>
    %61 = arith.addf %59, %60 : vector<8x512xf32>
    %62 = arith.addf %61, %17 : vector<8x512xf32>
    %63 = vector.extract_strided_slice %62 {offsets = [0, 0], sizes = [8, 128], strides = [1, 1]} : vector<8x512xf32> to vector<8x128xf32>
    %cst_40 = arith.constant 0.000000e+00 : f32
    %64 = vector.broadcast %cst_40 : f32 to vector<8x128xf32>
    %65 = arith.subf %64, %63 : vector<8x128xf32>
    %66 = math.exp %65 : vector<8x128xf32>
    %cst_41 = arith.constant 1.000000e+00 : f32
    %67 = vector.broadcast %cst_41 : f32 to vector<8x128xf32>
    %68 = arith.addf %67, %66 : vector<8x128xf32>
    %cst_42 = arith.constant 1.000000e+00 : f32
    %69 = vector.broadcast %cst_42 : f32 to vector<8x128xf32>
    %70 = arith.divf %69, %68 : vector<8x128xf32>
    %71 = vector.extract_strided_slice %62 {offsets = [0, 128], sizes = [8, 128], strides = [1, 1]} : vector<8x512xf32> to vector<8x128xf32>
    %cst_43 = arith.constant 0.000000e+00 : f32
    %72 = vector.broadcast %cst_43 : f32 to vector<8x128xf32>
    %73 = arith.subf %72, %71 : vector<8x128xf32>
    %74 = math.exp %73 : vector<8x128xf32>
    %cst_44 = arith.constant 1.000000e+00 : f32
    %75 = vector.broadcast %cst_44 : f32 to vector<8x128xf32>
    %76 = arith.addf %75, %74 : vector<8x128xf32>
    %cst_45 = arith.constant 1.000000e+00 : f32
    %77 = vector.broadcast %cst_45 : f32 to vector<8x128xf32>
    %78 = arith.divf %77, %76 : vector<8x128xf32>
    %79 = vector.extract_strided_slice %62 {offsets = [0, 256], sizes = [8, 128], strides = [1, 1]} : vector<8x512xf32> to vector<8x128xf32>
    %80 = math.tanh %79 : vector<8x128xf32>
    %81 = vector.extract_strided_slice %62 {offsets = [0, 384], sizes = [8, 128], strides = [1, 1]} : vector<8x512xf32> to vector<8x128xf32>
    %cst_46 = arith.constant 0.000000e+00 : f32
    %82 = vector.broadcast %cst_46 : f32 to vector<8x128xf32>
    %83 = arith.subf %82, %81 : vector<8x128xf32>
    %84 = math.exp %83 : vector<8x128xf32>
    %cst_47 = arith.constant 1.000000e+00 : f32
    %85 = vector.broadcast %cst_47 : f32 to vector<8x128xf32>
    %86 = arith.addf %85, %84 : vector<8x128xf32>
    %cst_48 = arith.constant 1.000000e+00 : f32
    %87 = vector.broadcast %cst_48 : f32 to vector<8x128xf32>
    %88 = arith.divf %87, %86 : vector<8x128xf32>
    %89 = arith.mulf %78, %55 : vector<8x128xf32>
    %90 = arith.mulf %70, %80 : vector<8x128xf32>
    %91 = arith.addf %89, %90 : vector<8x128xf32>
    %92 = math.tanh %91 : vector<8x128xf32>
    %93 = arith.mulf %88, %92 : vector<8x128xf32>
    %c8_49 = arith.constant 8 : index
    %c0_50 = arith.constant 0 : index
    %94 = vector.load %arg11[%c8_49, %c0_50] : memref<64x128xf32, #tpu.memory_space<vmem>>, vector<8x128xf32>
    tpu.vector_store %arg11[%c8_49, %c0_50], %93 {strides = array<i32>} : memref<64x128xf32, #tpu.memory_space<vmem>>, vector<8x128xf32>,
    %c16 = arith.constant 16 : index
    %c0_51 = arith.constant 0 : index
    %95 = vector.load %arg14[%c16, %c0_51] : memref<64x512xf32, #tpu.memory_space<vmem>>, vector<8x512xf32>
    %cst_52 = arith.constant dense<0.000000e+00> : vector<8x512xf32>
    %96 = tpu.matmul %93, %22, %cst_52 {dimension_numbers = #tpu.dot_dimension_numbers<[1], [0], [0], [1], [0, 0, 1, 1], [], []>} : vector<8x128xf32>, vector<128x512xf32>, vector<8x512xf32> -> vector<8x512xf32>
    %97 = arith.addf %95, %96 : vector<8x512xf32>
    %98 = arith.addf %97, %17 : vector<8x512xf32>
    %99 = vector.extract_strided_slice %98 {offsets = [0, 0], sizes = [8, 128], strides = [1, 1]} : vector<8x512xf32> to vector<8x128xf32>
    %cst_53 = arith.constant 0.000000e+00 : f32
    %100 = vector.broadcast %cst_53 : f32 to vector<8x128xf32>
    %101 = arith.subf %100, %99 : vector<8x128xf32>
    %102 = math.exp %101 : vector<8x128xf32>
    %cst_54 = arith.constant 1.000000e+00 : f32
    %103 = vector.broadcast %cst_54 : f32 to vector<8x128xf32>
    %104 = arith.addf %103, %102 : vector<8x128xf32>
    %cst_55 = arith.constant 1.000000e+00 : f32
    %105 = vector.broadcast %cst_55 : f32 to vector<8x128xf32>
    %106 = arith.divf %105, %104 : vector<8x128xf32>
    %107 = vector.extract_strided_slice %98 {offsets = [0, 128], sizes = [8, 128], strides = [1, 1]} : vector<8x512xf32> to vector<8x128xf32>
    %cst_56 = arith.constant 0.000000e+00 : f32
    %108 = vector.broadcast %cst_56 : f32 to vector<8x128xf32>
    %109 = arith.subf %108, %107 : vector<8x128xf32>
    %110 = math.exp %109 : vector<8x128xf32>
    %cst_57 = arith.constant 1.000000e+00 : f32
    %111 = vector.broadcast %cst_57 : f32 to vector<8x128xf32>
    %112 = arith.addf %111, %110 : vector<8x128xf32>
    %cst_58 = arith.constant 1.000000e+00 : f32
    %113 = vector.broadcast %cst_58 : f32 to vector<8x128xf32>
    %114 = arith.divf %113, %112 : vector<8x128xf32>
    %115 = vector.extract_strided_slice %98 {offsets = [0, 256], sizes = [8, 128], strides = [1, 1]} : vector<8x512xf32> to vector<8x128xf32>
    %116 = math.tanh %115 : vector<8x128xf32>
    %117 = vector.extract_strided_slice %98 {offsets = [0, 384], sizes = [8, 128], strides = [1, 1]} : vector<8x512xf32> to vector<8x128xf32>
    %cst_59 = arith.constant 0.000000e+00 : f32
    %118 = vector.broadcast %cst_59 : f32 to vector<8x128xf32>
    %119 = arith.subf %118, %117 : vector<8x128xf32>
    %120 = math.exp %119 : vector<8x128xf32>
    %cst_60 = arith.constant 1.000000e+00 : f32
    %121 = vector.broadcast %cst_60 : f32 to vector<8x128xf32>
    %122 = arith.addf %121, %120 : vector<8x128xf32>
    %cst_61 = arith.constant 1.000000e+00 : f32
    %123 = vector.broadcast %cst_61 : f32 to vector<8x128xf32>
    %124 = arith.divf %123, %122 : vector<8x128xf32>
    %125 = arith.mulf %114, %91 : vector<8x128xf32>
    %126 = arith.mulf %106, %116 : vector<8x128xf32>
    %127 = arith.addf %125, %126 : vector<8x128xf32>
    %128 = math.tanh %127 : vector<8x128xf32>
    %129 = arith.mulf %124, %128 : vector<8x128xf32>
    %c16_62 = arith.constant 16 : index
    %c0_63 = arith.constant 0 : index
    %130 = vector.load %arg11[%c16_62, %c0_63] : memref<64x128xf32, #tpu.memory_space<vmem>>, vector<8x128xf32>
    tpu.vector_store %arg11[%c16_62, %c0_63], %129 {strides = array<i32>} : memref<64x128xf32, #tpu.memory_space<vmem>>, vector<8x128xf32>,
    %c24 = arith.constant 24 : index
    %c0_64 = arith.constant 0 : index
    %131 = vector.load %arg14[%c24, %c0_64] : memref<64x512xf32, #tpu.memory_space<vmem>>, vector<8x512xf32>
    %cst_65 = arith.constant dense<0.000000e+00> : vector<8x512xf32>
    %132 = tpu.matmul %129, %22, %cst_65 {dimension_numbers = #tpu.dot_dimension_numbers<[1], [0], [0], [1], [0, 0, 1, 1], [], []>} : vector<8x128xf32>, vector<128x512xf32>, vector<8x512xf32> -> vector<8x512xf32>
    %133 = arith.addf %131, %132 : vector<8x512xf32>
    %134 = arith.addf %133, %17 : vector<8x512xf32>
    %135 = vector.extract_strided_slice %134 {offsets = [0, 0], sizes = [8, 128], strides = [1, 1]} : vector<8x512xf32> to vector<8x128xf32>
    %cst_66 = arith.constant 0.000000e+00 : f32
    %136 = vector.broadcast %cst_66 : f32 to vector<8x128xf32>
    %137 = arith.subf %136, %135 : vector<8x128xf32>
    %138 = math.exp %137 : vector<8x128xf32>
    %cst_67 = arith.constant 1.000000e+00 : f32
    %139 = vector.broadcast %cst_67 : f32 to vector<8x128xf32>
    %140 = arith.addf %139, %138 : vector<8x128xf32>
    %cst_68 = arith.constant 1.000000e+00 : f32
    %141 = vector.broadcast %cst_68 : f32 to vector<8x128xf32>
    %142 = arith.divf %141, %140 : vector<8x128xf32>
    %143 = vector.extract_strided_slice %134 {offsets = [0, 128], sizes = [8, 128], strides = [1, 1]} : vector<8x512xf32> to vector<8x128xf32>
    %cst_69 = arith.constant 0.000000e+00 : f32
    %144 = vector.broadcast %cst_69 : f32 to vector<8x128xf32>
    %145 = arith.subf %144, %143 : vector<8x128xf32>
    %146 = math.exp %145 : vector<8x128xf32>
    %cst_70 = arith.constant 1.000000e+00 : f32
    %147 = vector.broadcast %cst_70 : f32 to vector<8x128xf32>
    %148 = arith.addf %147, %146 : vector<8x128xf32>
    %cst_71 = arith.constant 1.000000e+00 : f32
    %149 = vector.broadcast %cst_71 : f32 to vector<8x128xf32>
    %150 = arith.divf %149, %148 : vector<8x128xf32>
    %151 = vector.extract_strided_slice %134 {offsets = [0, 256], sizes = [8, 128], strides = [1, 1]} : vector<8x512xf32> to vector<8x128xf32>
    %152 = math.tanh %151 : vector<8x128xf32>
    %153 = vector.extract_strided_slice %134 {offsets = [0, 384], sizes = [8, 128], strides = [1, 1]} : vector<8x512xf32> to vector<8x128xf32>
    %cst_72 = arith.constant 0.000000e+00 : f32
    %154 = vector.broadcast %cst_72 : f32 to vector<8x128xf32>
    %155 = arith.subf %154, %153 : vector<8x128xf32>
    %156 = math.exp %155 : vector<8x128xf32>
    %cst_73 = arith.constant 1.000000e+00 : f32
    %157 = vector.broadcast %cst_73 : f32 to vector<8x128xf32>
    %158 = arith.addf %157, %156 : vector<8x128xf32>
    %cst_74 = arith.constant 1.000000e+00 : f32
    %159 = vector.broadcast %cst_74 : f32 to vector<8x128xf32>
    %160 = arith.divf %159, %158 : vector<8x128xf32>
    %161 = arith.mulf %150, %127 : vector<8x128xf32>
    %162 = arith.mulf %142, %152 : vector<8x128xf32>
    %163 = arith.addf %161, %162 : vector<8x128xf32>
    %164 = math.tanh %163 : vector<8x128xf32>
    %165 = arith.mulf %160, %164 : vector<8x128xf32>
    %c24_75 = arith.constant 24 : index
    %c0_76 = arith.constant 0 : index
    %166 = vector.load %arg11[%c24_75, %c0_76] : memref<64x128xf32, #tpu.memory_space<vmem>>, vector<8x128xf32>
    tpu.vector_store %arg11[%c24_75, %c0_76], %165 {strides = array<i32>} : memref<64x128xf32, #tpu.memory_space<vmem>>, vector<8x128xf32>,
    %c32 = arith.constant 32 : index
    %c0_77 = arith.constant 0 : index
    %167 = vector.load %arg14[%c32, %c0_77] : memref<64x512xf32, #tpu.memory_space<vmem>>, vector<8x512xf32>
    %cst_78 = arith.constant dense<0.000000e+00> : vector<8x512xf32>
    %168 = tpu.matmul %165, %22, %cst_78 {dimension_numbers = #tpu.dot_dimension_numbers<[1], [0], [0], [1], [0, 0, 1, 1], [], []>} : vector<8x128xf32>, vector<128x512xf32>, vector<8x512xf32> -> vector<8x512xf32>
    %169 = arith.addf %167, %168 : vector<8x512xf32>
    %170 = arith.addf %169, %17 : vector<8x512xf32>
    %171 = vector.extract_strided_slice %170 {offsets = [0, 0], sizes = [8, 128], strides = [1, 1]} : vector<8x512xf32> to vector<8x128xf32>
    %cst_79 = arith.constant 0.000000e+00 : f32
    %172 = vector.broadcast %cst_79 : f32 to vector<8x128xf32>
    %173 = arith.subf %172, %171 : vector<8x128xf32>
    %174 = math.exp %173 : vector<8x128xf32>
    %cst_80 = arith.constant 1.000000e+00 : f32
    %175 = vector.broadcast %cst_80 : f32 to vector<8x128xf32>
    %176 = arith.addf %175, %174 : vector<8x128xf32>
    %cst_81 = arith.constant 1.000000e+00 : f32
    %177 = vector.broadcast %cst_81 : f32 to vector<8x128xf32>
    %178 = arith.divf %177, %176 : vector<8x128xf32>
    %179 = vector.extract_strided_slice %170 {offsets = [0, 128], sizes = [8, 128], strides = [1, 1]} : vector<8x512xf32> to vector<8x128xf32>
    %cst_82 = arith.constant 0.000000e+00 : f32
    %180 = vector.broadcast %cst_82 : f32 to vector<8x128xf32>
    %181 = arith.subf %180, %179 : vector<8x128xf32>
    %182 = math.exp %181 : vector<8x128xf32>
    %cst_83 = arith.constant 1.000000e+00 : f32
    %183 = vector.broadcast %cst_83 : f32 to vector<8x128xf32>
    %184 = arith.addf %183, %182 : vector<8x128xf32>
    %cst_84 = arith.constant 1.000000e+00 : f32
    %185 = vector.broadcast %cst_84 : f32 to vector<8x128xf32>
    %186 = arith.divf %185, %184 : vector<8x128xf32>
    %187 = vector.extract_strided_slice %170 {offsets = [0, 256], sizes = [8, 128], strides = [1, 1]} : vector<8x512xf32> to vector<8x128xf32>
    %188 = math.tanh %187 : vector<8x128xf32>
    %189 = vector.extract_strided_slice %170 {offsets = [0, 384], sizes = [8, 128], strides = [1, 1]} : vector<8x512xf32> to vector<8x128xf32>
    %cst_85 = arith.constant 0.000000e+00 : f32
    %190 = vector.broadcast %cst_85 : f32 to vector<8x128xf32>
    %191 = arith.subf %190, %189 : vector<8x128xf32>
    %192 = math.exp %191 : vector<8x128xf32>
    %cst_86 = arith.constant 1.000000e+00 : f32
    %193 = vector.broadcast %cst_86 : f32 to vector<8x128xf32>
    %194 = arith.addf %193, %192 : vector<8x128xf32>
    %cst_87 = arith.constant 1.000000e+00 : f32
    %195 = vector.broadcast %cst_87 : f32 to vector<8x128xf32>
    %196 = arith.divf %195, %194 : vector<8x128xf32>
    %197 = arith.mulf %186, %163 : vector<8x128xf32>
    %198 = arith.mulf %178, %188 : vector<8x128xf32>
    %199 = arith.addf %197, %198 : vector<8x128xf32>
    %200 = math.tanh %199 : vector<8x128xf32>
    %201 = arith.mulf %196, %200 : vector<8x128xf32>
    %c32_88 = arith.constant 32 : index
    %c0_89 = arith.constant 0 : index
    %202 = vector.load %arg11[%c32_88, %c0_89] : memref<64x128xf32, #tpu.memory_space<vmem>>, vector<8x128xf32>
    tpu.vector_store %arg11[%c32_88, %c0_89], %201 {strides = array<i32>} : memref<64x128xf32, #tpu.memory_space<vmem>>, vector<8x128xf32>,
    %c40 = arith.constant 40 : index
    %c0_90 = arith.constant 0 : index
    %203 = vector.load %arg14[%c40, %c0_90] : memref<64x512xf32, #tpu.memory_space<vmem>>, vector<8x512xf32>
    %cst_91 = arith.constant dense<0.000000e+00> : vector<8x512xf32>
    %204 = tpu.matmul %201, %22, %cst_91 {dimension_numbers = #tpu.dot_dimension_numbers<[1], [0], [0], [1], [0, 0, 1, 1], [], []>} : vector<8x128xf32>, vector<128x512xf32>, vector<8x512xf32> -> vector<8x512xf32>
    %205 = arith.addf %203, %204 : vector<8x512xf32>
    %206 = arith.addf %205, %17 : vector<8x512xf32>
    %207 = vector.extract_strided_slice %206 {offsets = [0, 0], sizes = [8, 128], strides = [1, 1]} : vector<8x512xf32> to vector<8x128xf32>
    %cst_92 = arith.constant 0.000000e+00 : f32
    %208 = vector.broadcast %cst_92 : f32 to vector<8x128xf32>
    %209 = arith.subf %208, %207 : vector<8x128xf32>
    %210 = math.exp %209 : vector<8x128xf32>
    %cst_93 = arith.constant 1.000000e+00 : f32
    %211 = vector.broadcast %cst_93 : f32 to vector<8x128xf32>
    %212 = arith.addf %211, %210 : vector<8x128xf32>
    %cst_94 = arith.constant 1.000000e+00 : f32
    %213 = vector.broadcast %cst_94 : f32 to vector<8x128xf32>
    %214 = arith.divf %213, %212 : vector<8x128xf32>
    %215 = vector.extract_strided_slice %206 {offsets = [0, 128], sizes = [8, 128], strides = [1, 1]} : vector<8x512xf32> to vector<8x128xf32>
    %cst_95 = arith.constant 0.000000e+00 : f32
    %216 = vector.broadcast %cst_95 : f32 to vector<8x128xf32>
    %217 = arith.subf %216, %215 : vector<8x128xf32>
    %218 = math.exp %217 : vector<8x128xf32>
    %cst_96 = arith.constant 1.000000e+00 : f32
    %219 = vector.broadcast %cst_96 : f32 to vector<8x128xf32>
    %220 = arith.addf %219, %218 : vector<8x128xf32>
    %cst_97 = arith.constant 1.000000e+00 : f32
    %221 = vector.broadcast %cst_97 : f32 to vector<8x128xf32>
    %222 = arith.divf %221, %220 : vector<8x128xf32>
    %223 = vector.extract_strided_slice %206 {offsets = [0, 256], sizes = [8, 128], strides = [1, 1]} : vector<8x512xf32> to vector<8x128xf32>
    %224 = math.tanh %223 : vector<8x128xf32>
    %225 = vector.extract_strided_slice %206 {offsets = [0, 384], sizes = [8, 128], strides = [1, 1]} : vector<8x512xf32> to vector<8x128xf32>
    %cst_98 = arith.constant 0.000000e+00 : f32
    %226 = vector.broadcast %cst_98 : f32 to vector<8x128xf32>
    %227 = arith.subf %226, %225 : vector<8x128xf32>
    %228 = math.exp %227 : vector<8x128xf32>
    %cst_99 = arith.constant 1.000000e+00 : f32
    %229 = vector.broadcast %cst_99 : f32 to vector<8x128xf32>
    %230 = arith.addf %229, %228 : vector<8x128xf32>
    %cst_100 = arith.constant 1.000000e+00 : f32
    %231 = vector.broadcast %cst_100 : f32 to vector<8x128xf32>
    %232 = arith.divf %231, %230 : vector<8x128xf32>
    %233 = arith.mulf %222, %199 : vector<8x128xf32>
    %234 = arith.mulf %214, %224 : vector<8x128xf32>
    %235 = arith.addf %233, %234 : vector<8x128xf32>
    %236 = math.tanh %235 : vector<8x128xf32>
    %237 = arith.mulf %232, %236 : vector<8x128xf32>
    %c40_101 = arith.constant 40 : index
    %c0_102 = arith.constant 0 : index
    %238 = vector.load %arg11[%c40_101, %c0_102] : memref<64x128xf32, #tpu.memory_space<vmem>>, vector<8x128xf32>
    tpu.vector_store %arg11[%c40_101, %c0_102], %237 {strides = array<i32>} : memref<64x128xf32, #tpu.memory_space<vmem>>, vector<8x128xf32>,
    %c48 = arith.constant 48 : index
    %c0_103 = arith.constant 0 : index
    %239 = vector.load %arg14[%c48, %c0_103] : memref<64x512xf32, #tpu.memory_space<vmem>>, vector<8x512xf32>
    %cst_104 = arith.constant dense<0.000000e+00> : vector<8x512xf32>
    %240 = tpu.matmul %237, %22, %cst_104 {dimension_numbers = #tpu.dot_dimension_numbers<[1], [0], [0], [1], [0, 0, 1, 1], [], []>} : vector<8x128xf32>, vector<128x512xf32>, vector<8x512xf32> -> vector<8x512xf32>
    %241 = arith.addf %239, %240 : vector<8x512xf32>
    %242 = arith.addf %241, %17 : vector<8x512xf32>
    %243 = vector.extract_strided_slice %242 {offsets = [0, 0], sizes = [8, 128], strides = [1, 1]} : vector<8x512xf32> to vector<8x128xf32>
    %cst_105 = arith.constant 0.000000e+00 : f32
    %244 = vector.broadcast %cst_105 : f32 to vector<8x128xf32>
    %245 = arith.subf %244, %243 : vector<8x128xf32>
    %246 = math.exp %245 : vector<8x128xf32>
    %cst_106 = arith.constant 1.000000e+00 : f32
    %247 = vector.broadcast %cst_106 : f32 to vector<8x128xf32>
    %248 = arith.addf %247, %246 : vector<8x128xf32>
    %cst_107 = arith.constant 1.000000e+00 : f32
    %249 = vector.broadcast %cst_107 : f32 to vector<8x128xf32>
    %250 = arith.divf %249, %248 : vector<8x128xf32>
    %251 = vector.extract_strided_slice %242 {offsets = [0, 128], sizes = [8, 128], strides = [1, 1]} : vector<8x512xf32> to vector<8x128xf32>
    %cst_108 = arith.constant 0.000000e+00 : f32
    %252 = vector.broadcast %cst_108 : f32 to vector<8x128xf32>
    %253 = arith.subf %252, %251 : vector<8x128xf32>
    %254 = math.exp %253 : vector<8x128xf32>
    %cst_109 = arith.constant 1.000000e+00 : f32
    %255 = vector.broadcast %cst_109 : f32 to vector<8x128xf32>
    %256 = arith.addf %255, %254 : vector<8x128xf32>
    %cst_110 = arith.constant 1.000000e+00 : f32
    %257 = vector.broadcast %cst_110 : f32 to vector<8x128xf32>
    %258 = arith.divf %257, %256 : vector<8x128xf32>
    %259 = vector.extract_strided_slice %242 {offsets = [0, 256], sizes = [8, 128], strides = [1, 1]} : vector<8x512xf32> to vector<8x128xf32>
    %260 = math.tanh %259 : vector<8x128xf32>
    %261 = vector.extract_strided_slice %242 {offsets = [0, 384], sizes = [8, 128], strides = [1, 1]} : vector<8x512xf32> to vector<8x128xf32>
    %cst_111 = arith.constant 0.000000e+00 : f32
    %262 = vector.broadcast %cst_111 : f32 to vector<8x128xf32>
    %263 = arith.subf %262, %261 : vector<8x128xf32>
    %264 = math.exp %263 : vector<8x128xf32>
    %cst_112 = arith.constant 1.000000e+00 : f32
    %265 = vector.broadcast %cst_112 : f32 to vector<8x128xf32>
    %266 = arith.addf %265, %264 : vector<8x128xf32>
    %cst_113 = arith.constant 1.000000e+00 : f32
    %267 = vector.broadcast %cst_113 : f32 to vector<8x128xf32>
    %268 = arith.divf %267, %266 : vector<8x128xf32>
    %269 = arith.mulf %258, %235 : vector<8x128xf32>
    %270 = arith.mulf %250, %260 : vector<8x128xf32>
    %271 = arith.addf %269, %270 : vector<8x128xf32>
    %272 = math.tanh %271 : vector<8x128xf32>
    %273 = arith.mulf %268, %272 : vector<8x128xf32>
    %c48_114 = arith.constant 48 : index
    %c0_115 = arith.constant 0 : index
    %274 = vector.load %arg11[%c48_114, %c0_115] : memref<64x128xf32, #tpu.memory_space<vmem>>, vector<8x128xf32>
    tpu.vector_store %arg11[%c48_114, %c0_115], %273 {strides = array<i32>} : memref<64x128xf32, #tpu.memory_space<vmem>>, vector<8x128xf32>,
    %c56 = arith.constant 56 : index
    %c0_116 = arith.constant 0 : index
    %275 = vector.load %arg14[%c56, %c0_116] : memref<64x512xf32, #tpu.memory_space<vmem>>, vector<8x512xf32>
    %cst_117 = arith.constant dense<0.000000e+00> : vector<8x512xf32>
    %276 = tpu.matmul %273, %22, %cst_117 {dimension_numbers = #tpu.dot_dimension_numbers<[1], [0], [0], [1], [0, 0, 1, 1], [], []>} : vector<8x128xf32>, vector<128x512xf32>, vector<8x512xf32> -> vector<8x512xf32>
    %277 = arith.addf %275, %276 : vector<8x512xf32>
    %278 = arith.addf %277, %17 : vector<8x512xf32>
    %279 = vector.extract_strided_slice %278 {offsets = [0, 0], sizes = [8, 128], strides = [1, 1]} : vector<8x512xf32> to vector<8x128xf32>
    %cst_118 = arith.constant 0.000000e+00 : f32
    %280 = vector.broadcast %cst_118 : f32 to vector<8x128xf32>
    %281 = arith.subf %280, %279 : vector<8x128xf32>
    %282 = math.exp %281 : vector<8x128xf32>
    %cst_119 = arith.constant 1.000000e+00 : f32
    %283 = vector.broadcast %cst_119 : f32 to vector<8x128xf32>
    %284 = arith.addf %283, %282 : vector<8x128xf32>
    %cst_120 = arith.constant 1.000000e+00 : f32
    %285 = vector.broadcast %cst_120 : f32 to vector<8x128xf32>
    %286 = arith.divf %285, %284 : vector<8x128xf32>
    %287 = vector.extract_strided_slice %278 {offsets = [0, 128], sizes = [8, 128], strides = [1, 1]} : vector<8x512xf32> to vector<8x128xf32>
    %cst_121 = arith.constant 0.000000e+00 : f32
    %288 = vector.broadcast %cst_121 : f32 to vector<8x128xf32>
    %289 = arith.subf %288, %287 : vector<8x128xf32>
    %290 = math.exp %289 : vector<8x128xf32>
    %cst_122 = arith.constant 1.000000e+00 : f32
    %291 = vector.broadcast %cst_122 : f32 to vector<8x128xf32>
    %292 = arith.addf %291, %290 : vector<8x128xf32>
    %cst_123 = arith.constant 1.000000e+00 : f32
    %293 = vector.broadcast %cst_123 : f32 to vector<8x128xf32>
    %294 = arith.divf %293, %292 : vector<8x128xf32>
    %295 = vector.extract_strided_slice %278 {offsets = [0, 256], sizes = [8, 128], strides = [1, 1]} : vector<8x512xf32> to vector<8x128xf32>
    %296 = math.tanh %295 : vector<8x128xf32>
    %297 = vector.extract_strided_slice %278 {offsets = [0, 384], sizes = [8, 128], strides = [1, 1]} : vector<8x512xf32> to vector<8x128xf32>
    %cst_124 = arith.constant 0.000000e+00 : f32
    %298 = vector.broadcast %cst_124 : f32 to vector<8x128xf32>
    %299 = arith.subf %298, %297 : vector<8x128xf32>
    %300 = math.exp %299 : vector<8x128xf32>
    %cst_125 = arith.constant 1.000000e+00 : f32
    %301 = vector.broadcast %cst_125 : f32 to vector<8x128xf32>
    %302 = arith.addf %301, %300 : vector<8x128xf32>
    %cst_126 = arith.constant 1.000000e+00 : f32
    %303 = vector.broadcast %cst_126 : f32 to vector<8x128xf32>
    %304 = arith.divf %303, %302 : vector<8x128xf32>
    %305 = arith.mulf %294, %271 : vector<8x128xf32>
    %306 = arith.mulf %286, %296 : vector<8x128xf32>
    %307 = arith.addf %305, %306 : vector<8x128xf32>
    %308 = math.tanh %307 : vector<8x128xf32>
    %309 = arith.mulf %304, %308 : vector<8x128xf32>
    %c56_127 = arith.constant 56 : index
    %c0_128 = arith.constant 0 : index
    %310 = vector.load %arg11[%c56_127, %c0_128] : memref<64x128xf32, #tpu.memory_space<vmem>>, vector<8x128xf32>
    tpu.vector_store %arg11[%c56_127, %c0_128], %309 {strides = array<i32>} : memref<64x128xf32, #tpu.memory_space<vmem>>, vector<8x128xf32>,
    %c0_129 = arith.constant 0 : index
    %c0_130 = arith.constant 0 : index
    %c0_131 = arith.constant 0 : index
    %311 = vector.load %arg12[%c0_129, %c0_130, %c0_131] : memref<2x8x128xf32, #tpu.memory_space<vmem>>, vector<1x8x128xf32>
    %312 = vector.shape_cast %311 : vector<1x8x128xf32> to vector<8x128xf32>
    %313 = vector.shape_cast %309 : vector<8x128xf32> to vector<1x8x128xf32>
    tpu.vector_store %arg12[%c0_129, %c0_130, %c0_131], %313 {strides = array<i32>} : memref<2x8x128xf32, #tpu.memory_space<vmem>>, vector<1x8x128xf32>,
    %c0_132 = arith.constant 0 : index
    %c0_133 = arith.constant 0 : index
    %c0_134 = arith.constant 0 : index
    %314 = vector.load %arg13[%c0_132, %c0_133, %c0_134] : memref<2x8x128xf32, #tpu.memory_space<vmem>>, vector<1x8x128xf32>
    %315 = vector.shape_cast %314 : vector<1x8x128xf32> to vector<8x128xf32>
    %316 = vector.shape_cast %307 : vector<8x128xf32> to vector<1x8x128xf32>
    tpu.vector_store %arg13[%c0_132, %c0_133, %c0_134], %316 {strides = array<i32>} : memref<2x8x128xf32, #tpu.memory_space<vmem>>, vector<1x8x128xf32>,
    %c0_135 = arith.constant 0 : index
    %c0_136 = arith.constant 0 : index
    %317 = vector.load %arg11[%c0_135, %c0_136] : memref<64x128xf32, #tpu.memory_space<vmem>>, vector<64x128xf32>
    %c0_137 = arith.constant 0 : index
    %c0_138 = arith.constant 0 : index
    %318 = vector.load %arg8[%c0_137, %c0_138] : memref<128x512xf32, #tpu.memory_space<vmem>>, vector<128x512xf32>
    %cst_139 = arith.constant dense<0.000000e+00> : vector<64x512xf32>
    %319 = tpu.matmul %317, %318, %cst_139 {dimension_numbers = #tpu.dot_dimension_numbers<[1], [0], [0], [1], [0, 0, 1, 1], [], []>} : vector<64x128xf32>, vector<128x512xf32>, vector<64x512xf32> -> vector<64x512xf32>
    %c0_140 = arith.constant 0 : index
    %c0_141 = arith.constant 0 : index
    %320 = vector.load %arg10[%c0_140, %c0_141] : memref<1x512xf32, #tpu.memory_space<vmem>>, vector<1x512xf32>
    %321 = vector.broadcast %320 : vector<1x512xf32> to vector<64x512xf32>
    %322 = arith.addf %319, %321 : vector<64x512xf32>
    %c0_142 = arith.constant 0 : index
    %c0_143 = arith.constant 0 : index
    %323 = vector.load %arg14[%c0_142, %c0_143] : memref<64x512xf32, #tpu.memory_space<vmem>>, vector<64x512xf32>
    tpu.vector_store %arg14[%c0_142, %c0_143], %322 {strides = array<i32>} : memref<64x512xf32, #tpu.memory_space<vmem>>, vector<64x512xf32>,
    %c1 = arith.constant 1 : index
    %c0_144 = arith.constant 0 : index
    %c0_145 = arith.constant 0 : index
    %324 = vector.load %arg2[%c1, %c0_144, %c0_145] : memref<2x8x128xf32, #tpu.memory_space<vmem>>, vector<1x8x128xf32>
    %325 = vector.shape_cast %324 : vector<1x8x128xf32> to vector<8x128xf32>
    %c1_146 = arith.constant 1 : index
    %c0_147 = arith.constant 0 : index
    %c0_148 = arith.constant 0 : index
    %326 = vector.load %arg3[%c1_146, %c0_147, %c0_148] : memref<2x8x128xf32, #tpu.memory_space<vmem>>, vector<1x8x128xf32>
    %327 = vector.shape_cast %326 : vector<1x8x128xf32> to vector<8x128xf32>
    %c0_149 = arith.constant 0 : index
    %c0_150 = arith.constant 0 : index
    %328 = vector.load %arg9[%c0_149, %c0_150] : memref<128x512xf32, #tpu.memory_space<vmem>>, vector<128x512xf32>
    %c0_151 = arith.constant 0 : index
    %c0_152 = arith.constant 0 : index
    %329 = vector.load %arg14[%c0_151, %c0_152] : memref<64x512xf32, #tpu.memory_space<vmem>>, vector<8x512xf32>
    %cst_153 = arith.constant dense<0.000000e+00> : vector<8x512xf32>
    %330 = tpu.matmul %325, %328, %cst_153 {dimension_numbers = #tpu.dot_dimension_numbers<[1], [0], [0], [1], [0, 0, 1, 1], [], []>} : vector<8x128xf32>, vector<128x512xf32>, vector<8x512xf32> -> vector<8x512xf32>
    %331 = arith.addf %329, %330 : vector<8x512xf32>
    %332 = vector.extract_strided_slice %331 {offsets = [0, 0], sizes = [8, 128], strides = [1, 1]} : vector<8x512xf32> to vector<8x128xf32>
    %cst_154 = arith.constant 0.000000e+00 : f32
    %333 = vector.broadcast %cst_154 : f32 to vector<8x128xf32>
    %334 = arith.subf %333, %332 : vector<8x128xf32>
    %335 = math.exp %334 : vector<8x128xf32>
    %cst_155 = arith.constant 1.000000e+00 : f32
    %336 = vector.broadcast %cst_155 : f32 to vector<8x128xf32>
    %337 = arith.addf %336, %335 : vector<8x128xf32>
    %cst_156 = arith.constant 1.000000e+00 : f32
    %338 = vector.broadcast %cst_156 : f32 to vector<8x128xf32>
    %339 = arith.divf %338, %337 : vector<8x128xf32>
    %340 = vector.extract_strided_slice %331 {offsets = [0, 128], sizes = [8, 128], strides = [1, 1]} : vector<8x512xf32> to vector<8x128xf32>
    %cst_157 = arith.constant 0.000000e+00 : f32
    %341 = vector.broadcast %cst_157 : f32 to vector<8x128xf32>
    %342 = arith.subf %341, %340 : vector<8x128xf32>
    %343 = math.exp %342 : vector<8x128xf32>
    %cst_158 = arith.constant 1.000000e+00 : f32
    %344 = vector.broadcast %cst_158 : f32 to vector<8x128xf32>
    %345 = arith.addf %344, %343 : vector<8x128xf32>
    %cst_159 = arith.constant 1.000000e+00 : f32
    %346 = vector.broadcast %cst_159 : f32 to vector<8x128xf32>
    %347 = arith.divf %346, %345 : vector<8x128xf32>
    %348 = vector.extract_strided_slice %331 {offsets = [0, 256], sizes = [8, 128], strides = [1, 1]} : vector<8x512xf32> to vector<8x128xf32>
    %349 = math.tanh %348 : vector<8x128xf32>
    %350 = vector.extract_strided_slice %331 {offsets = [0, 384], sizes = [8, 128], strides = [1, 1]} : vector<8x512xf32> to vector<8x128xf32>
    %cst_160 = arith.constant 0.000000e+00 : f32
    %351 = vector.broadcast %cst_160 : f32 to vector<8x128xf32>
    %352 = arith.subf %351, %350 : vector<8x128xf32>
    %353 = math.exp %352 : vector<8x128xf32>
    %cst_161 = arith.constant 1.000000e+00 : f32
    %354 = vector.broadcast %cst_161 : f32 to vector<8x128xf32>
    %355 = arith.addf %354, %353 : vector<8x128xf32>
    %cst_162 = arith.constant 1.000000e+00 : f32
    %356 = vector.broadcast %cst_162 : f32 to vector<8x128xf32>
    %357 = arith.divf %356, %355 : vector<8x128xf32>
    %358 = arith.mulf %347, %327 : vector<8x128xf32>
    %359 = arith.mulf %339, %349 : vector<8x128xf32>
    %360 = arith.addf %358, %359 : vector<8x128xf32>
    %361 = math.tanh %360 : vector<8x128xf32>
    %362 = arith.mulf %357, %361 : vector<8x128xf32>
    %c0_163 = arith.constant 0 : index
    %c0_164 = arith.constant 0 : index
    %363 = vector.load %arg11[%c0_163, %c0_164] : memref<64x128xf32, #tpu.memory_space<vmem>>, vector<8x128xf32>
    tpu.vector_store %arg11[%c0_163, %c0_164], %362 {strides = array<i32>} : memref<64x128xf32, #tpu.memory_space<vmem>>, vector<8x128xf32>,
    %c8_165 = arith.constant 8 : index
    %c0_166 = arith.constant 0 : index
    %364 = vector.load %arg14[%c8_165, %c0_166] : memref<64x512xf32, #tpu.memory_space<vmem>>, vector<8x512xf32>
    %cst_167 = arith.constant dense<0.000000e+00> : vector<8x512xf32>
    %365 = tpu.matmul %362, %328, %cst_167 {dimension_numbers = #tpu.dot_dimension_numbers<[1], [0], [0], [1], [0, 0, 1, 1], [], []>} : vector<8x128xf32>, vector<128x512xf32>, vector<8x512xf32> -> vector<8x512xf32>
    %366 = arith.addf %364, %365 : vector<8x512xf32>
    %367 = vector.extract_strided_slice %366 {offsets = [0, 0], sizes = [8, 128], strides = [1, 1]} : vector<8x512xf32> to vector<8x128xf32>
    %cst_168 = arith.constant 0.000000e+00 : f32
    %368 = vector.broadcast %cst_168 : f32 to vector<8x128xf32>
    %369 = arith.subf %368, %367 : vector<8x128xf32>
    %370 = math.exp %369 : vector<8x128xf32>
    %cst_169 = arith.constant 1.000000e+00 : f32
    %371 = vector.broadcast %cst_169 : f32 to vector<8x128xf32>
    %372 = arith.addf %371, %370 : vector<8x128xf32>
    %cst_170 = arith.constant 1.000000e+00 : f32
    %373 = vector.broadcast %cst_170 : f32 to vector<8x128xf32>
    %374 = arith.divf %373, %372 : vector<8x128xf32>
    %375 = vector.extract_strided_slice %366 {offsets = [0, 128], sizes = [8, 128], strides = [1, 1]} : vector<8x512xf32> to vector<8x128xf32>
    %cst_171 = arith.constant 0.000000e+00 : f32
    %376 = vector.broadcast %cst_171 : f32 to vector<8x128xf32>
    %377 = arith.subf %376, %375 : vector<8x128xf32>
    %378 = math.exp %377 : vector<8x128xf32>
    %cst_172 = arith.constant 1.000000e+00 : f32
    %379 = vector.broadcast %cst_172 : f32 to vector<8x128xf32>
    %380 = arith.addf %379, %378 : vector<8x128xf32>
    %cst_173 = arith.constant 1.000000e+00 : f32
    %381 = vector.broadcast %cst_173 : f32 to vector<8x128xf32>
    %382 = arith.divf %381, %380 : vector<8x128xf32>
    %383 = vector.extract_strided_slice %366 {offsets = [0, 256], sizes = [8, 128], strides = [1, 1]} : vector<8x512xf32> to vector<8x128xf32>
    %384 = math.tanh %383 : vector<8x128xf32>
    %385 = vector.extract_strided_slice %366 {offsets = [0, 384], sizes = [8, 128], strides = [1, 1]} : vector<8x512xf32> to vector<8x128xf32>
    %cst_174 = arith.constant 0.000000e+00 : f32
    %386 = vector.broadcast %cst_174 : f32 to vector<8x128xf32>
    %387 = arith.subf %386, %385 : vector<8x128xf32>
    %388 = math.exp %387 : vector<8x128xf32>
    %cst_175 = arith.constant 1.000000e+00 : f32
    %389 = vector.broadcast %cst_175 : f32 to vector<8x128xf32>
    %390 = arith.addf %389, %388 : vector<8x128xf32>
    %cst_176 = arith.constant 1.000000e+00 : f32
    %391 = vector.broadcast %cst_176 : f32 to vector<8x128xf32>
    %392 = arith.divf %391, %390 : vector<8x128xf32>
    %393 = arith.mulf %382, %360 : vector<8x128xf32>
    %394 = arith.mulf %374, %384 : vector<8x128xf32>
    %395 = arith.addf %393, %394 : vector<8x128xf32>
    %396 = math.tanh %395 : vector<8x128xf32>
    %397 = arith.mulf %392, %396 : vector<8x128xf32>
    %c8_177 = arith.constant 8 : index
    %c0_178 = arith.constant 0 : index
    %398 = vector.load %arg11[%c8_177, %c0_178] : memref<64x128xf32, #tpu.memory_space<vmem>>, vector<8x128xf32>
    tpu.vector_store %arg11[%c8_177, %c0_178], %397 {strides = array<i32>} : memref<64x128xf32, #tpu.memory_space<vmem>>, vector<8x128xf32>,
    %c16_179 = arith.constant 16 : index
    %c0_180 = arith.constant 0 : index
    %399 = vector.load %arg14[%c16_179, %c0_180] : memref<64x512xf32, #tpu.memory_space<vmem>>, vector<8x512xf32>
    %cst_181 = arith.constant dense<0.000000e+00> : vector<8x512xf32>
    %400 = tpu.matmul %397, %328, %cst_181 {dimension_numbers = #tpu.dot_dimension_numbers<[1], [0], [0], [1], [0, 0, 1, 1], [], []>} : vector<8x128xf32>, vector<128x512xf32>, vector<8x512xf32> -> vector<8x512xf32>
    %401 = arith.addf %399, %400 : vector<8x512xf32>
    %402 = vector.extract_strided_slice %401 {offsets = [0, 0], sizes = [8, 128], strides = [1, 1]} : vector<8x512xf32> to vector<8x128xf32>
    %cst_182 = arith.constant 0.000000e+00 : f32
    %403 = vector.broadcast %cst_182 : f32 to vector<8x128xf32>
    %404 = arith.subf %403, %402 : vector<8x128xf32>
    %405 = math.exp %404 : vector<8x128xf32>
    %cst_183 = arith.constant 1.000000e+00 : f32
    %406 = vector.broadcast %cst_183 : f32 to vector<8x128xf32>
    %407 = arith.addf %406, %405 : vector<8x128xf32>
    %cst_184 = arith.constant 1.000000e+00 : f32
    %408 = vector.broadcast %cst_184 : f32 to vector<8x128xf32>
    %409 = arith.divf %408, %407 : vector<8x128xf32>
    %410 = vector.extract_strided_slice %401 {offsets = [0, 128], sizes = [8, 128], strides = [1, 1]} : vector<8x512xf32> to vector<8x128xf32>
    %cst_185 = arith.constant 0.000000e+00 : f32
    %411 = vector.broadcast %cst_185 : f32 to vector<8x128xf32>
    %412 = arith.subf %411, %410 : vector<8x128xf32>
    %413 = math.exp %412 : vector<8x128xf32>
    %cst_186 = arith.constant 1.000000e+00 : f32
    %414 = vector.broadcast %cst_186 : f32 to vector<8x128xf32>
    %415 = arith.addf %414, %413 : vector<8x128xf32>
    %cst_187 = arith.constant 1.000000e+00 : f32
    %416 = vector.broadcast %cst_187 : f32 to vector<8x128xf32>
    %417 = arith.divf %416, %415 : vector<8x128xf32>
    %418 = vector.extract_strided_slice %401 {offsets = [0, 256], sizes = [8, 128], strides = [1, 1]} : vector<8x512xf32> to vector<8x128xf32>
    %419 = math.tanh %418 : vector<8x128xf32>
    %420 = vector.extract_strided_slice %401 {offsets = [0, 384], sizes = [8, 128], strides = [1, 1]} : vector<8x512xf32> to vector<8x128xf32>
    %cst_188 = arith.constant 0.000000e+00 : f32
    %421 = vector.broadcast %cst_188 : f32 to vector<8x128xf32>
    %422 = arith.subf %421, %420 : vector<8x128xf32>
    %423 = math.exp %422 : vector<8x128xf32>
    %cst_189 = arith.constant 1.000000e+00 : f32
    %424 = vector.broadcast %cst_189 : f32 to vector<8x128xf32>
    %425 = arith.addf %424, %423 : vector<8x128xf32>
    %cst_190 = arith.constant 1.000000e+00 : f32
    %426 = vector.broadcast %cst_190 : f32 to vector<8x128xf32>
    %427 = arith.divf %426, %425 : vector<8x128xf32>
    %428 = arith.mulf %417, %395 : vector<8x128xf32>
    %429 = arith.mulf %409, %419 : vector<8x128xf32>
    %430 = arith.addf %428, %429 : vector<8x128xf32>
    %431 = math.tanh %430 : vector<8x128xf32>
    %432 = arith.mulf %427, %431 : vector<8x128xf32>
    %c16_191 = arith.constant 16 : index
    %c0_192 = arith.constant 0 : index
    %433 = vector.load %arg11[%c16_191, %c0_192] : memref<64x128xf32, #tpu.memory_space<vmem>>, vector<8x128xf32>
    tpu.vector_store %arg11[%c16_191, %c0_192], %432 {strides = array<i32>} : memref<64x128xf32, #tpu.memory_space<vmem>>, vector<8x128xf32>,
    %c24_193 = arith.constant 24 : index
    %c0_194 = arith.constant 0 : index
    %434 = vector.load %arg14[%c24_193, %c0_194] : memref<64x512xf32, #tpu.memory_space<vmem>>, vector<8x512xf32>
    %cst_195 = arith.constant dense<0.000000e+00> : vector<8x512xf32>
    %435 = tpu.matmul %432, %328, %cst_195 {dimension_numbers = #tpu.dot_dimension_numbers<[1], [0], [0], [1], [0, 0, 1, 1], [], []>} : vector<8x128xf32>, vector<128x512xf32>, vector<8x512xf32> -> vector<8x512xf32>
    %436 = arith.addf %434, %435 : vector<8x512xf32>
    %437 = vector.extract_strided_slice %436 {offsets = [0, 0], sizes = [8, 128], strides = [1, 1]} : vector<8x512xf32> to vector<8x128xf32>
    %cst_196 = arith.constant 0.000000e+00 : f32
    %438 = vector.broadcast %cst_196 : f32 to vector<8x128xf32>
    %439 = arith.subf %438, %437 : vector<8x128xf32>
    %440 = math.exp %439 : vector<8x128xf32>
    %cst_197 = arith.constant 1.000000e+00 : f32
    %441 = vector.broadcast %cst_197 : f32 to vector<8x128xf32>
    %442 = arith.addf %441, %440 : vector<8x128xf32>
    %cst_198 = arith.constant 1.000000e+00 : f32
    %443 = vector.broadcast %cst_198 : f32 to vector<8x128xf32>
    %444 = arith.divf %443, %442 : vector<8x128xf32>
    %445 = vector.extract_strided_slice %436 {offsets = [0, 128], sizes = [8, 128], strides = [1, 1]} : vector<8x512xf32> to vector<8x128xf32>
    %cst_199 = arith.constant 0.000000e+00 : f32
    %446 = vector.broadcast %cst_199 : f32 to vector<8x128xf32>
    %447 = arith.subf %446, %445 : vector<8x128xf32>
    %448 = math.exp %447 : vector<8x128xf32>
    %cst_200 = arith.constant 1.000000e+00 : f32
    %449 = vector.broadcast %cst_200 : f32 to vector<8x128xf32>
    %450 = arith.addf %449, %448 : vector<8x128xf32>
    %cst_201 = arith.constant 1.000000e+00 : f32
    %451 = vector.broadcast %cst_201 : f32 to vector<8x128xf32>
    %452 = arith.divf %451, %450 : vector<8x128xf32>
    %453 = vector.extract_strided_slice %436 {offsets = [0, 256], sizes = [8, 128], strides = [1, 1]} : vector<8x512xf32> to vector<8x128xf32>
    %454 = math.tanh %453 : vector<8x128xf32>
    %455 = vector.extract_strided_slice %436 {offsets = [0, 384], sizes = [8, 128], strides = [1, 1]} : vector<8x512xf32> to vector<8x128xf32>
    %cst_202 = arith.constant 0.000000e+00 : f32
    %456 = vector.broadcast %cst_202 : f32 to vector<8x128xf32>
    %457 = arith.subf %456, %455 : vector<8x128xf32>
    %458 = math.exp %457 : vector<8x128xf32>
    %cst_203 = arith.constant 1.000000e+00 : f32
    %459 = vector.broadcast %cst_203 : f32 to vector<8x128xf32>
    %460 = arith.addf %459, %458 : vector<8x128xf32>
    %cst_204 = arith.constant 1.000000e+00 : f32
    %461 = vector.broadcast %cst_204 : f32 to vector<8x128xf32>
    %462 = arith.divf %461, %460 : vector<8x128xf32>
    %463 = arith.mulf %452, %430 : vector<8x128xf32>
    %464 = arith.mulf %444, %454 : vector<8x128xf32>
    %465 = arith.addf %463, %464 : vector<8x128xf32>
    %466 = math.tanh %465 : vector<8x128xf32>
    %467 = arith.mulf %462, %466 : vector<8x128xf32>
    %c24_205 = arith.constant 24 : index
    %c0_206 = arith.constant 0 : index
    %468 = vector.load %arg11[%c24_205, %c0_206] : memref<64x128xf32, #tpu.memory_space<vmem>>, vector<8x128xf32>
    tpu.vector_store %arg11[%c24_205, %c0_206], %467 {strides = array<i32>} : memref<64x128xf32, #tpu.memory_space<vmem>>, vector<8x128xf32>,
    %c32_207 = arith.constant 32 : index
    %c0_208 = arith.constant 0 : index
    %469 = vector.load %arg14[%c32_207, %c0_208] : memref<64x512xf32, #tpu.memory_space<vmem>>, vector<8x512xf32>
    %cst_209 = arith.constant dense<0.000000e+00> : vector<8x512xf32>
    %470 = tpu.matmul %467, %328, %cst_209 {dimension_numbers = #tpu.dot_dimension_numbers<[1], [0], [0], [1], [0, 0, 1, 1], [], []>} : vector<8x128xf32>, vector<128x512xf32>, vector<8x512xf32> -> vector<8x512xf32>
    %471 = arith.addf %469, %470 : vector<8x512xf32>
    %472 = vector.extract_strided_slice %471 {offsets = [0, 0], sizes = [8, 128], strides = [1, 1]} : vector<8x512xf32> to vector<8x128xf32>
    %cst_210 = arith.constant 0.000000e+00 : f32
    %473 = vector.broadcast %cst_210 : f32 to vector<8x128xf32>
    %474 = arith.subf %473, %472 : vector<8x128xf32>
    %475 = math.exp %474 : vector<8x128xf32>
    %cst_211 = arith.constant 1.000000e+00 : f32
    %476 = vector.broadcast %cst_211 : f32 to vector<8x128xf32>
    %477 = arith.addf %476, %475 : vector<8x128xf32>
    %cst_212 = arith.constant 1.000000e+00 : f32
    %478 = vector.broadcast %cst_212 : f32 to vector<8x128xf32>
    %479 = arith.divf %478, %477 : vector<8x128xf32>
    %480 = vector.extract_strided_slice %471 {offsets = [0, 128], sizes = [8, 128], strides = [1, 1]} : vector<8x512xf32> to vector<8x128xf32>
    %cst_213 = arith.constant 0.000000e+00 : f32
    %481 = vector.broadcast %cst_213 : f32 to vector<8x128xf32>
    %482 = arith.subf %481, %480 : vector<8x128xf32>
    %483 = math.exp %482 : vector<8x128xf32>
    %cst_214 = arith.constant 1.000000e+00 : f32
    %484 = vector.broadcast %cst_214 : f32 to vector<8x128xf32>
    %485 = arith.addf %484, %483 : vector<8x128xf32>
    %cst_215 = arith.constant 1.000000e+00 : f32
    %486 = vector.broadcast %cst_215 : f32 to vector<8x128xf32>
    %487 = arith.divf %486, %485 : vector<8x128xf32>
    %488 = vector.extract_strided_slice %471 {offsets = [0, 256], sizes = [8, 128], strides = [1, 1]} : vector<8x512xf32> to vector<8x128xf32>
    %489 = math.tanh %488 : vector<8x128xf32>
    %490 = vector.extract_strided_slice %471 {offsets = [0, 384], sizes = [8, 128], strides = [1, 1]} : vector<8x512xf32> to vector<8x128xf32>
    %cst_216 = arith.constant 0.000000e+00 : f32
    %491 = vector.broadcast %cst_216 : f32 to vector<8x128xf32>
    %492 = arith.subf %491, %490 : vector<8x128xf32>
    %493 = math.exp %492 : vector<8x128xf32>
    %cst_217 = arith.constant 1.000000e+00 : f32
    %494 = vector.broadcast %cst_217 : f32 to vector<8x128xf32>
    %495 = arith.addf %494, %493 : vector<8x128xf32>
    %cst_218 = arith.constant 1.000000e+00 : f32
    %496 = vector.broadcast %cst_218 : f32 to vector<8x128xf32>
    %497 = arith.divf %496, %495 : vector<8x128xf32>
    %498 = arith.mulf %487, %465 : vector<8x128xf32>
    %499 = arith.mulf %479, %489 : vector<8x128xf32>
    %500 = arith.addf %498, %499 : vector<8x128xf32>
    %501 = math.tanh %500 : vector<8x128xf32>
    %502 = arith.mulf %497, %501 : vector<8x128xf32>
    %c32_219 = arith.constant 32 : index
    %c0_220 = arith.constant 0 : index
    %503 = vector.load %arg11[%c32_219, %c0_220] : memref<64x128xf32, #tpu.memory_space<vmem>>, vector<8x128xf32>
    tpu.vector_store %arg11[%c32_219, %c0_220], %502 {strides = array<i32>} : memref<64x128xf32, #tpu.memory_space<vmem>>, vector<8x128xf32>,
    %c40_221 = arith.constant 40 : index
    %c0_222 = arith.constant 0 : index
    %504 = vector.load %arg14[%c40_221, %c0_222] : memref<64x512xf32, #tpu.memory_space<vmem>>, vector<8x512xf32>
    %cst_223 = arith.constant dense<0.000000e+00> : vector<8x512xf32>
    %505 = tpu.matmul %502, %328, %cst_223 {dimension_numbers = #tpu.dot_dimension_numbers<[1], [0], [0], [1], [0, 0, 1, 1], [], []>} : vector<8x128xf32>, vector<128x512xf32>, vector<8x512xf32> -> vector<8x512xf32>
    %506 = arith.addf %504, %505 : vector<8x512xf32>
    %507 = vector.extract_strided_slice %506 {offsets = [0, 0], sizes = [8, 128], strides = [1, 1]} : vector<8x512xf32> to vector<8x128xf32>
    %cst_224 = arith.constant 0.000000e+00 : f32
    %508 = vector.broadcast %cst_224 : f32 to vector<8x128xf32>
    %509 = arith.subf %508, %507 : vector<8x128xf32>
    %510 = math.exp %509 : vector<8x128xf32>
    %cst_225 = arith.constant 1.000000e+00 : f32
    %511 = vector.broadcast %cst_225 : f32 to vector<8x128xf32>
    %512 = arith.addf %511, %510 : vector<8x128xf32>
    %cst_226 = arith.constant 1.000000e+00 : f32
    %513 = vector.broadcast %cst_226 : f32 to vector<8x128xf32>
    %514 = arith.divf %513, %512 : vector<8x128xf32>
    %515 = vector.extract_strided_slice %506 {offsets = [0, 128], sizes = [8, 128], strides = [1, 1]} : vector<8x512xf32> to vector<8x128xf32>
    %cst_227 = arith.constant 0.000000e+00 : f32
    %516 = vector.broadcast %cst_227 : f32 to vector<8x128xf32>
    %517 = arith.subf %516, %515 : vector<8x128xf32>
    %518 = math.exp %517 : vector<8x128xf32>
    %cst_228 = arith.constant 1.000000e+00 : f32
    %519 = vector.broadcast %cst_228 : f32 to vector<8x128xf32>
    %520 = arith.addf %519, %518 : vector<8x128xf32>
    %cst_229 = arith.constant 1.000000e+00 : f32
    %521 = vector.broadcast %cst_229 : f32 to vector<8x128xf32>
    %522 = arith.divf %521, %520 : vector<8x128xf32>
    %523 = vector.extract_strided_slice %506 {offsets = [0, 256], sizes = [8, 128], strides = [1, 1]} : vector<8x512xf32> to vector<8x128xf32>
    %524 = math.tanh %523 : vector<8x128xf32>
    %525 = vector.extract_strided_slice %506 {offsets = [0, 384], sizes = [8, 128], strides = [1, 1]} : vector<8x512xf32> to vector<8x128xf32>
    %cst_230 = arith.constant 0.000000e+00 : f32
    %526 = vector.broadcast %cst_230 : f32 to vector<8x128xf32>
    %527 = arith.subf %526, %525 : vector<8x128xf32>
    %528 = math.exp %527 : vector<8x128xf32>
    %cst_231 = arith.constant 1.000000e+00 : f32
    %529 = vector.broadcast %cst_231 : f32 to vector<8x128xf32>
    %530 = arith.addf %529, %528 : vector<8x128xf32>
    %cst_232 = arith.constant 1.000000e+00 : f32
    %531 = vector.broadcast %cst_232 : f32 to vector<8x128xf32>
    %532 = arith.divf %531, %530 : vector<8x128xf32>
    %533 = arith.mulf %522, %500 : vector<8x128xf32>
    %534 = arith.mulf %514, %524 : vector<8x128xf32>
    %535 = arith.addf %533, %534 : vector<8x128xf32>
    %536 = math.tanh %535 : vector<8x128xf32>
    %537 = arith.mulf %532, %536 : vector<8x128xf32>
    %c40_233 = arith.constant 40 : index
    %c0_234 = arith.constant 0 : index
    %538 = vector.load %arg11[%c40_233, %c0_234] : memref<64x128xf32, #tpu.memory_space<vmem>>, vector<8x128xf32>
    tpu.vector_store %arg11[%c40_233, %c0_234], %537 {strides = array<i32>} : memref<64x128xf32, #tpu.memory_space<vmem>>, vector<8x128xf32>,
    %c48_235 = arith.constant 48 : index
    %c0_236 = arith.constant 0 : index
    %539 = vector.load %arg14[%c48_235, %c0_236] : memref<64x512xf32, #tpu.memory_space<vmem>>, vector<8x512xf32>
    %cst_237 = arith.constant dense<0.000000e+00> : vector<8x512xf32>
    %540 = tpu.matmul %537, %328, %cst_237 {dimension_numbers = #tpu.dot_dimension_numbers<[1], [0], [0], [1], [0, 0, 1, 1], [], []>} : vector<8x128xf32>, vector<128x512xf32>, vector<8x512xf32> -> vector<8x512xf32>
    %541 = arith.addf %539, %540 : vector<8x512xf32>
    %542 = vector.extract_strided_slice %541 {offsets = [0, 0], sizes = [8, 128], strides = [1, 1]} : vector<8x512xf32> to vector<8x128xf32>
    %cst_238 = arith.constant 0.000000e+00 : f32
    %543 = vector.broadcast %cst_238 : f32 to vector<8x128xf32>
    %544 = arith.subf %543, %542 : vector<8x128xf32>
    %545 = math.exp %544 : vector<8x128xf32>
    %cst_239 = arith.constant 1.000000e+00 : f32
    %546 = vector.broadcast %cst_239 : f32 to vector<8x128xf32>
    %547 = arith.addf %546, %545 : vector<8x128xf32>
    %cst_240 = arith.constant 1.000000e+00 : f32
    %548 = vector.broadcast %cst_240 : f32 to vector<8x128xf32>
    %549 = arith.divf %548, %547 : vector<8x128xf32>
    %550 = vector.extract_strided_slice %541 {offsets = [0, 128], sizes = [8, 128], strides = [1, 1]} : vector<8x512xf32> to vector<8x128xf32>
    %cst_241 = arith.constant 0.000000e+00 : f32
    %551 = vector.broadcast %cst_241 : f32 to vector<8x128xf32>
    %552 = arith.subf %551, %550 : vector<8x128xf32>
    %553 = math.exp %552 : vector<8x128xf32>
    %cst_242 = arith.constant 1.000000e+00 : f32
    %554 = vector.broadcast %cst_242 : f32 to vector<8x128xf32>
    %555 = arith.addf %554, %553 : vector<8x128xf32>
    %cst_243 = arith.constant 1.000000e+00 : f32
    %556 = vector.broadcast %cst_243 : f32 to vector<8x128xf32>
    %557 = arith.divf %556, %555 : vector<8x128xf32>
    %558 = vector.extract_strided_slice %541 {offsets = [0, 256], sizes = [8, 128], strides = [1, 1]} : vector<8x512xf32> to vector<8x128xf32>
    %559 = math.tanh %558 : vector<8x128xf32>
    %560 = vector.extract_strided_slice %541 {offsets = [0, 384], sizes = [8, 128], strides = [1, 1]} : vector<8x512xf32> to vector<8x128xf32>
    %cst_244 = arith.constant 0.000000e+00 : f32
    %561 = vector.broadcast %cst_244 : f32 to vector<8x128xf32>
    %562 = arith.subf %561, %560 : vector<8x128xf32>
    %563 = math.exp %562 : vector<8x128xf32>
    %cst_245 = arith.constant 1.000000e+00 : f32
    %564 = vector.broadcast %cst_245 : f32 to vector<8x128xf32>
    %565 = arith.addf %564, %563 : vector<8x128xf32>
    %cst_246 = arith.constant 1.000000e+00 : f32
    %566 = vector.broadcast %cst_246 : f32 to vector<8x128xf32>
    %567 = arith.divf %566, %565 : vector<8x128xf32>
    %568 = arith.mulf %557, %535 : vector<8x128xf32>
    %569 = arith.mulf %549, %559 : vector<8x128xf32>
    %570 = arith.addf %568, %569 : vector<8x128xf32>
    %571 = math.tanh %570 : vector<8x128xf32>
    %572 = arith.mulf %567, %571 : vector<8x128xf32>
    %c48_247 = arith.constant 48 : index
    %c0_248 = arith.constant 0 : index
    %573 = vector.load %arg11[%c48_247, %c0_248] : memref<64x128xf32, #tpu.memory_space<vmem>>, vector<8x128xf32>
    tpu.vector_store %arg11[%c48_247, %c0_248], %572 {strides = array<i32>} : memref<64x128xf32, #tpu.memory_space<vmem>>, vector<8x128xf32>,
    %c56_249 = arith.constant 56 : index
    %c0_250 = arith.constant 0 : index
    %574 = vector.load %arg14[%c56_249, %c0_250] : memref<64x512xf32, #tpu.memory_space<vmem>>, vector<8x512xf32>
    %cst_251 = arith.constant dense<0.000000e+00> : vector<8x512xf32>
    %575 = tpu.matmul %572, %328, %cst_251 {dimension_numbers = #tpu.dot_dimension_numbers<[1], [0], [0], [1], [0, 0, 1, 1], [], []>} : vector<8x128xf32>, vector<128x512xf32>, vector<8x512xf32> -> vector<8x512xf32>
    %576 = arith.addf %574, %575 : vector<8x512xf32>
    %577 = vector.extract_strided_slice %576 {offsets = [0, 0], sizes = [8, 128], strides = [1, 1]} : vector<8x512xf32> to vector<8x128xf32>
    %cst_252 = arith.constant 0.000000e+00 : f32
    %578 = vector.broadcast %cst_252 : f32 to vector<8x128xf32>
    %579 = arith.subf %578, %577 : vector<8x128xf32>
    %580 = math.exp %579 : vector<8x128xf32>
    %cst_253 = arith.constant 1.000000e+00 : f32
    %581 = vector.broadcast %cst_253 : f32 to vector<8x128xf32>
    %582 = arith.addf %581, %580 : vector<8x128xf32>
    %cst_254 = arith.constant 1.000000e+00 : f32
    %583 = vector.broadcast %cst_254 : f32 to vector<8x128xf32>
    %584 = arith.divf %583, %582 : vector<8x128xf32>
    %585 = vector.extract_strided_slice %576 {offsets = [0, 128], sizes = [8, 128], strides = [1, 1]} : vector<8x512xf32> to vector<8x128xf32>
    %cst_255 = arith.constant 0.000000e+00 : f32
    %586 = vector.broadcast %cst_255 : f32 to vector<8x128xf32>
    %587 = arith.subf %586, %585 : vector<8x128xf32>
    %588 = math.exp %587 : vector<8x128xf32>
    %cst_256 = arith.constant 1.000000e+00 : f32
    %589 = vector.broadcast %cst_256 : f32 to vector<8x128xf32>
    %590 = arith.addf %589, %588 : vector<8x128xf32>
    %cst_257 = arith.constant 1.000000e+00 : f32
    %591 = vector.broadcast %cst_257 : f32 to vector<8x128xf32>
    %592 = arith.divf %591, %590 : vector<8x128xf32>
    %593 = vector.extract_strided_slice %576 {offsets = [0, 256], sizes = [8, 128], strides = [1, 1]} : vector<8x512xf32> to vector<8x128xf32>
    %594 = math.tanh %593 : vector<8x128xf32>
    %595 = vector.extract_strided_slice %576 {offsets = [0, 384], sizes = [8, 128], strides = [1, 1]} : vector<8x512xf32> to vector<8x128xf32>
    %cst_258 = arith.constant 0.000000e+00 : f32
    %596 = vector.broadcast %cst_258 : f32 to vector<8x128xf32>
    %597 = arith.subf %596, %595 : vector<8x128xf32>
    %598 = math.exp %597 : vector<8x128xf32>
    %cst_259 = arith.constant 1.000000e+00 : f32
    %599 = vector.broadcast %cst_259 : f32 to vector<8x128xf32>
    %600 = arith.addf %599, %598 : vector<8x128xf32>
    %cst_260 = arith.constant 1.000000e+00 : f32
    %601 = vector.broadcast %cst_260 : f32 to vector<8x128xf32>
    %602 = arith.divf %601, %600 : vector<8x128xf32>
    %603 = arith.mulf %592, %570 : vector<8x128xf32>
    %604 = arith.mulf %584, %594 : vector<8x128xf32>
    %605 = arith.addf %603, %604 : vector<8x128xf32>
    %606 = math.tanh %605 : vector<8x128xf32>
    %607 = arith.mulf %602, %606 : vector<8x128xf32>
    %c56_261 = arith.constant 56 : index
    %c0_262 = arith.constant 0 : index
    %608 = vector.load %arg11[%c56_261, %c0_262] : memref<64x128xf32, #tpu.memory_space<vmem>>, vector<8x128xf32>
    tpu.vector_store %arg11[%c56_261, %c0_262], %607 {strides = array<i32>} : memref<64x128xf32, #tpu.memory_space<vmem>>, vector<8x128xf32>,
    %c1_263 = arith.constant 1 : index
    %c0_264 = arith.constant 0 : index
    %c0_265 = arith.constant 0 : index
    %609 = vector.load %arg12[%c1_263, %c0_264, %c0_265] : memref<2x8x128xf32, #tpu.memory_space<vmem>>, vector<1x8x128xf32>
    %610 = vector.shape_cast %609 : vector<1x8x128xf32> to vector<8x128xf32>
    %611 = vector.shape_cast %607 : vector<8x128xf32> to vector<1x8x128xf32>
    tpu.vector_store %arg12[%c1_263, %c0_264, %c0_265], %611 {strides = array<i32>} : memref<2x8x128xf32, #tpu.memory_space<vmem>>, vector<1x8x128xf32>,
    %c1_266 = arith.constant 1 : index
    %c0_267 = arith.constant 0 : index
    %c0_268 = arith.constant 0 : index
    %612 = vector.load %arg13[%c1_266, %c0_267, %c0_268] : memref<2x8x128xf32, #tpu.memory_space<vmem>>, vector<1x8x128xf32>
    %613 = vector.shape_cast %612 : vector<1x8x128xf32> to vector<8x128xf32>
    %614 = vector.shape_cast %605 : vector<8x128xf32> to vector<1x8x128xf32>
    tpu.vector_store %arg13[%c1_266, %c0_267, %c0_268], %614 {strides = array<i32>} : memref<2x8x128xf32, #tpu.memory_space<vmem>>, vector<1x8x128xf32>,
    return
  }
}

</mosaic_0001>

<bundles_post_ra>
// kernel: tpu_custom_call.1
= control target key start
LH: loop header
LB: loop body
LE: loop exit
PB: predicated region body
PF: predicated region fallthrough
CT: control target
= control target key end

     0   :  { %19 = vsyncpa [#allocation4], 0  ;;  %s7350_s0 = inlined_call_operand.vmem [shape: s32[64,1], index: 0, kind: input, shape index: {}]   ;;  %s7351_s1 = inlined_call_operand.vmem [shape: f32[64,32], index: 1, kind: input, shape index: {}]   ;;  %s7352_s2 = inlined_call_operand.vmem [shape: f32[2,8,128], index: 2, kind: input, shape index: {}]   ;;  %s7353_s3 = inlined_call_operand.vmem [shape: f32[2,8,128], index: 3, kind: input, shape index: {}]   ;;  %s7354_s4 = inlined_call_operand.vmem [shape: f32[32,512], index: 4, kind: input, shape index: {}]   ;;  %s7355_s5 = inlined_call_operand.hbm [shape: f32[128,512], index: 5, kind: input, shape index: {}]   ;;  %s7356_s6 = inlined_call_operand.hbm [shape: f32[128,512], index: 6, kind: input, shape index: {}]   ;;  %s7357_s7 = inlined_call_operand.vmem [shape: f32[1,512], index: 7, kind: input, shape index: {}]   ;;  %s7358_s8 = inlined_call_operand.hbm [shape: f32[128,512], index: 8, kind: input, shape index: {}]   ;;  %s7359_s9 = inlined_call_operand.hbm [shape: f32[128,512], index: 9, kind: input, shape index: {}]   ;;  %s7360_s10 = inlined_call_operand.vmem [shape: f32[1,512], index: 10, kind: input, shape index: {}]   ;;  %s7361_s11 = inlined_call_operand.hbm [shape: f32[64,128], index: 11, kind: output, shape index: {0}]   ;;  %s7362_s12 = inlined_call_operand.hbm [shape: f32[2,8,128], index: 12, kind: output, shape index: {1}]   ;;  %s7363_s13 = inlined_call_operand.hbm [shape: f32[2,8,128], index: 13, kind: output, shape index: {2}]  }
   0x1   :  { %20 = vsyncpa [#allocation7], 0 }
   0x2   :  { %21 = vsyncpa [#allocation10], 0 }
   0x3   :  { %22 = vsyncpa [#allocation5], 0 }
   0x4   :  { %23 = vsyncpa [#allocation13], 0  ;;  %s6028_s25 = smov [#allocation6]   ;;  %s6029_s27 = smov [#allocation3]  }
   0x5   :  { %s51_s26 = sshll.u32 %s6028_s25, 4  ;;  %s39_s28 = sshll.u32 %s6029_s27, 4  ;;  %s52_s26 = int_to_ptr.vmem [resolvable:$true] %s51_s26  ;;  %s6111_s28 = int_to_ptr.vmem [resolvable:$true] %s39_s28 }
   0x6   :  { %s5864_s14 = scalar_lea.hbm %s7356_s6, 8192 }
   0x7   :  { %p5865_p0 = scmp.ne.s32.totalorder %s7356_s6, %s5864_s14  ;;  %p5868_p1 = scmp.lt.u32.totalorder %s5864_s14, %s7356_s6 }
   0x9   :  { %p5870_p2 = pnand %p5868_p1, %p5865_p0 }
   0xb   :  { %5873 = shalt.err (!%p5870_p2)
}
   0xc   :  { %s5874_s19 = scalar_lea.vmem %s52_s26, 8192  ;;  %p5879_p4 = scmp.lt.s32.totalorder %s52_s26, %s52_s26 }
   0xd   :  { %p5875_p3 = scmp.ne.s32.totalorder %s52_s26, %s5874_s19  ;;  %p5880_p5 = scmp.lt.s32.totalorder %s5874_s19, %s5874_s19 }
   0xf   :  { %p5881_p6 = por %p5880_p5, %p5879_p4 }
  0x11   :  { %p5882_p7 = pnand %p5881_p6, %p5875_p3 }
  0x13   :  { %5885 = shalt.err (!%p5882_p7)
}
  0x14   :  { %s6030_s20 = smov 512   ;;  %s6031_s21 = smov 32  }
  0x15   :  { %57 = dma.hbm_to_vmem [thread:$0]  %s7356_s6, 8192, %s52_s26, [#allocation7], %s6030_s20, %s6030_s20, %s6031_s21  }
  0x16   :  { %s5886_s27 = scalar_lea.hbm %s7355_s5, 8192 }
  0x17   :  { %p5887_p8 = scmp.ne.s32.totalorder %s7355_s5, %s5886_s27  ;;  %p5890_p9 = scmp.lt.u32.totalorder %s5886_s27, %s7355_s5 }
  0x19   :  { %p5892_p10 = pnand %p5890_p9, %p5887_p8 }
  0x1b   :  { %5895 = shalt.err (!%p5892_p10)
}
  0x1c   :  { %s5896_s16 = scalar_lea.vmem %s6111_s28, 8192  ;;  %p5901_p12 = scmp.lt.s32.totalorder %s6111_s28, %s6111_s28 }
  0x1d   :  { %p5897_p11 = scmp.ne.s32.totalorder %s6111_s28, %s5896_s16  ;;  %p5902_p13 = scmp.lt.s32.totalorder %s5896_s16, %s5896_s16 }
  0x1f   :  { %p5903_p0 = por %p5902_p13, %p5901_p12 }
  0x21   :  { %p5904_p1 = pnand %p5903_p0, %p5897_p11 }
  0x23   :  { %5907 = shalt.err (!%p5904_p1)
}
  0x24   :  { %45 = dma.hbm_to_vmem [thread:$0]  %s7355_s5, 8192, %s6111_s28, [#allocation4], %s6030_s20, %s6030_s20, %s6031_s21  }
  0x25   :  { %s6032_s17 = smov [#allocation8]   ;;  %s6033_s19 = smov [#allocation9]  }
  0x26   :  { %s65_s18 = sshll.u32 %s6032_s17, 4  ;;  %s77_s22 = sshll.u32 %s6033_s19, 4  ;;  %s66_s18 = int_to_ptr.vmem [resolvable:$true] %s65_s18  ;;  %s6148_s22 = int_to_ptr.vmem [resolvable:$true] %s77_s22 }
  0x27   :  { %s5908_s25 = scalar_lea.hbm %s7358_s8, 8192 }
  0x28   :  { %p5909_p2 = scmp.ne.s32.totalorder %s7358_s8, %s5908_s25  ;;  %p5912_p3 = scmp.lt.u32.totalorder %s5908_s25, %s7358_s8 }
  0x2a   :  { %p5914_p4 = pnand %p5912_p3, %p5909_p2 }
  0x2c   :  { %5917 = shalt.err (!%p5914_p4)
}
  0x2d   :  { %s5918_s5 = scalar_lea.vmem %s66_s18, 8192  ;;  %p5923_p6 = scmp.lt.s32.totalorder %s66_s18, %s66_s18 }
  0x2e   :  { %p5919_p5 = scmp.ne.s32.totalorder %s66_s18, %s5918_s5  ;;  %p5924_p7 = scmp.lt.s32.totalorder %s5918_s5, %s5918_s5 }
  0x30   :  { %p5925_p8 = por %p5924_p7, %p5923_p6 }
  0x32   :  { %p5926_p9 = pnand %p5925_p8, %p5919_p5 }
  0x34   :  { %5929 = shalt.err (!%p5926_p9)
}
  0x35   :  { %71 = dma.hbm_to_vmem [thread:$0]  %s7358_s8, 8192, %s66_s18, [#allocation7], %s6030_s20, %s6030_s20, %s6031_s21  }
  0x36   :  { %s5930_s26 = scalar_lea.hbm %s7359_s9, 8192 }
  0x37   :  { %p5931_p10 = scmp.ne.s32.totalorder %s7359_s9, %s5930_s26  ;;  %p5934_p11 = scmp.lt.u32.totalorder %s5930_s26, %s7359_s9 }
  0x39   :  { %p5936_p12 = pnand %p5934_p11, %p5931_p10 }
  0x3b   :  { %5939 = shalt.err (!%p5936_p12)
}
  0x3c   :  { %s5940_s25 = scalar_lea.vmem %s6148_s22, 8192  ;;  %p5945_p0 = scmp.lt.s32.totalorder %s6148_s22, %s6148_s22 }
  0x3d   :  { %p5941_p13 = scmp.ne.s32.totalorder %s6148_s22, %s5940_s25  ;;  %p5946_p1 = scmp.lt.s32.totalorder %s5940_s25, %s5940_s25 }
  0x3f   :  { %p5947_p2 = por %p5946_p1, %p5945_p0 }
  0x41   :  { %p5948_p3 = pnand %p5947_p2, %p5941_p13 }
  0x43   :  { %5951 = shalt.err (!%p5948_p3)
}
  0x44   :  { %83 = dma.hbm_to_vmem [thread:$0]  %s7359_s9, 8192, %s6148_s22, [#allocation10], %s6030_s20, %s6030_s20, %s6031_s21  }
  0x45   :  { %6018 = dma.done.wait [#allocation4], 8192  }
  0x46   :  { %6019 = vsyncadd [#allocation4], 4294959104 }
  0x47   :  { %6020 = dma.done.wait [#allocation7], 16384  }
  0x48   :  { %6021 = vsyncadd [#allocation7], 4294950912 }
  0x49   :  { %6022 = dma.done.wait [#allocation10], 8192  }
  0x4a   :  { %6023 = vsyncadd [#allocation10], 4294959104  ;;  %v6034_v0 = vmov 0   ;;  %v100_v1 = vld [vmem:[%s7350_s0 + $0x10] sm:$0xff]  ;;  %v98_v2 = vld [vmem:[%s7350_s0] sm:$0xff]  ;;  %v106_v27 = vlaneseq  ;;  %vm164_vm0 = vcmask 523264  }
  0x4b   :  { %5607 = vset.pattern.permute.xlu1 %v6034_v0  ;;  %5606 = vset.pattern.permute.xlu0 %v6034_v0  ;;  %v101_v3 = vld [vmem:[%s7350_s0 + $0x18] sm:$0xff]  ;;  %v99_v4 = vld [vmem:[%s7350_s0 + $0x8] sm:$0xff]  ;;  %v156_v5 = vld [vmem:[%s7351_s1] sm:$0xff]  ;;  %v6035_v33 = vmov 0.0   ;;  %vm332_vm9 = vcmask 261120   ;;  %s6037_s21 = smov [#allocation11]  }
  0x4c   :  { %115 = vperm.xlu1 %5607, %v100_v1   ;;  %109 = vperm.xlu0 %5606, %v98_v2   ;;  %v157_v6 = vld [vmem:[%s7351_s1 + $0x8] sm:$0xff]  ;;  %v158_v7 = vld [vmem:[%s7351_s1 + $0x10] sm:$0xff]  ;;  %v159_v8 = vld [vmem:[%s7351_s1 + $0x18] sm:$0xff]  ;;  %v107_v28 = vand.u32 127, %v106_v27  ;;  %s4150_s22 = sshll.u32 %s6037_s21, 4  ;;  %s6038_s5 = smov [#allocation14]   ;;  %s7291_s22 = int_to_ptr.vmem [resolvable:$true] %s4150_s22 }
  0x4d   :  { %v4273_v9 = vpack.c.bf16 %v157_v6, %v156_v5  ;;  %v4277_v10 = vpack.c.bf16 %v159_v8, %v158_v7  ;;  %v160_v11 = vld [vmem:[%s7351_s1 + $0x20] sm:$0xff]  ;;  %v161_v12 = vld [vmem:[%s7351_s1 + $0x28] sm:$0xff]  ;;  %v162_v16 = vld [vmem:[%s7351_s1 + $0x30] sm:$0xff]  ;;  %s4174_s28 = sshll.u32 %s6038_s5, 4  ;;  %s7293_s28 = int_to_ptr.vmem [resolvable:$true] %s4174_s28 }
  0x4e   :  { %v103_v13 = vld [vmem:[%s7350_s0 + $0x28] sm:$0xff]  ;;  %v102_v14 = vld [vmem:[%s7350_s0 + $0x20] sm:$0xff]  ;;  %v4281_v15 = vpack.c.bf16 %v161_v12, %v160_v11  ;;  %v163_v17 = vld [vmem:[%s7351_s1 + $0x38] sm:$0xff] }
  0x4f   :  { %4274 = vmatprep.subr.bf16.mxu0 %v4273_v9  ;;  %5457 = vmatprep.subr.bf16.mxu1 %v4273_v9  ;;  %v105_v18 = vld [vmem:[%s7350_s0 + $0x38] sm:$0xff]  ;;  %v104_v19 = vld [vmem:[%s7350_s0 + $0x30] sm:$0xff]  ;;  %v4285_v20 = vpack.c.bf16 %v163_v17, %v162_v16  ;;  %v295_v21 = vld [vmem:[%s7354_s4 + $0x8] sm:$0xff] }
  0x50   :  { %118 = vperm.xlu1 %5607, %v101_v3   ;;  %112 = vperm.xlu0 %5606, %v99_v4   ;;  %v299_v22 = vld [vmem:[%s7354_s4 + $0x28] sm:$0xff]  ;;  %v297_v23 = vld [vmem:[%s7354_s4 + $0x18] sm:$0xff]  ;;  %v296_v31 = vld [vmem:[%s7354_s4 + $0x10] sm:$0xff] }
  0x51   :  { %4276 = vmatpush3.bf16.msra.mxu0 %v4273_v9  ;;  %5461 = vmatpush3.bf16.msra.mxu1 %v4273_v9  ;;  %v4289_v24 = vpack.c.bf16 %v299_v22, %v295_v21  ;;  %v301_v25 = vld [vmem:[%s7354_s4 + $0x38] sm:$0xff]  ;;  %v300_v32 = vld [vmem:[%s7354_s4 + $0x30] sm:$0xff]  ;;  %v294_v45 = vld [vmem:[%s7354_s4] sm:$0xff] }
  0x52   :  { %4278 = vmatprep.subr.bf16.mxu0 %v4277_v10  ;;  %5458 = vmatprep.subr.bf16.mxu1 %v4277_v10  ;;  %v4297_v26 = vpack.c.bf16 %v301_v25, %v297_v23  ;;  %v305_v35 = vld [vmem:[%s7354_s4 + $0x58] sm:$0xff]  ;;  %v4299_v39 = vpack.c.bf16 %v300_v32, %v296_v31  ;;  %v304_v42 = vld [vmem:[%s7354_s4 + $0x50] sm:$0xff]  ;;  %v298_v46 = vld [vmem:[%s7354_s4 + $0x20] sm:$0xff] }
  0x53   :  { %v309_v36 = vld [vmem:[%s7354_s4 + $0x78] sm:$0xff]  ;;  %v308_v43 = vld [vmem:[%s7354_s4 + $0x70] sm:$0xff]  ;;  %v303_v47 = vld [vmem:[%s7354_s4 + $0x48] sm:$0xff]  ;;  %v4291_v53 = vpack.c.bf16 %v298_v46, %v294_v45 }
  0x54   :  { %124 = vperm.xlu1 %5607, %v103_v13   ;;  %121 = vperm.xlu0 %5606, %v102_v14   ;;  %v4301_v41 = vpack.c.bf16 %v309_v36, %v305_v35  ;;  %v307_v48 = vld [vmem:[%s7354_s4 + $0x68] sm:$0xff]  ;;  %v4303_v52 = vpack.c.bf16 %v308_v43, %v304_v42  ;;  %v302_v57 = vld [vmem:[%s7354_s4 + $0x40] sm:$0xff]  ;;  %v619_v2 = vld [vmem:[#allocation3 + $0x18] sm:$0xff] }
  0x55   :  { %4280 = vmatpush3.bf16.msra.mxu0 %v4277_v10  ;;  %5462 = vmatpush3.bf16.msra.mxu1 %v4277_v10  ;;  %v4293_v56 = vpack.c.bf16 %v307_v48, %v303_v47  ;;  %v306_v58 = vld [vmem:[%s7354_s4 + $0x60] sm:$0xff]  ;;  %v617_v0 = vld [vmem:[#allocation3 + $0x8] sm:$0xff]  ;;  %v623_v4 = vld [vmem:[#allocation3 + $0x38] sm:$0xff] }
  0x56   :  { %4282 = vmatprep.subr.bf16.mxu0 %v4281_v15  ;;  %5459 = vmatprep.subr.bf16.mxu1 %v4281_v15  ;;  %v4295_v61 = vpack.c.bf16 %v306_v58, %v302_v57  ;;  %v621_v1 = vld [vmem:[#allocation3 + $0x28] sm:$0xff]  ;;  %v4337_v5 = vpack.c.bf16 %v623_v4, %v619_v2  ;;  %v616_v6 = vld [vmem:[#allocation3] sm:$0xff]  ;;  %v618_v8 = vld [vmem:[#allocation3 + $0x10] sm:$0xff] }
  0x57   :  { %v4305_v3 = vpack.c.bf16 %v621_v1, %v617_v0  ;;  %v620_v7 = vld [vmem:[#allocation3 + $0x20] sm:$0xff]  ;;  %v622_v9 = vld [vmem:[#allocation3 + $0x30] sm:$0xff]  ;;  %v625_v10 = vld [vmem:[#allocation3 + $0x48] sm:$0xff] }
  0x58   :  { %130 = vperm.xlu1 %5607, %v105_v18   ;;  %127 = vperm.xlu0 %5606, %v104_v19   ;;  %v629_v11 = vld [vmem:[#allocation3 + $0x68] sm:$0xff]  ;;  %v627_v12 = vld [vmem:[#allocation3 + $0x58] sm:$0xff]  ;;  %v4307_v14 = vpack.c.bf16 %v620_v7, %v616_v6  ;;  %v624_v16 = vld [vmem:[#allocation3 + $0x40] sm:$0xff] }
  0x59   :  { %4284 = vmatpush3.bf16.msra.mxu0 %v4281_v15  ;;  %5463 = vmatpush3.bf16.msra.mxu1 %v4281_v15  ;;  %v631_v13 = vld [vmem:[#allocation3 + $0x78] sm:$0xff]  ;;  %v4339_v15 = vpack.c.bf16 %v622_v9, %v618_v8  ;;  %v628_v18 = vld [vmem:[#allocation3 + $0x60] sm:$0xff]  ;;  %v626_v19 = vld [vmem:[#allocation3 + $0x50] sm:$0xff]  ;;  %v4309_v22 = vpack.c.bf16 %v629_v11, %v625_v10 }
  0x5a   :  { %4286 = vmatprep.subr.bf16.mxu0 %v4285_v20  ;;  %5460 = vmatprep.subr.bf16.mxu1 %v4285_v20  ;;  %v4341_v23 = vpack.c.bf16 %v631_v13, %v627_v12  ;;  %v637_v25 = vld [vmem:[#allocation3 + $0xa8] sm:$0xff]  ;;  %v632_v31 = vld [vmem:[#allocation3 + $0x80] sm:$0xff]  ;;  %v634_v35 = vld [vmem:[#allocation3 + $0x90] sm:$0xff] }
  0x5b   :  { %v638_v36 = vld [vmem:[#allocation3 + $0xb0] sm:$0xff]  ;;  %v645_v43 = vld [vmem:[#allocation3 + $0xe8] sm:$0xff]  ;;  %v647_v45 = vld [vmem:[#allocation3 + $0xf8] sm:$0xff] }
  0x5c   :  { %v4347_v47 = vpack.c.bf16 %v638_v36, %v634_v35  ;;  %v640_v48 = vld [vmem:[#allocation3 + $0xc0] sm:$0xff]  ;;  %v653_v57 = vld [vmem:[#allocation3 + $0x128] sm:$0xff]  ;;  %v651_v58 = vld [vmem:[#allocation3 + $0x118] sm:$0xff] }
  0x5d   :  { %4288 = vmatpush3.bf16.msra.mxu0 %v4285_v20  ;;  %5464 = vmatpush3.bf16.msra.mxu1 %v4285_v20  ;;  %v630_v20 = vld [vmem:[#allocation3 + $0x70] sm:$0xff]  ;;  %v657_v4 = vld [vmem:[#allocation3 + $0x148] sm:$0xff]  ;;  %v659_v6 = vld [vmem:[#allocation3 + $0x158] sm:$0xff] }
  0x5e   :  { %4290 = vmatprep.subr.bf16.mxu1 %v4289_v24  ;;  %4298 = vmatprep.subr.bf16.mxu0 %v4297_v26  ;;  %v633_v24 = vld [vmem:[#allocation3 + $0x88] sm:$0xff]  ;;  %v635_v26 = vld [vmem:[#allocation3 + $0x98] sm:$0xff]  ;;  %v650_v0 = vld [vmem:[#allocation3 + $0x110] sm:$0xff] }
  0x5f   :  { %v654_v1 = vld [vmem:[#allocation3 + $0x130] sm:$0xff]  ;;  %v663_v7 = vld [vmem:[#allocation3 + $0x178] sm:$0xff]  ;;  %v656_v10 = vld [vmem:[#allocation3 + $0x140] sm:$0xff] }
  0x60   :  { %v4355_v9 = vpack.c.bf16 %v654_v1, %v650_v0  ;;  %v660_v11 = vld [vmem:[#allocation3 + $0x160] sm:$0xff]  ;;  %v658_v12 = vld [vmem:[#allocation3 + $0x150] sm:$0xff] }
  0x61   :  { %v662_v13 = vld [vmem:[#allocation3 + $0x170] sm:$0xff]  ;;  %v672_v36 = vld [vmem:[#allocation3 + $0x1c0] sm:$0xff] }
  0x62   :  { %v833_v1 = vld [vmem:[#allocation6 + $0x50] sm:$0xff] }
  0xcb   :  { %v116_v29 = vpop.permute.xlu1 %115  ;;  %v110_v30 = vpop.permute.xlu0 %109 }
  0xcc   :  { %vm132_vm1 = vcmp.eq.s32.totalorder %v110_v30, %v107_v28  ;;  %vm134_vm2 = vcmp.eq.s32.totalorder %v116_v29, %v107_v28  ;;  %v4311_v29 = vpack.c.bf16 %v628_v18, %v624_v16  ;;  %v4343_v30 = vpack.c.bf16 %v630_v20, %v626_v19  ;;  %v665_v16 = vld [vmem:[#allocation3 + $0x188] sm:$0xff]  ;;  %v667_v18 = vld [vmem:[#allocation3 + $0x198] sm:$0xff] }
  0xcd   :  { %v4195_v34 = vsel %vm132_vm1, 1.0, %v6035_v33  ;;  %v4197_v40 = vsel %vm134_vm2, 1.0, %v6035_v33  ;;  %v671_v19 = vld [vmem:[#allocation3 + $0x1b8] sm:$0xff]  ;;  %v4327_v20 = vpack.c.bf16 %v660_v11, %v656_v10  ;;  %v843_v10 = vld [vmem:[#allocation6 + $0xa0] sm:$0xff] }
  0xce   :  { %4261 = vmatprep.mubr.msk.f32.mxu0 %vm164_vm0, %v4195_v34  ;;  %v636_v34 = vld [vmem:[#allocation3 + $0xa0] sm:$0xff] }
  0xcf   :  { %v119_v37 = vpop.permute.xlu1 %118  ;;  %v113_v38 = vpop.permute.xlu0 %112  ;;  %v4315_v46 = vpack.c.bf16 %v636_v34, %v632_v31  ;;  %v675_v31 = vld [vmem:[#allocation3 + $0x1d8] sm:$0xff] }
  0xd0   :  { %vm135_vm3 = vcmp.eq.s32.totalorder %v119_v37, %v107_v28  ;;  %vm133_vm4 = vcmp.eq.s32.totalorder %v113_v38, %v107_v28 }
  0xd1   :  { %v4196_v44 = vsel %vm133_vm4, 1.0, %v6035_v33  ;;  %v4198_v49 = vsel %vm135_vm3, 1.0, %v6035_v33 }
  0xd2   :  { %4262 = vmatmul.mubr.msk.f32.vlgmr.msra.gmra.mrb[0].mxu0 %vm164_vm0, %v4196_v44  ;;  %v643_v44 = vld [vmem:[#allocation3 + $0xd8] sm:$0xff] }
  0xd3   :  { %v125_v50 = vpop.permute.xlu1 %124  ;;  %v122_v51 = vpop.permute.xlu0 %121  ;;  %4264 = vmatprep.mubr.msk.f32.mxu0 %vm164_vm0, %v4197_v40  ;;  %4300 = vmatpush1.bf16.msra.mxu0 %v4299_v39  ;;  %v4313_v39 = vpack.c.bf16 %v637_v25, %v633_v24  ;;  %v666_v24 = vld [vmem:[#allocation3 + $0x190] sm:$0xff] }
  0xd4   :  { %vm137_vm5 = vcmp.eq.s32.totalorder %v125_v50, %v107_v28  ;;  %vm136_vm6 = vcmp.eq.s32.totalorder %v122_v51, %v107_v28  ;;  %4302 = vmatprep.subr.bf16.mxu0 %v4301_v41  ;;  %v641_v41 = vld [vmem:[#allocation3 + $0xc8] sm:$0xff]  ;;  %v642_v50 = vld [vmem:[#allocation3 + $0xd0] sm:$0xff] }
  0xd5   :  { %v4200_v54 = vsel %vm137_vm5, 1.0, %v6035_v33  ;;  %v4199_v55 = vsel %vm136_vm6, 1.0, %v6035_v33  ;;  %v646_v51 = vld [vmem:[#allocation3 + $0xf0] sm:$0xff] }
  0xd6   :  { %4265 = vmatmul.mubr.msk.f32.gmra.mrb[2].mxu0 %vm164_vm0, %v4198_v49  ;;  %4267 = vmatprep.mubr.msk.f32.mxu1 %vm164_vm0, %v4199_v55  ;;  %v644_v49 = vld [vmem:[#allocation3 + $0xe0] sm:$0xff]  ;;  %v649_v55 = vld [vmem:[#allocation3 + $0x108] sm:$0xff]  ;;  %v670_v25 = vld [vmem:[#allocation3 + $0x1b0] sm:$0xff] }
  0xd7   :  { %v131_v59 = vpop.permute.xlu1 %130  ;;  %4268 = vmatmul.mubr.msk.f32.vlgmr.msra.gmra.mrb[0].mxu1 %vm164_vm0, %v4200_v54  ;;  %v128_v60 = vpop.permute.xlu0 %127  ;;  %4304 = vmatpush1.bf16.msra.mxu0 %v4303_v52  ;;  %v4349_v54 = vpack.c.bf16 %v647_v45, %v643_v44  ;;  %v4321_v2 = vpack.c.bf16 %v653_v57, %v649_v55  ;;  %v4363_v35 = vpack.c.bf16 %v670_v25, %v666_v24  ;;  %v826_v44 = vld [vmem:[#allocation6 + $0x18] sm:$0xff]  ;;  %v849_v25 = vld [vmem:[#allocation6 + $0xd0] sm:$0xff] }
  0xd8   :  { %vm139_vm7 = vcmp.eq.s32.totalorder %v131_v59, %v107_v28  ;;  %vm138_vm8 = vcmp.eq.s32.totalorder %v128_v60, %v107_v28  ;;  %4292 = vmatpush1.bf16.msra.mxu1 %v4291_v53  ;;  %534 = vmatprep.mubr.f32.mxu0 %v6035_v33  ;;  %v639_v28 = vld [vmem:[#allocation3 + $0xb8] sm:$0xff]  ;;  %v4317_v53 = vpack.c.bf16 %v645_v43, %v641_v41  ;;  %v828_v43 = vld [vmem:[#allocation6 + $0x28] sm:$0xff] }
  0xd9   :  { %v4202_v62 = vsel %vm139_vm7, 1.0, %v6035_v33  ;;  %v4201_v63 = vsel %vm138_vm8, 1.0, %v6035_v33  ;;  %4294 = vmatprep.subr.bf16.mxu1 %v4293_v56  ;;  %4338 = vmatprep.subr.bf16.mxu0 %v4337_v5  ;;  %v4345_v40 = vpack.c.bf16 %v639_v28, %v635_v26  ;;  %v655_v59 = vld [vmem:[#allocation3 + $0x138] sm:$0xff]  ;;  %v4319_v60 = vpack.c.bf16 %v644_v49, %v640_v48  ;;  %v661_v5 = vld [vmem:[#allocation3 + $0x168] sm:$0xff]  ;;  %v823_v48 = vld [vmem:[#allocation6] sm:$0xff] }
  0xda   :  { %4270 = vmatprep.mubr.msk.f32.mxu1 %vm164_vm0, %v4201_v63  ;;  %v652_v63 = vld [vmem:[#allocation3 + $0x120] sm:$0xff]  ;;  %v4361_v28 = vpack.c.bf16 %v671_v19, %v667_v18  ;;  %v830_v45 = vld [vmem:[#allocation6 + $0x38] sm:$0xff] }
  0xdb   :  { %4271 = vmatmul.mubr.msk.f32.gmra.mrb[2].mxu1 %vm164_vm0, %v4202_v62  ;;  %v648_v62 = vld [vmem:[#allocation3 + $0x100] sm:$0xff]  ;;  %v6344_v55 = vpack.c.bf16 %v830_v45, %v826_v44  ;;  %v834_v57 = vld [vmem:[#allocation6 + $0x58] sm:$0xff] }
  0xdc   :  { %4296 = vmatpush1.bf16.msra.mxu1 %v4295_v61  ;;  %421 = vmatprep.mubr.f32.mxu1 %v6035_v33  ;;  %v4351_v61 = vpack.c.bf16 %v646_v51, %v642_v50  ;;  %v4323_v8 = vpack.c.bf16 %v652_v63, %v648_v62  ;;  %v827_v49 = vld [vmem:[#allocation6 + $0x20] sm:$0xff]  ;;  %v825_v50 = vld [vmem:[#allocation6 + $0x10] sm:$0xff]  ;;  %v854_v18 = vld [vmem:[#allocation6 + $0xf8] sm:$0xff] }
  0xdd   :  { %4306 = vmatprep.subr.bf16.mxu1 %v4305_v3  ;;  %v4353_v3 = vpack.c.bf16 %v655_v59, %v651_v58  ;;  %v829_v51 = vld [vmem:[#allocation6 + $0x30] sm:$0xff]  ;;  %v838_v58 = vld [vmem:[#allocation6 + $0x78] sm:$0xff]  ;;  %v6353_v59 = vld [vmem:[%s7352_s2] sm:$0xff] }
  0xde   :  { %v831_v62 = vld [vmem:[#allocation6 + $0x40] sm:$0xff]  ;;  %v870_v44 = vld [vmem:[#allocation6 + $0x178] sm:$0xff] }
  0xdf   :  { %v835_v63 = vld [vmem:[#allocation6 + $0x60] sm:$0xff] }
 0x1a5   :  { %v4263_v17 = vpop.f32.mrb[0].mxu0 }
 0x1a6   :  { %v255_v21 = vpop.f32.mrb[1].mxu0 }
 0x1a7   :  { %4211 = vmatmul.mubr.msk.f32.vlgmr.msra.gmra.mrb[4].mxu1 %vm332_vm9, %v255_v21  ;;  %4219 = vmatmul.mubr.msk.f32.vlgmr.msra.gmra.mrb[4].mxu0 %vm332_vm9, %v255_v21  ;;  %v4359_v21 = vpack.c.bf16 %v662_v13, %v658_v12  ;;  %v841_v13 = vld [vmem:[#allocation6 + $0x90] sm:$0xff] }
 0x1a8   :  { %4308 = vmatpush1.bf16.msra.mxu1 %v4307_v14  ;;  %4340 = vmatpush1.bf16.msra.mxu0 %v4339_v15  ;;  %v4325_v14 = vpack.c.bf16 %v661_v5, %v657_v4  ;;  %v4357_v15 = vpack.c.bf16 %v663_v7, %v659_v6  ;;  %v844_v4 = vld [vmem:[#allocation6 + $0xa8] sm:$0xff]  ;;  %v842_v5 = vld [vmem:[#allocation6 + $0x98] sm:$0xff]  ;;  %v6371_v7 = vpack.c.bf16 %v835_v63, %v831_v62 }
 0x1a9   :  { %v4266_v32 = vpop.f32.mrb[2].mxu0  ;;  %427 = vmatprep.mubr.f32.mxu1 %v6035_v33  ;;  %540 = vmatprep.mubr.f32.mxu0 %v6035_v33  ;;  %v846_v6 = vld [vmem:[#allocation6 + $0xb8] sm:$0xff] }
 0x1aa   :  { %v265_v37 = vpop.f32.mrb[3].mxu0  ;;  %v6304_v38 = vpop.f32.mrb[0].mxu1  ;;  %4310 = vmatprep.subr.bf16.mxu1 %v4309_v22  ;;  %4342 = vmatprep.subr.bf16.mxu0 %v4341_v23  ;;  %v664_v22 = vld [vmem:[#allocation3 + $0x180] sm:$0xff]  ;;  %v6379_v12 = vpack.c.bf16 %v846_v6, %v842_v5  ;;  %v878_v62 = vld [vmem:[#allocation6 + $0x1b8] sm:$0xff]  ;;  %v873_v6 = vld [vmem:[#allocation6 + $0x190] sm:$0xff] }
 0x1ab   :  { %v6306_v42 = vpop.f32.mrb[1].mxu1  ;;  %4212 = vmatmul.mubr.msk.f32.gmra.mrb[6].mxu1 %vm332_vm9, %v4263_v17  ;;  %4220 = vmatmul.mubr.msk.f32.gmra.mrb[6].mxu0 %vm332_vm9, %v4263_v17  ;;  %v669_v17 = vld [vmem:[#allocation3 + $0x1a8] sm:$0xff]  ;;  %v668_v23 = vld [vmem:[#allocation3 + $0x1a0] sm:$0xff] }
 0x1ac   :  { %4312 = vmatpush1.bf16.msra.mxu1 %v4311_v29  ;;  %4344 = vmatpush1.bf16.msra.mxu0 %v4343_v30  ;;  %v4329_v26 = vpack.c.bf16 %v669_v17, %v665_v16  ;;  %v673_v29 = vld [vmem:[#allocation3 + $0x1c8] sm:$0xff]  ;;  %v4331_v34 = vpack.c.bf16 %v668_v23, %v664_v22  ;;  %v850_v17 = vld [vmem:[#allocation6 + $0xd8] sm:$0xff]  ;;  %v851_v22 = vld [vmem:[#allocation6 + $0xe0] sm:$0xff] }
 0x1ad   :  { %433 = vmatprep.mubr.f32.mxu1 %v6035_v33  ;;  %546 = vmatprep.mubr.f32.mxu0 %v6035_v33  ;;  %v677_v30 = vld [vmem:[#allocation3 + $0x1e8] sm:$0xff]  ;;  %v6393_v24 = vpack.c.bf16 %v854_v18, %v850_v17  ;;  %v879_v18 = vld [vmem:[#allocation6 + $0x1c0] sm:$0xff] }
 0x1ae   :  { %v6312_v52 = vpop.f32.mrb[2].mxu1  ;;  %4314 = vmatprep.subr.bf16.mxu1 %v4313_v39  ;;  %4346 = vmatprep.subr.bf16.mxu0 %v4345_v40  ;;  %v674_v39 = vld [vmem:[#allocation3 + $0x1d0] sm:$0xff]  ;;  %v4333_v41 = vpack.c.bf16 %v677_v30, %v673_v29  ;;  %v852_v16 = vld [vmem:[#allocation6 + $0xe8] sm:$0xff]  ;;  %v858_v30 = vld [vmem:[#allocation6 + $0x118] sm:$0xff] }
 0x1af   :  { %v6314_v56 = vpop.f32.mrb[3].mxu1  ;;  %4213 = vmatmul.mubr.msk.f32.gmra.mrb[8].mxu1 %vm332_vm9, %v265_v37  ;;  %4221 = vmatmul.mubr.msk.f32.gmra.mrb[8].mxu0 %vm332_vm9, %v265_v37  ;;  %v676_v37 = vld [vmem:[#allocation3 + $0x1e0] sm:$0xff]  ;;  %v678_v40 = vld [vmem:[#allocation3 + $0x1f0] sm:$0xff]  ;;  %v860_v29 = vld [vmem:[#allocation6 + $0x128] sm:$0xff] }
 0x1b0   :  { %4316 = vmatpush1.bf16.msra.mxu1 %v4315_v46  ;;  %4348 = vmatpush1.bf16.msra.mxu0 %v4347_v47  ;;  %v4335_v46 = vpack.c.bf16 %v676_v37, %v672_v36  ;;  %v4367_v47 = vpack.c.bf16 %v678_v40, %v674_v39  ;;  %v859_v36 = vld [vmem:[#allocation6 + $0x120] sm:$0xff]  ;;  %v857_v40 = vld [vmem:[#allocation6 + $0x110] sm:$0xff] }
 0x1b1   :  { %439 = vmatprep.mubr.f32.mxu1 %v6035_v33  ;;  %552 = vmatprep.mubr.f32.mxu0 %v6035_v33 }
 0x1b2   :  { %4318 = vmatprep.subr.bf16.mxu1 %v4317_v53  ;;  %4350 = vmatprep.subr.bf16.mxu0 %v4349_v54  ;;  %v832_v53 = vld [vmem:[#allocation6 + $0x48] sm:$0xff] }
 0x1b3   :  { %4214 = vmatmul.mubr.msk.f32.gmra.mrb[10].mxu1 %vm332_vm9, %v4266_v32  ;;  %4222 = vmatmul.mubr.msk.f32.gmra.mrb[10].mxu0 %vm332_vm9, %v4266_v32  ;;  %v679_v32 = vld [vmem:[#allocation3 + $0x1f8] sm:$0xff] }
 0x1b4   :  { %4320 = vmatpush1.bf16.msra.mxu1 %v4319_v60  ;;  %4352 = vmatpush1.bf16.msra.mxu0 %v4351_v61  ;;  %v6355_v60 = vpack.c.bf16 %v827_v49, %v823_v48  ;;  %v6357_v61 = vpack.c.bf16 %v829_v51, %v825_v50  ;;  %v867_v48 = vld [vmem:[#allocation6 + $0x160] sm:$0xff]  ;;  %v865_v51 = vld [vmem:[#allocation6 + $0x150] sm:$0xff] }
 0x1b5   :  { %445 = vmatprep.mubr.f32.mxu1 %v6035_v33  ;;  %558 = vmatprep.mubr.f32.mxu0 %v6035_v33 }
 0x1b6   :  { %4322 = vmatprep.subr.bf16.mxu1 %v4321_v2  ;;  %4354 = vmatprep.subr.bf16.mxu0 %v4353_v3  ;;  %v837_v2 = vld [vmem:[#allocation6 + $0x70] sm:$0xff]  ;;  %v840_v3 = vld [vmem:[#allocation6 + $0x88] sm:$0xff] }
 0x1b7   :  { %4215 = vmatmul.mubr.msk.f32.gmra.mrb[12].mxu1 %vm332_vm9, %v6306_v42  ;;  %4223 = vmatmul.mubr.msk.f32.gmra.mrb[12].mxu0 %vm332_vm9, %v6306_v42  ;;  %v4365_v42 = vpack.c.bf16 %v679_v32, %v675_v31  ;;  %v6377_v11 = vpack.c.bf16 %v844_v4, %v840_v3  ;;  %v862_v31 = vld [vmem:[#allocation6 + $0x138] sm:$0xff]  ;;  %v875_v3 = vld [vmem:[#allocation6 + $0x1a0] sm:$0xff] }
 0x1b8   :  { %4324 = vmatpush1.bf16.msra.mxu1 %v4323_v8  ;;  %4356 = vmatpush1.bf16.msra.mxu0 %v4355_v9  ;;  %v6373_v8 = vpack.c.bf16 %v837_v2, %v833_v1  ;;  %v839_v9 = vld [vmem:[#allocation6 + $0x80] sm:$0xff]  ;;  %v6405_v39 = vpack.c.bf16 %v862_v31, %v858_v30 }
 0x1b9   :  { %451 = vmatprep.mubr.f32.mxu1 %v6035_v33  ;;  %564 = vmatprep.mubr.f32.mxu0 %v6035_v33  ;;  %v6385_v19 = vpack.c.bf16 %v843_v10, %v839_v9  ;;  %v871_v2 = vld [vmem:[#allocation6 + $0x180] sm:$0xff]  ;;  %v877_v9 = vld [vmem:[#allocation6 + $0x1b0] sm:$0xff]  ;;  %v880_v10 = vld [vmem:[#allocation6 + $0x1c8] sm:$0xff] }
 0x1ba   :  { %4326 = vmatprep.subr.bf16.mxu1 %v4325_v14  ;;  %4358 = vmatprep.subr.bf16.mxu0 %v4357_v15  ;;  %v845_v14 = vld [vmem:[#allocation6 + $0xb0] sm:$0xff]  ;;  %v848_v15 = vld [vmem:[#allocation6 + $0xc8] sm:$0xff]  ;;  %v6435_v17 = vpack.c.bf16 %v877_v9, %v873_v6 }
 0x1bb   :  { %4216 = vmatmul.mubr.msk.f32.gmra.mrb[14].mxu1 %vm332_vm9, %v6304_v38  ;;  %4224 = vmatmul.mubr.msk.f32.gmra.mrb[14].mxu0 %vm332_vm9, %v6304_v38  ;;  %v824_v38 = vld [vmem:[#allocation6 + $0x8] sm:$0xff]  ;;  %v6391_v23 = vpack.c.bf16 %v852_v16, %v848_v15  ;;  %v886_v15 = vld [vmem:[#allocation6 + $0x1f8] sm:$0xff]  ;;  %v6433_v16 = vpack.c.bf16 %v875_v3, %v871_v2 }
 0x1bc   :  { %4328 = vmatpush1.bf16.msra.mxu1 %v4327_v20  ;;  %4360 = vmatpush1.bf16.msra.mxu0 %v4359_v21  ;;  %v6342_v54 = vpack.c.bf16 %v828_v43, %v824_v38  ;;  %v6387_v20 = vpack.c.bf16 %v845_v14, %v841_v13  ;;  %v847_v21 = vld [vmem:[#allocation6 + $0xc0] sm:$0xff]  ;;  %v868_v38 = vld [vmem:[#allocation6 + $0x168] sm:$0xff]  ;;  %v866_v43 = vld [vmem:[#allocation6 + $0x158] sm:$0xff] }
 0x1bd   :  { %457 = vmatprep.mubr.f32.mxu1 %v6035_v33  ;;  %570 = vmatprep.mubr.f32.mxu0 %v6035_v33  ;;  %v6397_v32 = vpack.c.bf16 %v851_v22, %v847_v21  ;;  %v6417_v50 = vpack.c.bf16 %v870_v44, %v866_v43  ;;  %v884_v13 = vld [vmem:[#allocation6 + $0x1e8] sm:$0xff]  ;;  %v882_v14 = vld [vmem:[#allocation6 + $0x1d8] sm:$0xff] }
 0x1be   :  { %4330 = vmatprep.subr.bf16.mxu1 %v4329_v26  ;;  %4362 = vmatprep.subr.bf16.mxu0 %v4361_v28  ;;  %v853_v26 = vld [vmem:[#allocation6 + $0xf0] sm:$0xff]  ;;  %v856_v28 = vld [vmem:[#allocation6 + $0x108] sm:$0xff]  ;;  %v6439_v21 = vpack.c.bf16 %v884_v13, %v880_v10  ;;  %v6441_v22 = vpack.c.bf16 %v886_v15, %v882_v14 }
 0x1bf   :  { %4217 = vmatmul.mubr.msk.f32.gmra.mrb[16].mxu1 %vm332_vm9, %v6314_v56  ;;  %4225 = vmatmul.mubr.msk.f32.gmra.mrb[16].mxu0 %vm332_vm9, %v6314_v56  ;;  %v836_v56 = vld [vmem:[#allocation6 + $0x68] sm:$0xff]  ;;  %v6403_v37 = vpack.c.bf16 %v860_v29, %v856_v28  ;;  %v885_v28 = vld [vmem:[#allocation6 + $0x1f0] sm:$0xff] }
 0x1c0   :  { %4332 = vmatpush1.bf16.msra.mxu1 %v4331_v34  ;;  %4364 = vmatpush1.bf16.msra.mxu0 %v4363_v35  ;;  %v6361_v0 = vpack.c.bf16 %v836_v56, %v832_v53  ;;  %v6399_v34 = vpack.c.bf16 %v853_v26, %v849_v25  ;;  %v855_v35 = vld [vmem:[#allocation6 + $0x100] sm:$0xff]  ;;  %v869_v53 = vld [vmem:[#allocation6 + $0x170] sm:$0xff]  ;;  %v872_v56 = vld [vmem:[#allocation6 + $0x188] sm:$0xff] }
 0x1c1   :  { %463 = vmatprep.mubr.f32.mxu1 %v6035_v33  ;;  %576 = vmatprep.mubr.f32.mxu0 %v6035_v33  ;;  %v6409_v45 = vpack.c.bf16 %v859_v36, %v855_v35  ;;  %v6423_v1 = vpack.c.bf16 %v869_v53, %v865_v51  ;;  %v883_v25 = vld [vmem:[#allocation6 + $0x1e0] sm:$0xff]  ;;  %v881_v26 = vld [vmem:[#allocation6 + $0x1d0] sm:$0xff] }
 0x1c2   :  { %4334 = vmatprep.subr.bf16.mxu1 %v4333_v41  ;;  %4366 = vmatprep.subr.bf16.mxu0 %v4365_v42  ;;  %v861_v41 = vld [vmem:[#allocation6 + $0x130] sm:$0xff]  ;;  %v864_v42 = vld [vmem:[#allocation6 + $0x148] sm:$0xff]  ;;  %v6445_v29 = vpack.c.bf16 %v883_v25, %v879_v18  ;;  %v6447_v30 = vpack.c.bf16 %v885_v28, %v881_v26 }
 0x1c3   :  { %4218 = vmatmul.mubr.msk.f32.gmra.mrb[18].mxu1 %vm332_vm9, %v6312_v52  ;;  %4226 = vmatmul.mubr.msk.f32.gmra.mrb[18].mxu0 %vm332_vm9, %v6312_v52  ;;  %v6363_v52 = vpack.c.bf16 %v838_v58, %v834_v57  ;;  %v6415_v49 = vpack.c.bf16 %v868_v38, %v864_v42  ;;  %v876_v57 = vld [vmem:[#allocation6 + $0x1a8] sm:$0xff]  ;;  %v874_v58 = vld [vmem:[#allocation6 + $0x198] sm:$0xff]  ;;  %v310_v38 = vld [vmem:[%s7357_s7] sm:$0xf] }
 0x1c4   :  { %4336 = vmatpush1.bf16.msra.mxu1 %v4335_v46  ;;  %4368 = vmatpush1.bf16.msra.mxu0 %v4367_v47  ;;  %v6411_v46 = vpack.c.bf16 %v861_v41, %v857_v40  ;;  %v863_v47 = vld [vmem:[#allocation6 + $0x140] sm:$0xff]  ;;  %v6427_v4 = vpack.c.bf16 %v876_v57, %v872_v56  ;;  %v6429_v5 = vpack.c.bf16 %v878_v62, %v874_v58  ;;  %v6500_v40 = vshrl.u32 %v106_v27, 7 }
 0x1c5   :  { %744 = vmatprep.mubr.f32.mxu1 %v6035_v33  ;;  %815 = vmatprep.mubr.f32.mxu0 %v6035_v33  ;;  %v6421_v63 = vpack.c.bf16 %v867_v48, %v863_v47 }
 0x1c6   :  { %4370 = vmatprep.subr.bf16.mxu1 %v6342_v54  ;;  %4402 = vmatprep.subr.bf16.mxu0 %v6344_v55  ;;  %v7367_v41 = vsub.s32 0, %v6500_v40  ;;  %v7364_v42 = vsub.s32 2, %v6500_v40  ;;  %v7366_v43 = vsub.s32 1, %v6500_v40  ;;  %v7365_v44 = vsub.s32 3, %v6500_v40 }
 0x1c7   :  { %745 = vmatmul.mubr.f32.vlgmr.msra.gmra.mrb[20].mxu1 %v6353_v59  ;;  %816 = vmatmul.mubr.f32.vlgmr.msra.gmra.mrb[20].mxu0 %v6353_v59 }
 0x1c8   :  { %4372 = vmatpush1.bf16.msra.mxu1 %v6355_v60  ;;  %4404 = vmatpush1.bf16.msra.mxu0 %v6357_v61  ;;  %v6511_v47 = vrot.slane %v310_v38, %v7367_v41  ;;  %v6515_v27 = vrot.slane %v310_v38, %v7364_v42  ;;  %v6519_v48 = vrot.slane %v310_v38, %v7366_v43 }
 0x1c9   :  { %4374 = vmatprep.subr.bf16.mxu1 %v6361_v0  ;;  %4406 = vmatprep.subr.bf16.mxu0 %v6363_v52  ;;  %v6523_v51 = vrot.slane %v310_v38, %v7365_v44 }
 0x1ca   :  { %955 = vmatprep.mubr.f32.mxu1 %v6035_v33  ;;  %1026 = vmatprep.mubr.f32.mxu0 %v6035_v33 }
 0x1cc   :  { %4376 = vmatpush1.bf16.msra.mxu1 %v6371_v7  ;;  %4408 = vmatpush1.bf16.msra.mxu0 %v6373_v8 }
 0x1cd   :  { %4378 = vmatprep.subr.bf16.mxu1 %v6377_v11  ;;  %4410 = vmatprep.subr.bf16.mxu0 %v6379_v12 }
 0x1d0   :  { %4380 = vmatpush1.bf16.msra.mxu1 %v6385_v19  ;;  %4412 = vmatpush1.bf16.msra.mxu0 %v6387_v20 }
 0x1d1   :  { %4382 = vmatprep.subr.bf16.mxu1 %v6391_v23  ;;  %4414 = vmatprep.subr.bf16.mxu0 %v6393_v24 }
 0x1d4   :  { %4384 = vmatpush1.bf16.msra.mxu1 %v6397_v32  ;;  %4416 = vmatpush1.bf16.msra.mxu0 %v6399_v34 }
 0x1d5   :  { %4386 = vmatprep.subr.bf16.mxu1 %v6403_v37  ;;  %4418 = vmatprep.subr.bf16.mxu0 %v6405_v39 }
 0x1d8   :  { %4388 = vmatpush1.bf16.msra.mxu1 %v6409_v45  ;;  %4420 = vmatpush1.bf16.msra.mxu0 %v6411_v46 }
 0x1d9   :  { %4390 = vmatprep.subr.bf16.mxu1 %v6415_v49  ;;  %4422 = vmatprep.subr.bf16.mxu0 %v6417_v50 }
 0x1dc   :  { %4392 = vmatpush1.bf16.msra.mxu1 %v6421_v63  ;;  %4424 = vmatpush1.bf16.msra.mxu0 %v6423_v1 }
 0x1dd   :  { %4394 = vmatprep.subr.bf16.mxu1 %v6427_v4  ;;  %4426 = vmatprep.subr.bf16.mxu0 %v6429_v5 }
 0x1e0   :  { %4396 = vmatpush1.bf16.msra.mxu1 %v6433_v16  ;;  %4428 = vmatpush1.bf16.msra.mxu0 %v6435_v17 }
 0x1e1   :  { %4398 = vmatprep.subr.bf16.mxu1 %v6439_v21  ;;  %4430 = vmatprep.subr.bf16.mxu0 %v6441_v22 }
 0x1e4   :  { %4400 = vmatpush1.bf16.msra.mxu1 %v6445_v29  ;;  %4432 = vmatpush1.bf16.msra.mxu0 %v6447_v30 }
 0x1e5   :  { %4434 = vmatprep.subr.bf16.mxu1 %v6342_v54  ;;  %4466 = vmatprep.subr.bf16.mxu0 %v6344_v55 }
 0x1e7   :  { %956 = vmatmul.mubr.f32.vlgmr.msra.gmra.mrb[4].mxu1 %v6353_v59  ;;  %1027 = vmatmul.mubr.f32.vlgmr.msra.gmra.mrb[4].mxu0 %v6353_v59 }
 0x1e8   :  { %4436 = vmatpush1.bf16.msra.mxu1 %v6355_v60  ;;  %4468 = vmatpush1.bf16.msra.mxu0 %v6357_v61 }
 0x1e9   :  { %4438 = vmatprep.subr.bf16.mxu1 %v6361_v0  ;;  %4470 = vmatprep.subr.bf16.mxu0 %v6363_v52 }
 0x1ea   :  { %1134 = vmatprep.mubr.f32.mxu1 %v6035_v33  ;;  %1205 = vmatprep.mubr.f32.mxu0 %v6035_v33 }
 0x1ec   :  { %4440 = vmatpush1.bf16.msra.mxu1 %v6371_v7  ;;  %4472 = vmatpush1.bf16.msra.mxu0 %v6373_v8 }
 0x1ed   :  { %4442 = vmatprep.subr.bf16.mxu1 %v6377_v11  ;;  %4474 = vmatprep.subr.bf16.mxu0 %v6379_v12 }
 0x1f0   :  { %4444 = vmatpush1.bf16.msra.mxu1 %v6385_v19  ;;  %4476 = vmatpush1.bf16.msra.mxu0 %v6387_v20 }
 0x1f1   :  { %4446 = vmatprep.subr.bf16.mxu1 %v6391_v23  ;;  %4478 = vmatprep.subr.bf16.mxu0 %v6393_v24 }
 0x1f4   :  { %4448 = vmatpush1.bf16.msra.mxu1 %v6397_v32  ;;  %4480 = vmatpush1.bf16.msra.mxu0 %v6399_v34 }
 0x1f5   :  { %4450 = vmatprep.subr.bf16.mxu1 %v6403_v37  ;;  %4482 = vmatprep.subr.bf16.mxu0 %v6405_v39 }
 0x1f8   :  { %4452 = vmatpush1.bf16.msra.mxu1 %v6409_v45  ;;  %4484 = vmatpush1.bf16.msra.mxu0 %v6411_v46 }
 0x1f9   :  { %4454 = vmatprep.subr.bf16.mxu1 %v6415_v49  ;;  %4486 = vmatprep.subr.bf16.mxu0 %v6417_v50 }
 0x1fc   :  { %4456 = vmatpush1.bf16.msra.mxu1 %v6421_v63  ;;  %4488 = vmatpush1.bf16.msra.mxu0 %v6423_v1 }
 0x1fd   :  { %4458 = vmatprep.subr.bf16.mxu1 %v6427_v4  ;;  %4490 = vmatprep.subr.bf16.mxu0 %v6429_v5 }
 0x200   :  { %4460 = vmatpush1.bf16.msra.mxu1 %v6433_v16  ;;  %4492 = vmatpush1.bf16.msra.mxu0 %v6435_v17 }
 0x201   :  { %4462 = vmatprep.subr.bf16.mxu1 %v6439_v21  ;;  %4494 = vmatprep.subr.bf16.mxu0 %v6441_v22 }
 0x204   :  { %4464 = vmatpush1.bf16.msra.mxu1 %v6445_v29  ;;  %4496 = vmatpush1.bf16.msra.mxu0 %v6447_v30 }
 0x205   :  { %4498 = vmatprep.subr.bf16.mxu1 %v6342_v54  ;;  %4530 = vmatprep.subr.bf16.mxu0 %v6344_v55 }
 0x29a   :  { %v6491_v59 = vpop.f32.mrb[20].mxu1  ;;  %v6493_v31 = vpop.f32.mrb[20].mxu0 }
 0x29b   :  { %v6495_v35 = vpop.f32.mrb[21].mxu1  ;;  %v6497_v36 = vpop.f32.mrb[21].mxu0 }
 0x2ba   :  { %v957_v53 = vpop.f32.mrb[4].mxu1  ;;  %v1028_v56 = vpop.f32.mrb[4].mxu0 }
 0x2bb   :  { %v5465_v57 = vadd.f32 %v957_v53, %v6511_v47  ;;  %v5481_v58 = vadd.f32 %v1028_v56, %v6515_v27  ;;  %v959_v62 = vpop.f32.mrb[5].mxu1  ;;  %v1030_v2 = vpop.f32.mrb[5].mxu0 }
 0x2bc   :  { %v5466_v3 = vadd.f32 %v959_v62, %v6519_v48  ;;  %v5482_v6 = vadd.f32 %v1030_v2, %v6523_v51 }
 0x2bd   :  { %v1037_v9 = vadd.f32 %v5465_v57, %v6491_v59  ;;  %v1039_v10 = vadd.f32 %v5481_v58, %v6493_v31 }
 0x2be   :  { %v1038_v13 = vadd.f32 %v5466_v3, %v6495_v35  ;;  %v1040_v14 = vadd.f32 %v5482_v6, %v6497_v36  ;;  %v822_v3 = vld [vmem:[%s7353_s3] sm:$0xff] }
 0x2bf   :  { %v1041_v15 = vsub.f32 0.0, %v1037_v9 }
 0x2c0   :  { %v1047_v18 = vsub.f32 0.0, %v1038_v13  ;;  %v1054_v28 = vsub.f32 0.0, %v1040_v14 }
 0x2c1   :  { %v1042_v25 = vmul.f32 1.442695, %v1041_v15 }
 0x2c2   :  { %v1048_v26 = vmul.f32 1.442695, %v1047_v18  ;;  %v1055_v38 = vmul.f32 1.442695, %v1054_v28 }
 0x2c3   :  { %5608 = vpow2.f32 %v1042_v25 }
 0x2c4   :  { %5610 = vpow2.f32 %v1048_v26 }
 0x2c5   :  { %5612 = vpow2.f32 %v1055_v38 }
 0x2c6   :  { %5614 = vtanh.f32 %v1039_v10 }
 0x2cd   :  { %v5609_v53 = vpop.eup %5608 }
 0x2ce   :  { %v5611_v56 = vpop.eup %5610  ;;  %v1044_v62 = vadd.f32 1.0, %v5609_v53 }
 0x2cf   :  { %v1050_v57 = vadd.f32 1.0, %v5611_v56  ;;  %v5613_v58 = vpop.eup %5612 }
 0x2d0   :  { %5616 = vrcp.f32 %v1044_v62  ;;  %v5615_v2 = vpop.eup %5614  ;;  %v1057_v15 = vadd.f32 1.0, %v5613_v58 }
 0x2d1   :  { %5618 = vrcp.f32 %v1050_v57 }
 0x2d2   :  { %5620 = vrcp.f32 %v1057_v15 }
 0x2da   :  { %v5617_v6 = vpop.eup %5616 }
 0x2db   :  { %v5619_v9 = vpop.eup %5618  ;;  %v1061_v13 = vmul.f32 %v5617_v6, %v5615_v2 }
 0x2dc   :  { %v1060_v14 = vmul.f32 %v5619_v9, %v822_v3  ;;  %v5621_v10 = vpop.eup %5620 }
 0x2de   :  { %v6536_v18 = vadd.f32 %v1061_v13, %v1060_v14 }
 0x2e0   :  { %5622 = vtanh.f32 %v6536_v18 }
 0x2ea   :  { %v5623_v25 = vpop.eup %5622 }
 0x2eb   :  { %v1064_v26 = vmul.f32 %v5623_v25, %v5621_v10 }
 0x2ed   :  { %1065 = vst [vmem:[#allocation11] sm:$0xff] %v1064_v26  ;;  %1135 = vmatmul.mubr.f32.vlgmr.msra.gmra.mrb[6].mxu1 %v1064_v26  ;;  %1206 = vmatmul.mubr.f32.vlgmr.msra.gmra.mrb[6].mxu0 %v1064_v26 }
 0x2ee   :  { %4500 = vmatpush1.bf16.msra.mxu1 %v6355_v60  ;;  %4532 = vmatpush1.bf16.msra.mxu0 %v6357_v61 }
 0x2ef   :  { %4502 = vmatprep.subr.bf16.mxu1 %v6361_v0  ;;  %4534 = vmatprep.subr.bf16.mxu0 %v6363_v52 }
 0x2f0   :  { %1313 = vmatprep.mubr.f32.mxu1 %v6035_v33  ;;  %1384 = vmatprep.mubr.f32.mxu0 %v6035_v33 }
 0x2f2   :  { %4504 = vmatpush1.bf16.msra.mxu1 %v6371_v7  ;;  %4536 = vmatpush1.bf16.msra.mxu0 %v6373_v8 }
 0x2f3   :  { %4506 = vmatprep.subr.bf16.mxu1 %v6377_v11  ;;  %4538 = vmatprep.subr.bf16.mxu0 %v6379_v12 }
 0x2f6   :  { %4508 = vmatpush1.bf16.msra.mxu1 %v6385_v19  ;;  %4540 = vmatpush1.bf16.msra.mxu0 %v6387_v20 }
 0x2f7   :  { %4510 = vmatprep.subr.bf16.mxu1 %v6391_v23  ;;  %4542 = vmatprep.subr.bf16.mxu0 %v6393_v24 }
 0x2fa   :  { %4512 = vmatpush1.bf16.msra.mxu1 %v6397_v32  ;;  %4544 = vmatpush1.bf16.msra.mxu0 %v6399_v34 }
 0x2fb   :  { %4514 = vmatprep.subr.bf16.mxu1 %v6403_v37  ;;  %4546 = vmatprep.subr.bf16.mxu0 %v6405_v39 }
 0x2fe   :  { %4516 = vmatpush1.bf16.msra.mxu1 %v6409_v45  ;;  %4548 = vmatpush1.bf16.msra.mxu0 %v6411_v46 }
 0x2ff   :  { %4518 = vmatprep.subr.bf16.mxu1 %v6415_v49  ;;  %4550 = vmatprep.subr.bf16.mxu0 %v6417_v50 }
 0x302   :  { %4520 = vmatpush1.bf16.msra.mxu1 %v6421_v63  ;;  %4552 = vmatpush1.bf16.msra.mxu0 %v6423_v1 }
 0x303   :  { %4522 = vmatprep.subr.bf16.mxu1 %v6427_v4  ;;  %4554 = vmatprep.subr.bf16.mxu0 %v6429_v5 }
 0x306   :  { %4524 = vmatpush1.bf16.msra.mxu1 %v6433_v16  ;;  %4556 = vmatpush1.bf16.msra.mxu0 %v6435_v17 }
 0x307   :  { %4526 = vmatprep.subr.bf16.mxu1 %v6439_v21  ;;  %4558 = vmatprep.subr.bf16.mxu0 %v6441_v22 }
 0x30a   :  { %4528 = vmatpush1.bf16.msra.mxu1 %v6445_v29  ;;  %4560 = vmatpush1.bf16.msra.mxu0 %v6447_v30 }
 0x30b   :  { %4562 = vmatprep.subr.bf16.mxu1 %v6342_v54  ;;  %4594 = vmatprep.subr.bf16.mxu0 %v6344_v55 }
 0x3c0   :  { %v1136_v28 = vpop.f32.mrb[6].mxu1  ;;  %v1207_v38 = vpop.f32.mrb[6].mxu0 }
 0x3c1   :  { %v5467_v53 = vadd.f32 %v1136_v28, %v6511_v47  ;;  %v5483_v56 = vadd.f32 %v1207_v38, %v6515_v27  ;;  %v1138_v62 = vpop.f32.mrb[7].mxu1  ;;  %v1209_v57 = vpop.f32.mrb[7].mxu0 }
 0x3c2   :  { %v5468_v58 = vadd.f32 %v1138_v62, %v6519_v48  ;;  %v5484_v2 = vadd.f32 %v1209_v57, %v6523_v51 }
 0x3c3   :  { %v1216_v3 = vadd.f32 %v5467_v53, %v6491_v59  ;;  %v1218_v6 = vadd.f32 %v5483_v56, %v6493_v31 }
 0x3c4   :  { %v1217_v9 = vadd.f32 %v5468_v58, %v6495_v35  ;;  %v1219_v13 = vadd.f32 %v5484_v2, %v6497_v36 }
 0x3c5   :  { %v1220_v15 = vsub.f32 0.0, %v1216_v3 }
 0x3c6   :  { %v1226_v14 = vsub.f32 0.0, %v1217_v9  ;;  %v1233_v26 = vsub.f32 0.0, %v1219_v13 }
 0x3c7   :  { %v1221_v10 = vmul.f32 1.442695, %v1220_v15 }
 0x3c8   :  { %v1227_v25 = vmul.f32 1.442695, %v1226_v14  ;;  %v1234_v28 = vmul.f32 1.442695, %v1233_v26 }
 0x3c9   :  { %5624 = vpow2.f32 %v1221_v10 }
 0x3ca   :  { %5626 = vpow2.f32 %v1227_v25 }
 0x3cb   :  { %5628 = vpow2.f32 %v1234_v28 }
 0x3cc   :  { %5630 = vtanh.f32 %v1218_v6 }
 0x3d3   :  { %v5625_v38 = vpop.eup %5624 }
 0x3d4   :  { %v5627_v62 = vpop.eup %5626  ;;  %v1223_v42 = vadd.f32 1.0, %v5625_v38 }
 0x3d5   :  { %v1229_v53 = vadd.f32 1.0, %v5627_v62  ;;  %v5629_v56 = vpop.eup %5628 }
 0x3d6   :  { %5632 = vrcp.f32 %v1223_v42  ;;  %v5631_v57 = vpop.eup %5630  ;;  %v1236_v9 = vadd.f32 1.0, %v5629_v56 }
 0x3d7   :  { %5634 = vrcp.f32 %v1229_v53 }
 0x3d8   :  { %5636 = vrcp.f32 %v1236_v9 }
 0x3e0   :  { %v5633_v58 = vpop.eup %5632 }
 0x3e1   :  { %v5635_v2 = vpop.eup %5634  ;;  %v1240_v3 = vmul.f32 %v5633_v58, %v5631_v57 }
 0x3e2   :  { %v1239_v15 = vmul.f32 %v5635_v2, %v6536_v18  ;;  %v5637_v13 = vpop.eup %5636 }
 0x3e4   :  { %v6582_v14 = vadd.f32 %v1240_v3, %v1239_v15 }
 0x3e6   :  { %5638 = vtanh.f32 %v6582_v14 }
 0x3f0   :  { %v5639_v10 = vpop.eup %5638 }
 0x3f1   :  { %v6585_v25 = vmul.f32 %v5639_v10, %v5637_v13 }
 0x3f3   :  { %1314 = vmatmul.mubr.f32.vlgmr.msra.gmra.mrb[8].mxu1 %v6585_v25  ;;  %1385 = vmatmul.mubr.f32.vlgmr.msra.gmra.mrb[8].mxu0 %v6585_v25 }
 0x3f4   :  { %4564 = vmatpush1.bf16.msra.mxu1 %v6355_v60  ;;  %4596 = vmatpush1.bf16.msra.mxu0 %v6357_v61 }
 0x3f5   :  { %4566 = vmatprep.subr.bf16.mxu1 %v6361_v0  ;;  %4598 = vmatprep.subr.bf16.mxu0 %v6363_v52 }
 0x3f6   :  { %1492 = vmatprep.mubr.f32.mxu1 %v6035_v33  ;;  %1563 = vmatprep.mubr.f32.mxu0 %v6035_v33 }
 0x3f8   :  { %4568 = vmatpush1.bf16.msra.mxu1 %v6371_v7  ;;  %4600 = vmatpush1.bf16.msra.mxu0 %v6373_v8 }
 0x3f9   :  { %4570 = vmatprep.subr.bf16.mxu1 %v6377_v11  ;;  %4602 = vmatprep.subr.bf16.mxu0 %v6379_v12 }
 0x3fc   :  { %4572 = vmatpush1.bf16.msra.mxu1 %v6385_v19  ;;  %4604 = vmatpush1.bf16.msra.mxu0 %v6387_v20 }
 0x3fd   :  { %4574 = vmatprep.subr.bf16.mxu1 %v6391_v23  ;;  %4606 = vmatprep.subr.bf16.mxu0 %v6393_v24 }
 0x400   :  { %4576 = vmatpush1.bf16.msra.mxu1 %v6397_v32  ;;  %4608 = vmatpush1.bf16.msra.mxu0 %v6399_v34 }
 0x401   :  { %4578 = vmatprep.subr.bf16.mxu1 %v6403_v37  ;;  %4610 = vmatprep.subr.bf16.mxu0 %v6405_v39 }
 0x404   :  { %4580 = vmatpush1.bf16.msra.mxu1 %v6409_v45  ;;  %4612 = vmatpush1.bf16.msra.mxu0 %v6411_v46 }
 0x405   :  { %4582 = vmatprep.subr.bf16.mxu1 %v6415_v49  ;;  %4614 = vmatprep.subr.bf16.mxu0 %v6417_v50 }
 0x408   :  { %4584 = vmatpush1.bf16.msra.mxu1 %v6421_v63  ;;  %4616 = vmatpush1.bf16.msra.mxu0 %v6423_v1 }
 0x409   :  { %4586 = vmatprep.subr.bf16.mxu1 %v6427_v4  ;;  %4618 = vmatprep.subr.bf16.mxu0 %v6429_v5 }
 0x40c   :  { %4588 = vmatpush1.bf16.msra.mxu1 %v6433_v16  ;;  %4620 = vmatpush1.bf16.msra.mxu0 %v6435_v17 }
 0x40d   :  { %4590 = vmatprep.subr.bf16.mxu1 %v6439_v21  ;;  %4622 = vmatprep.subr.bf16.mxu0 %v6441_v22 }
 0x410   :  { %4592 = vmatpush1.bf16.msra.mxu1 %v6445_v29  ;;  %4624 = vmatpush1.bf16.msra.mxu0 %v6447_v30 }
 0x411   :  { %4626 = vmatprep.subr.bf16.mxu1 %v6342_v54  ;;  %4658 = vmatprep.subr.bf16.mxu0 %v6344_v55 }
 0x4c6   :  { %v1315_v42 = vpop.f32.mrb[8].mxu1  ;;  %v1386_v18 = vpop.f32.mrb[8].mxu0 }
 0x4c7   :  { %v5469_v6 = vadd.f32 %v1315_v42, %v6511_v47  ;;  %v5485_v26 = vadd.f32 %v1386_v18, %v6515_v27  ;;  %v1317_v28 = vpop.f32.mrb[9].mxu1  ;;  %v1388_v38 = vpop.f32.mrb[9].mxu0 }
 0x4c8   :  { %v5470_v62 = vadd.f32 %v1317_v28, %v6519_v48  ;;  %v5486_v53 = vadd.f32 %v1388_v38, %v6523_v51 }
 0x4c9   :  { %v1395_v56 = vadd.f32 %v5469_v6, %v6491_v59  ;;  %v1397_v57 = vadd.f32 %v5485_v26, %v6493_v31 }
 0x4ca   :  { %v1396_v58 = vadd.f32 %v5470_v62, %v6495_v35  ;;  %v1398_v2 = vadd.f32 %v5486_v53, %v6497_v36 }
 0x4cb   :  { %v1399_v3 = vsub.f32 0.0, %v1395_v56 }
 0x4cc   :  { %v1405_v9 = vsub.f32 0.0, %v1396_v58  ;;  %v1412_v10 = vsub.f32 0.0, %v1398_v2 }
 0x4cd   :  { %v1400_v15 = vmul.f32 1.442695, %v1399_v3 }
 0x4ce   :  { %v1406_v13 = vmul.f32 1.442695, %v1405_v9  ;;  %v1413_v42 = vmul.f32 1.442695, %v1412_v10 }
 0x4cf   :  { %5640 = vpow2.f32 %v1400_v15 }
 0x4d0   :  { %5642 = vpow2.f32 %v1406_v13 }
 0x4d1   :  { %5644 = vpow2.f32 %v1413_v42 }
 0x4d2   :  { %5646 = vtanh.f32 %v1397_v57 }
 0x4d9   :  { %v5641_v18 = vpop.eup %5640 }
 0x4da   :  { %v5643_v28 = vpop.eup %5642  ;;  %v1402_v44 = vadd.f32 1.0, %v5641_v18 }
 0x4db   :  { %v1408_v6 = vadd.f32 1.0, %v5643_v28  ;;  %v5645_v26 = vpop.eup %5644 }
 0x4dc   :  { %5648 = vrcp.f32 %v1402_v44  ;;  %v5647_v38 = vpop.eup %5646  ;;  %v1415_v58 = vadd.f32 1.0, %v5645_v26 }
 0x4dd   :  { %5650 = vrcp.f32 %v1408_v6 }
 0x4de   :  { %5652 = vrcp.f32 %v1415_v58 }
 0x4e6   :  { %v5649_v62 = vpop.eup %5648 }
 0x4e7   :  { %v5651_v53 = vpop.eup %5650  ;;  %v1419_v56 = vmul.f32 %v5649_v62, %v5647_v38 }
 0x4e8   :  { %v1418_v3 = vmul.f32 %v5651_v53, %v6582_v14  ;;  %v5653_v2 = vpop.eup %5652 }
 0x4ea   :  { %v6632_v9 = vadd.f32 %v1419_v56, %v1418_v3 }
 0x4ec   :  { %5654 = vtanh.f32 %v6632_v9 }
 0x4f6   :  { %v5655_v15 = vpop.eup %5654 }
 0x4f7   :  { %v6635_v13 = vmul.f32 %v5655_v15, %v5653_v2 }
 0x4f9   :  { %1493 = vmatmul.mubr.f32.vlgmr.msra.gmra.mrb[10].mxu1 %v6635_v13  ;;  %1564 = vmatmul.mubr.f32.vlgmr.msra.gmra.mrb[10].mxu0 %v6635_v13 }
 0x4fa   :  { %4628 = vmatpush1.bf16.msra.mxu1 %v6355_v60  ;;  %4660 = vmatpush1.bf16.msra.mxu0 %v6357_v61 }
 0x4fb   :  { %4630 = vmatprep.subr.bf16.mxu1 %v6361_v0  ;;  %4662 = vmatprep.subr.bf16.mxu0 %v6363_v52 }
 0x4fc   :  { %1671 = vmatprep.mubr.f32.mxu1 %v6035_v33  ;;  %1742 = vmatprep.mubr.f32.mxu0 %v6035_v33 }
 0x4fe   :  { %4632 = vmatpush1.bf16.msra.mxu1 %v6371_v7  ;;  %4664 = vmatpush1.bf16.msra.mxu0 %v6373_v8 }
 0x4ff   :  { %4634 = vmatprep.subr.bf16.mxu1 %v6377_v11  ;;  %4666 = vmatprep.subr.bf16.mxu0 %v6379_v12 }
 0x502   :  { %4636 = vmatpush1.bf16.msra.mxu1 %v6385_v19  ;;  %4668 = vmatpush1.bf16.msra.mxu0 %v6387_v20 }
 0x503   :  { %4638 = vmatprep.subr.bf16.mxu1 %v6391_v23  ;;  %4670 = vmatprep.subr.bf16.mxu0 %v6393_v24 }
 0x506   :  { %4640 = vmatpush1.bf16.msra.mxu1 %v6397_v32  ;;  %4672 = vmatpush1.bf16.msra.mxu0 %v6399_v34 }
 0x507   :  { %4642 = vmatprep.subr.bf16.mxu1 %v6403_v37  ;;  %4674 = vmatprep.subr.bf16.mxu0 %v6405_v39 }
 0x50a   :  { %4644 = vmatpush1.bf16.msra.mxu1 %v6409_v45  ;;  %4676 = vmatpush1.bf16.msra.mxu0 %v6411_v46 }
 0x50b   :  { %4646 = vmatprep.subr.bf16.mxu1 %v6415_v49  ;;  %4678 = vmatprep.subr.bf16.mxu0 %v6417_v50 }
 0x50e   :  { %4648 = vmatpush1.bf16.msra.mxu1 %v6421_v63  ;;  %4680 = vmatpush1.bf16.msra.mxu0 %v6423_v1 }
 0x50f   :  { %4650 = vmatprep.subr.bf16.mxu1 %v6427_v4  ;;  %4682 = vmatprep.subr.bf16.mxu0 %v6429_v5 }
 0x512   :  { %4652 = vmatpush1.bf16.msra.mxu1 %v6433_v16  ;;  %4684 = vmatpush1.bf16.msra.mxu0 %v6435_v17 }
 0x513   :  { %4654 = vmatprep.subr.bf16.mxu1 %v6439_v21  ;;  %4686 = vmatprep.subr.bf16.mxu0 %v6441_v22 }
 0x516   :  { %4656 = vmatpush1.bf16.msra.mxu1 %v6445_v29  ;;  %4688 = vmatpush1.bf16.msra.mxu0 %v6447_v30 }
 0x517   :  { %4690 = vmatprep.subr.bf16.mxu1 %v6342_v54  ;;  %4722 = vmatprep.subr.bf16.mxu0 %v6344_v55 }
 0x5cc   :  { %v1494_v44 = vpop.f32.mrb[10].mxu1  ;;  %v1565_v14 = vpop.f32.mrb[10].mxu0 }
 0x5cd   :  { %v5471_v57 = vadd.f32 %v1494_v44, %v6511_v47  ;;  %v5487_v10 = vadd.f32 %v1565_v14, %v6515_v27  ;;  %v1496_v42 = vpop.f32.mrb[11].mxu1  ;;  %v1567_v18 = vpop.f32.mrb[11].mxu0 }
 0x5ce   :  { %v5472_v28 = vadd.f32 %v1496_v42, %v6519_v48  ;;  %v5488_v6 = vadd.f32 %v1567_v18, %v6523_v51 }
 0x5cf   :  { %v1574_v26 = vadd.f32 %v5471_v57, %v6491_v59  ;;  %v1576_v38 = vadd.f32 %v5487_v10, %v6493_v31 }
 0x5d0   :  { %v1575_v62 = vadd.f32 %v5472_v28, %v6495_v35  ;;  %v1577_v53 = vadd.f32 %v5488_v6, %v6497_v36 }
 0x5d1   :  { %v1578_v56 = vsub.f32 0.0, %v1574_v26 }
 0x5d2   :  { %v1584_v58 = vsub.f32 0.0, %v1575_v62  ;;  %v1591_v15 = vsub.f32 0.0, %v1577_v53 }
 0x5d3   :  { %v1579_v3 = vmul.f32 1.442695, %v1578_v56 }
 0x5d4   :  { %v1585_v2 = vmul.f32 1.442695, %v1584_v58  ;;  %v1592_v44 = vmul.f32 1.442695, %v1591_v15 }
 0x5d5   :  { %5656 = vpow2.f32 %v1579_v3 }
 0x5d6   :  { %5658 = vpow2.f32 %v1585_v2 }
 0x5d7   :  { %5660 = vpow2.f32 %v1592_v44 }
 0x5d8   :  { %5662 = vtanh.f32 %v1576_v38 }
 0x5df   :  { %v5657_v14 = vpop.eup %5656 }
 0x5e0   :  { %v5659_v42 = vpop.eup %5658  ;;  %v1581_v43 = vadd.f32 1.0, %v5657_v14 }
 0x5e1   :  { %v1587_v57 = vadd.f32 1.0, %v5659_v42  ;;  %v5661_v10 = vpop.eup %5660 }
 0x5e2   :  { %5664 = vrcp.f32 %v1581_v43  ;;  %v5663_v18 = vpop.eup %5662  ;;  %v1594_v62 = vadd.f32 1.0, %v5661_v10 }
 0x5e3   :  { %5666 = vrcp.f32 %v1587_v57 }
 0x5e4   :  { %5668 = vrcp.f32 %v1594_v62 }
 0x5ec   :  { %v5665_v28 = vpop.eup %5664 }
 0x5ed   :  { %v5667_v6 = vpop.eup %5666  ;;  %v1598_v26 = vmul.f32 %v5665_v28, %v5663_v18 }
 0x5ee   :  { %v1597_v56 = vmul.f32 %v5667_v6, %v6632_v9  ;;  %v5669_v53 = vpop.eup %5668 }
 0x5f0   :  { %v6682_v58 = vadd.f32 %v1598_v26, %v1597_v56 }
 0x5f2   :  { %5670 = vtanh.f32 %v6682_v58 }
 0x5fc   :  { %v5671_v3 = vpop.eup %5670 }
 0x5fd   :  { %v6685_v2 = vmul.f32 %v5671_v3, %v5669_v53 }
 0x5ff   :  { %1672 = vmatmul.mubr.f32.vlgmr.msra.gmra.mrb[12].mxu1 %v6685_v2  ;;  %1743 = vmatmul.mubr.f32.vlgmr.msra.gmra.mrb[12].mxu0 %v6685_v2 }
 0x600   :  { %4692 = vmatpush1.bf16.msra.mxu1 %v6355_v60  ;;  %4724 = vmatpush1.bf16.msra.mxu0 %v6357_v61 }
 0x601   :  { %4694 = vmatprep.subr.bf16.mxu1 %v6361_v0  ;;  %4726 = vmatprep.subr.bf16.mxu0 %v6363_v52 }
 0x602   :  { %1850 = vmatprep.mubr.f32.mxu1 %v6035_v33  ;;  %1921 = vmatprep.mubr.f32.mxu0 %v6035_v33 }
 0x604   :  { %4696 = vmatpush1.bf16.msra.mxu1 %v6371_v7  ;;  %4728 = vmatpush1.bf16.msra.mxu0 %v6373_v8 }
 0x605   :  { %4698 = vmatprep.subr.bf16.mxu1 %v6377_v11  ;;  %4730 = vmatprep.subr.bf16.mxu0 %v6379_v12 }
 0x608   :  { %4700 = vmatpush1.bf16.msra.mxu1 %v6385_v19  ;;  %4732 = vmatpush1.bf16.msra.mxu0 %v6387_v20 }
 0x609   :  { %4702 = vmatprep.subr.bf16.mxu1 %v6391_v23  ;;  %4734 = vmatprep.subr.bf16.mxu0 %v6393_v24 }
 0x60c   :  { %4704 = vmatpush1.bf16.msra.mxu1 %v6397_v32  ;;  %4736 = vmatpush1.bf16.msra.mxu0 %v6399_v34 }
 0x60d   :  { %4706 = vmatprep.subr.bf16.mxu1 %v6403_v37  ;;  %4738 = vmatprep.subr.bf16.mxu0 %v6405_v39 }
 0x610   :  { %4708 = vmatpush1.bf16.msra.mxu1 %v6409_v45  ;;  %4740 = vmatpush1.bf16.msra.mxu0 %v6411_v46 }
 0x611   :  { %4710 = vmatprep.subr.bf16.mxu1 %v6415_v49  ;;  %4742 = vmatprep.subr.bf16.mxu0 %v6417_v50 }
 0x614   :  { %4712 = vmatpush1.bf16.msra.mxu1 %v6421_v63  ;;  %4744 = vmatpush1.bf16.msra.mxu0 %v6423_v1 }
 0x615   :  { %4714 = vmatprep.subr.bf16.mxu1 %v6427_v4  ;;  %4746 = vmatprep.subr.bf16.mxu0 %v6429_v5 }
 0x618   :  { %4716 = vmatpush1.bf16.msra.mxu1 %v6433_v16  ;;  %4748 = vmatpush1.bf16.msra.mxu0 %v6435_v17 }
 0x619   :  { %4718 = vmatprep.subr.bf16.mxu1 %v6439_v21  ;;  %4750 = vmatprep.subr.bf16.mxu0 %v6441_v22 }
 0x61c   :  { %4720 = vmatpush1.bf16.msra.mxu1 %v6445_v29  ;;  %4752 = vmatpush1.bf16.msra.mxu0 %v6447_v30 }
 0x61d   :  { %4754 = vmatprep.subr.bf16.mxu1 %v6342_v54  ;;  %4786 = vmatprep.subr.bf16.mxu0 %v6344_v55 }
 0x6d2   :  { %v1673_v43 = vpop.f32.mrb[12].mxu1  ;;  %v1744_v9 = vpop.f32.mrb[12].mxu0 }
 0x6d3   :  { %v5473_v38 = vadd.f32 %v1673_v43, %v6511_v47  ;;  %v5489_v15 = vadd.f32 %v1744_v9, %v6515_v27  ;;  %v1675_v44 = vpop.f32.mrb[13].mxu1  ;;  %v1746_v14 = vpop.f32.mrb[13].mxu0 }
 0x6d4   :  { %v5474_v42 = vadd.f32 %v1675_v44, %v6519_v48  ;;  %v5490_v57 = vadd.f32 %v1746_v14, %v6523_v51 }
 0x6d5   :  { %v1753_v10 = vadd.f32 %v5473_v38, %v6491_v59  ;;  %v1755_v18 = vadd.f32 %v5489_v15, %v6493_v31 }
 0x6d6   :  { %v1754_v28 = vadd.f32 %v5474_v42, %v6495_v35  ;;  %v1756_v6 = vadd.f32 %v5490_v57, %v6497_v36 }
 0x6d7   :  { %v1757_v26 = vsub.f32 0.0, %v1753_v10 }
 0x6d8   :  { %v1763_v62 = vsub.f32 0.0, %v1754_v28  ;;  %v1770_v3 = vsub.f32 0.0, %v1756_v6 }
 0x6d9   :  { %v1758_v56 = vmul.f32 1.442695, %v1757_v26 }
 0x6da   :  { %v1764_v53 = vmul.f32 1.442695, %v1763_v62  ;;  %v1771_v43 = vmul.f32 1.442695, %v1770_v3 }
 0x6db   :  { %5672 = vpow2.f32 %v1758_v56 }
 0x6dc   :  { %5674 = vpow2.f32 %v1764_v53 }
 0x6dd   :  { %5676 = vpow2.f32 %v1771_v43 }
 0x6de   :  { %5678 = vtanh.f32 %v1755_v18 }
 0x6e5   :  { %v5673_v9 = vpop.eup %5672 }
 0x6e6   :  { %v5675_v44 = vpop.eup %5674  ;;  %v1760_v41 = vadd.f32 1.0, %v5673_v9 }
 0x6e7   :  { %v1766_v38 = vadd.f32 1.0, %v5675_v44  ;;  %v5677_v15 = vpop.eup %5676 }
 0x6e8   :  { %5680 = vrcp.f32 %v1760_v41  ;;  %v5679_v14 = vpop.eup %5678  ;;  %v1773_v28 = vadd.f32 1.0, %v5677_v15 }
 0x6e9   :  { %5682 = vrcp.f32 %v1766_v38 }
 0x6ea   :  { %5684 = vrcp.f32 %v1773_v28 }
 0x6f2   :  { %v5681_v42 = vpop.eup %5680 }
 0x6f3   :  { %v5683_v57 = vpop.eup %5682  ;;  %v1777_v10 = vmul.f32 %v5681_v42, %v5679_v14 }
 0x6f4   :  { %v1776_v26 = vmul.f32 %v5683_v57, %v6682_v58  ;;  %v5685_v6 = vpop.eup %5684 }
 0x6f6   :  { %v6732_v62 = vadd.f32 %v1777_v10, %v1776_v26 }
 0x6f8   :  { %5686 = vtanh.f32 %v6732_v62 }
 0x702   :  { %v5687_v56 = vpop.eup %5686 }
 0x703   :  { %v6735_v53 = vmul.f32 %v5687_v56, %v5685_v6 }
 0x705   :  { %1851 = vmatmul.mubr.f32.vlgmr.msra.gmra.mrb[14].mxu1 %v6735_v53  ;;  %1922 = vmatmul.mubr.f32.vlgmr.msra.gmra.mrb[14].mxu0 %v6735_v53 }
 0x706   :  { %4756 = vmatpush1.bf16.msra.mxu1 %v6355_v60  ;;  %4788 = vmatpush1.bf16.msra.mxu0 %v6357_v61 }
 0x707   :  { %4758 = vmatprep.subr.bf16.mxu1 %v6361_v0  ;;  %4790 = vmatprep.subr.bf16.mxu0 %v6363_v52 }
 0x708   :  { %2029 = vmatprep.mubr.f32.mxu1 %v6035_v33  ;;  %2100 = vmatprep.mubr.f32.mxu0 %v6035_v33 }
 0x70a   :  { %4760 = vmatpush1.bf16.msra.mxu1 %v6371_v7  ;;  %4792 = vmatpush1.bf16.msra.mxu0 %v6373_v8 }
 0x70b   :  { %4762 = vmatprep.subr.bf16.mxu1 %v6377_v11  ;;  %4794 = vmatprep.subr.bf16.mxu0 %v6379_v12 }
 0x70e   :  { %4764 = vmatpush1.bf16.msra.mxu1 %v6385_v19  ;;  %4796 = vmatpush1.bf16.msra.mxu0 %v6387_v20 }
 0x70f   :  { %4766 = vmatprep.subr.bf16.mxu1 %v6391_v23  ;;  %4798 = vmatprep.subr.bf16.mxu0 %v6393_v24 }
 0x712   :  { %4768 = vmatpush1.bf16.msra.mxu1 %v6397_v32  ;;  %4800 = vmatpush1.bf16.msra.mxu0 %v6399_v34 }
 0x713   :  { %4770 = vmatprep.subr.bf16.mxu1 %v6403_v37  ;;  %4802 = vmatprep.subr.bf16.mxu0 %v6405_v39 }
 0x716   :  { %4772 = vmatpush1.bf16.msra.mxu1 %v6409_v45  ;;  %4804 = vmatpush1.bf16.msra.mxu0 %v6411_v46 }
 0x717   :  { %4774 = vmatprep.subr.bf16.mxu1 %v6415_v49  ;;  %4806 = vmatprep.subr.bf16.mxu0 %v6417_v50 }
 0x71a   :  { %4776 = vmatpush1.bf16.msra.mxu1 %v6421_v63  ;;  %4808 = vmatpush1.bf16.msra.mxu0 %v6423_v1 }
 0x71b   :  { %4778 = vmatprep.subr.bf16.mxu1 %v6427_v4  ;;  %4810 = vmatprep.subr.bf16.mxu0 %v6429_v5 }
 0x71e   :  { %4780 = vmatpush1.bf16.msra.mxu1 %v6433_v16  ;;  %4812 = vmatpush1.bf16.msra.mxu0 %v6435_v17 }
 0x71f   :  { %4782 = vmatprep.subr.bf16.mxu1 %v6439_v21  ;;  %4814 = vmatprep.subr.bf16.mxu0 %v6441_v22 }
 0x722   :  { %4784 = vmatpush1.bf16.msra.mxu1 %v6445_v29  ;;  %4816 = vmatpush1.bf16.msra.mxu0 %v6447_v30 }
 0x723   :  { %4818 = vmatprep.subr.bf16.mxu1 %v6342_v54  ;;  %4850 = vmatprep.subr.bf16.mxu0 %v6344_v55 }
 0x7d8   :  { %v1852_v41 = vpop.f32.mrb[14].mxu1  ;;  %v1923_v58 = vpop.f32.mrb[14].mxu0 }
 0x7d9   :  { %v5475_v18 = vadd.f32 %v1852_v41, %v6511_v47  ;;  %v5491_v3 = vadd.f32 %v1923_v58, %v6515_v27  ;;  %v1854_v43 = vpop.f32.mrb[15].mxu1  ;;  %v1925_v9 = vpop.f32.mrb[15].mxu0 }
 0x7da   :  { %v5476_v44 = vadd.f32 %v1854_v43, %v6519_v48  ;;  %v5492_v38 = vadd.f32 %v1925_v9, %v6523_v51 }
 0x7db   :  { %v1932_v15 = vadd.f32 %v5475_v18, %v6491_v59  ;;  %v1934_v14 = vadd.f32 %v5491_v3, %v6493_v31 }
 0x7dc   :  { %v1933_v54 = vadd.f32 %v5476_v44, %v6495_v35  ;;  %v1935_v55 = vadd.f32 %v5492_v38, %v6497_v36 }
 0x7dd   :  { %v1936_v42 = vsub.f32 0.0, %v1932_v15 }
 0x7de   :  { %v1942_v57 = vsub.f32 0.0, %v1933_v54  ;;  %v1949_v26 = vsub.f32 0.0, %v1935_v55 }
 0x7df   :  { %v1937_v10 = vmul.f32 1.442695, %v1936_v42 }
 0x7e0   :  { %v1943_v28 = vmul.f32 1.442695, %v1942_v57  ;;  %v1950_v6 = vmul.f32 1.442695, %v1949_v26 }
 0x7e1   :  { %5688 = vpow2.f32 %v1937_v10 }
 0x7e2   :  { %5690 = vpow2.f32 %v1943_v28 }
 0x7e3   :  { %5692 = vpow2.f32 %v1950_v6 }
 0x7e4   :  { %5694 = vtanh.f32 %v1934_v14 }
 0x7eb   :  { %v5689_v56 = vpop.eup %5688 }
 0x7ec   :  { %v5691_v41 = vpop.eup %5690  ;;  %v1939_v58 = vadd.f32 1.0, %v5689_v56 }
 0x7ed   :  { %v1945_v18 = vadd.f32 1.0, %v5691_v41  ;;  %v5693_v3 = vpop.eup %5692  ;;  %v2329_v41 = vld [vmem:[#allocation8] sm:$0xff] }
 0x7ee   :  { %5696 = vrcp.f32 %v1939_v58  ;;  %v5695_v43 = vpop.eup %5694  ;;  %v1952_v15 = vadd.f32 1.0, %v5693_v3  ;;  %v2333_v58 = vld [vmem:[#allocation8 + $0x20] sm:$0xff]  ;;  %v2335_v3 = vld [vmem:[#allocation8 + $0x30] sm:$0xff] }
 0x7ef   :  { %5698 = vrcp.f32 %v1945_v18  ;;  %v2331_v18 = vld [vmem:[#allocation8 + $0x10] sm:$0xff] }
 0x7f0   :  { %5700 = vrcp.f32 %v1952_v15 }
 0x7f8   :  { %v5697_v9 = vpop.eup %5696 }
 0x7f9   :  { %v5699_v44 = vpop.eup %5698  ;;  %v1956_v38 = vmul.f32 %v5697_v9, %v5695_v43  ;;  %v2338_v43 = vld [vmem:[#allocation8 + $0x48] sm:$0xff] }
 0x7fa   :  { %v1955_v54 = vmul.f32 %v5699_v44, %v6732_v62  ;;  %v5701_v55 = vpop.eup %5700  ;;  %v2342_v9 = vld [vmem:[#allocation8 + $0x68] sm:$0xff]  ;;  %v2340_v44 = vld [vmem:[#allocation8 + $0x58] sm:$0xff] }
 0x7fc   :  { %v6782_v42 = vadd.f32 %v1956_v38, %v1955_v54  ;;  %v2344_v38 = vld [vmem:[#allocation8 + $0x78] sm:$0xff] }
 0x7fe   :  { %5702 = vtanh.f32 %v6782_v42 }
 0x808   :  { %v5703_v57 = vpop.eup %5702 }
 0x809   :  { %v6785_v10 = vmul.f32 %v5703_v57, %v5701_v55  ;;  %v4883_v55 = vpack.c.bf16 %v2333_v58, %v2329_v41  ;;  %v4915_v57 = vpack.c.bf16 %v2335_v3, %v2331_v18  ;;  %v2361_v58 = vld [vmem:[#allocation8 + $0x100] sm:$0xff] }
 0x80a   :  { %v2365_v18 = vld [vmem:[#allocation8 + $0x120] sm:$0xff] }
 0x80b   :  { %2030 = vmatmul.mubr.f32.vlgmr.msra.gmra.mrb[16].mxu1 %v6785_v10  ;;  %2101 = vmatmul.mubr.f32.vlgmr.msra.gmra.mrb[16].mxu0 %v6785_v10 }
 0x80c   :  { %4820 = vmatpush1.bf16.msra.mxu1 %v6355_v60  ;;  %4852 = vmatpush1.bf16.msra.mxu0 %v6357_v61  ;;  %v2330_v60 = vld [vmem:[#allocation8 + $0x8] sm:$0xff] }
 0x80d   :  { %4822 = vmatprep.subr.bf16.mxu1 %v6361_v0  ;;  %4854 = vmatprep.subr.bf16.mxu0 %v6363_v52  ;;  %v2334_v61 = vld [vmem:[#allocation8 + $0x28] sm:$0xff]  ;;  %v2332_v0 = vld [vmem:[#allocation8 + $0x18] sm:$0xff] }
 0x80e   :  { %2208 = vmatprep.mubr.f32.mxu1 %v6035_v33  ;;  %2279 = vmatprep.mubr.f32.mxu0 %v6035_v33  ;;  %v4881_v52 = vpack.c.bf16 %v2334_v61, %v2330_v60  ;;  %v2337_v60 = vld [vmem:[#allocation8 + $0x40] sm:$0xff] }
 0x80f   :  { %v2341_v61 = vld [vmem:[#allocation8 + $0x60] sm:$0xff] }
 0x810   :  { %4824 = vmatpush1.bf16.msra.mxu1 %v6371_v7  ;;  %4856 = vmatpush1.bf16.msra.mxu0 %v6373_v8  ;;  %v2336_v7 = vld [vmem:[#allocation8 + $0x38] sm:$0xff] }
 0x811   :  { %4826 = vmatprep.subr.bf16.mxu1 %v6377_v11  ;;  %4858 = vmatprep.subr.bf16.mxu0 %v6379_v12  ;;  %v4913_v8 = vpack.c.bf16 %v2336_v7, %v2332_v0  ;;  %v4885_v0 = vpack.c.bf16 %v2342_v9, %v2338_v43  ;;  %v2339_v7 = vld [vmem:[#allocation8 + $0x50] sm:$0xff] }
 0x812   :  { %v2363_v9 = vld [vmem:[#allocation8 + $0x110] sm:$0xff] }
 0x814   :  { %4828 = vmatpush1.bf16.msra.mxu1 %v6385_v19  ;;  %4860 = vmatpush1.bf16.msra.mxu0 %v6387_v20 }
 0x815   :  { %4830 = vmatprep.subr.bf16.mxu1 %v6391_v23  ;;  %4862 = vmatprep.subr.bf16.mxu0 %v6393_v24 }
 0x818   :  { %4832 = vmatpush1.bf16.msra.mxu1 %v6397_v32  ;;  %4864 = vmatpush1.bf16.msra.mxu0 %v6399_v34 }
 0x819   :  { %4834 = vmatprep.subr.bf16.mxu1 %v6403_v37  ;;  %4866 = vmatprep.subr.bf16.mxu0 %v6405_v39 }
 0x81c   :  { %4836 = vmatpush1.bf16.msra.mxu1 %v6409_v45  ;;  %4868 = vmatpush1.bf16.msra.mxu0 %v6411_v46 }
 0x81d   :  { %4838 = vmatprep.subr.bf16.mxu1 %v6415_v49  ;;  %4870 = vmatprep.subr.bf16.mxu0 %v6417_v50 }
 0x820   :  { %4840 = vmatpush1.bf16.msra.mxu1 %v6421_v63  ;;  %4872 = vmatpush1.bf16.msra.mxu0 %v6423_v1 }
 0x821   :  { %4842 = vmatprep.subr.bf16.mxu1 %v6427_v4  ;;  %4874 = vmatprep.subr.bf16.mxu0 %v6429_v5 }
 0x824   :  { %4844 = vmatpush1.bf16.msra.mxu1 %v6433_v16  ;;  %4876 = vmatpush1.bf16.msra.mxu0 %v6435_v17 }
 0x825   :  { %4846 = vmatprep.subr.bf16.mxu1 %v6439_v21  ;;  %4878 = vmatprep.subr.bf16.mxu0 %v6441_v22 }
 0x828   :  { %4848 = vmatpush1.bf16.msra.mxu1 %v6445_v29  ;;  %4880 = vmatpush1.bf16.msra.mxu0 %v6447_v30 }
 0x829   :  { %4882 = vmatprep.subr.bf16.mxu1 %v4881_v52  ;;  %4914 = vmatprep.subr.bf16.mxu0 %v4913_v8  ;;  %v4917_v52 = vpack.c.bf16 %v2344_v38, %v2340_v44  ;;  %v2343_v8 = vld [vmem:[#allocation8 + $0x70] sm:$0xff]  ;;  %v2370_v38 = vld [vmem:[#allocation8 + $0x148] sm:$0xff] }
 0x82a   :  { %v2367_v44 = vld [vmem:[#allocation8 + $0x130] sm:$0xff] }
 0x8de   :  { %v2031_v11 = vpop.f32.mrb[16].mxu1  ;;  %v2102_v12 = vpop.f32.mrb[16].mxu0 }
 0x8df   :  { %v5477_v19 = vadd.f32 %v2031_v11, %v6511_v47  ;;  %v5493_v20 = vadd.f32 %v2102_v12, %v6515_v27  ;;  %v2033_v23 = vpop.f32.mrb[17].mxu1  ;;  %v2104_v24 = vpop.f32.mrb[17].mxu0  ;;  %v2346_v11 = vld [vmem:[#allocation8 + $0x88] sm:$0xff] }
 0x8e0   :  { %v5478_v32 = vadd.f32 %v2033_v23, %v6519_v48  ;;  %v5494_v34 = vadd.f32 %v2104_v24, %v6523_v51  ;;  %v2350_v12 = vld [vmem:[#allocation8 + $0xa8] sm:$0xff]  ;;  %v4887_v23 = vpack.c.bf16 %v2341_v61, %v2337_v60  ;;  %v4919_v24 = vpack.c.bf16 %v2343_v8, %v2339_v7  ;;  %v2369_v61 = vld [vmem:[#allocation8 + $0x140] sm:$0xff]  ;;  %v2371_v8 = vld [vmem:[#allocation8 + $0x150] sm:$0xff] }
 0x8e1   :  { %v2111_v37 = vadd.f32 %v5477_v19, %v6491_v59  ;;  %v2113_v39 = vadd.f32 %v5493_v20, %v6493_v31  ;;  %v2348_v19 = vld [vmem:[#allocation8 + $0x98] sm:$0xff]  ;;  %v4931_v60 = vpack.c.bf16 %v2367_v44, %v2363_v9  ;;  %v2686_v9 = vld [vmem:[#allocation9 + $0x48] sm:$0xff] }
 0x8e2   :  { %v2112_v45 = vadd.f32 %v5478_v32, %v6495_v35  ;;  %v2114_v46 = vadd.f32 %v5494_v34, %v6497_v36  ;;  %v2352_v20 = vld [vmem:[#allocation8 + $0xb8] sm:$0xff]  ;;  %v2345_v32 = vld [vmem:[#allocation8 + $0x80] sm:$0xff]  ;;  %v2690_v44 = vld [vmem:[#allocation9 + $0x68] sm:$0xff] }
 0x8e3   :  { %v2115_v49 = vsub.f32 0.0, %v2111_v37  ;;  %v2349_v34 = vld [vmem:[#allocation8 + $0xa0] sm:$0xff]  ;;  %v4889_v37 = vpack.c.bf16 %v2350_v12, %v2346_v11  ;;  %v2375_v11 = vld [vmem:[#allocation8 + $0x170] sm:$0xff]  ;;  %v2378_v12 = vld [vmem:[#allocation8 + $0x188] sm:$0xff] }
 0x8e4   :  { %v2121_v50 = vsub.f32 0.0, %v2112_v45  ;;  %v2128_v4 = vsub.f32 0.0, %v2114_v46  ;;  %v2347_v45 = vld [vmem:[#allocation8 + $0x90] sm:$0xff] }
 0x8e5   :  { %v2116_v63 = vmul.f32 1.442695, %v2115_v49  ;;  %v2351_v46 = vld [vmem:[#allocation8 + $0xb0] sm:$0xff]  ;;  %v2354_v49 = vld [vmem:[#allocation8 + $0xc8] sm:$0xff] }
 0x8e6   :  { %v2122_v1 = vmul.f32 1.442695, %v2121_v50  ;;  %v2129_v5 = vmul.f32 1.442695, %v2128_v4  ;;  %v2358_v50 = vld [vmem:[#allocation8 + $0xe8] sm:$0xff]  ;;  %v4891_v4 = vpack.c.bf16 %v2349_v34, %v2345_v32  ;;  %v4935_v32 = vpack.c.bf16 %v2375_v11, %v2371_v8  ;;  %v2377_v34 = vld [vmem:[#allocation8 + $0x180] sm:$0xff] }
 0x8e7   :  { %5704 = vpow2.f32 %v2116_v63  ;;  %v2356_v63 = vld [vmem:[#allocation8 + $0xd8] sm:$0xff]  ;;  %v2694_v8 = vld [vmem:[#allocation9 + $0x88] sm:$0xff] }
 0x8e8   :  { %5706 = vpow2.f32 %v2122_v1  ;;  %v2360_v1 = vld [vmem:[#allocation8 + $0xf8] sm:$0xff]  ;;  %v2698_v11 = vld [vmem:[#allocation9 + $0xa8] sm:$0xff] }
 0x8e9   :  { %5708 = vpow2.f32 %v2129_v5  ;;  %v4923_v5 = vpack.c.bf16 %v2351_v46, %v2347_v45  ;;  %v2379_v46 = vld [vmem:[#allocation8 + $0x190] sm:$0xff] }
 0x8ea   :  { %5710 = vtanh.f32 %v2113_v39  ;;  %v4921_v39 = vpack.c.bf16 %v2352_v20, %v2348_v19  ;;  %v2382_v19 = vld [vmem:[#allocation8 + $0x1a8] sm:$0xff]  ;;  %v2380_v20 = vld [vmem:[#allocation8 + $0x198] sm:$0xff] }
 0x8f1   :  { %v5705_v16 = vpop.eup %5704 }
 0x8f2   :  { %v5707_v17 = vpop.eup %5706  ;;  %v2118_v21 = vadd.f32 1.0, %v5705_v16  ;;  %v2353_v16 = vld [vmem:[#allocation8 + $0xc0] sm:$0xff] }
 0x8f3   :  { %v2124_v22 = vadd.f32 1.0, %v5707_v17  ;;  %v5709_v29 = vpop.eup %5708  ;;  %v2357_v17 = vld [vmem:[#allocation8 + $0xe0] sm:$0xff] }
 0x8f4   :  { %5712 = vrcp.f32 %v2118_v21  ;;  %v5711_v30 = vpop.eup %5710  ;;  %v2131_v26 = vadd.f32 1.0, %v5709_v29  ;;  %v4893_v21 = vpack.c.bf16 %v2358_v50, %v2354_v49  ;;  %v2355_v29 = vld [vmem:[#allocation8 + $0xd0] sm:$0xff]  ;;  %v2386_v50 = vld [vmem:[#allocation8 + $0x1c8] sm:$0xff] }
 0x8f5   :  { %5714 = vrcp.f32 %v2124_v22  ;;  %v4925_v22 = vpack.c.bf16 %v2360_v1, %v2356_v63  ;;  %v2383_v49 = vld [vmem:[#allocation8 + $0x1b0] sm:$0xff]  ;;  %v2390_v63 = vld [vmem:[#allocation8 + $0x1e8] sm:$0xff]  ;;  %v2388_v1 = vld [vmem:[#allocation8 + $0x1d8] sm:$0xff] }
 0x8f6   :  { %5716 = vrcp.f32 %v2131_v26  ;;  %v2368_v26 = vld [vmem:[#allocation8 + $0x138] sm:$0xff] }
 0x8fe   :  { %v5713_v62 = vpop.eup %5712 }
 0x8ff   :  { %v5715_v14 = vpop.eup %5714  ;;  %v2135_v28 = vmul.f32 %v5713_v62, %v5711_v30  ;;  %v2359_v30 = vld [vmem:[#allocation8 + $0xf0] sm:$0xff]  ;;  %v2362_v62 = vld [vmem:[#allocation8 + $0x108] sm:$0xff] }
 0x900   :  { %v2134_v6 = vmul.f32 %v5715_v14, %v6782_v42  ;;  %v5717_v15 = vpop.eup %5716  ;;  %v2366_v14 = vld [vmem:[#allocation8 + $0x128] sm:$0xff]  ;;  %v4927_v41 = vpack.c.bf16 %v2359_v30, %v2355_v29  ;;  %v2389_v29 = vld [vmem:[#allocation8 + $0x1e0] sm:$0xff]  ;;  %v2387_v30 = vld [vmem:[#allocation8 + $0x1d0] sm:$0xff] }
 0x901   :  { %v4897_v3 = vpack.c.bf16 %v2366_v14, %v2362_v62  ;;  %v2391_v62 = vld [vmem:[#allocation8 + $0x1f0] sm:$0xff] }
 0x902   :  { %v6830_v56 = vadd.f32 %v2135_v28, %v2134_v6  ;;  %v2364_v28 = vld [vmem:[#allocation8 + $0x118] sm:$0xff]  ;;  %v4895_v6 = vpack.c.bf16 %v2357_v17, %v2353_v16  ;;  %v4939_v16 = vpack.c.bf16 %v2383_v49, %v2379_v46  ;;  %v2385_v17 = vld [vmem:[#allocation8 + $0x1c0] sm:$0xff]  ;;  %v2702_v46 = vld [vmem:[#allocation9 + $0xc8] sm:$0xff] }
 0x903   :  { %v4929_v43 = vpack.c.bf16 %v2368_v26, %v2364_v28  ;;  %v4911_v14 = vpack.c.bf16 %v2389_v29, %v2385_v17  ;;  %v4943_v28 = vpack.c.bf16 %v2391_v62, %v2387_v30  ;;  %v2321_v26 = vld [vmem:[#allocation11] sm:$0xff]  ;;  %v2706_v49 = vld [vmem:[#allocation9 + $0xe8] sm:$0xff] }
 0x904   :  { %5718 = vtanh.f32 %v6830_v56  ;;  %v2710_v30 = vld [vmem:[#allocation9 + $0x108] sm:$0xff] }
 0x905   :  { %v2714_v62 = vld [vmem:[#allocation9 + $0x128] sm:$0xff] }
 0x90e   :  { %v5719_v54 = vpop.eup %5718 }
 0x90f   :  { %v6833_v42 = vmul.f32 %v5719_v54, %v5717_v15  ;;  %v2374_v15 = vld [vmem:[#allocation8 + $0x168] sm:$0xff]  ;;  %v2372_v54 = vld [vmem:[#allocation8 + $0x158] sm:$0xff] }
 0x911   :  { %2209 = vmatmul.mubr.f32.vlgmr.msra.gmra.mrb[18].mxu1 %v6833_v42  ;;  %2280 = vmatmul.mubr.f32.vlgmr.msra.gmra.mrb[18].mxu0 %v6833_v42 }
 0x912   :  { %4884 = vmatpush1.bf16.msra.mxu1 %v4883_v55  ;;  %4916 = vmatpush1.bf16.msra.mxu0 %v4915_v57  ;;  %v2376_v55 = vld [vmem:[#allocation8 + $0x178] sm:$0xff]  ;;  %v4899_v57 = vpack.c.bf16 %v2365_v18, %v2361_v58 }
 0x913   :  { %4886 = vmatprep.subr.bf16.mxu1 %v4885_v0  ;;  %4918 = vmatprep.subr.bf16.mxu0 %v4917_v52  ;;  %v2373_v0 = vld [vmem:[#allocation8 + $0x160] sm:$0xff]  ;;  %v4901_v52 = vpack.c.bf16 %v2374_v15, %v2370_v38  ;;  %v4933_v7 = vpack.c.bf16 %v2376_v55, %v2372_v54  ;;  %v2688_v38 = vld [vmem:[#allocation9 + $0x58] sm:$0xff]  ;;  %v6877_v15 = vpack.c.bf16 %v2690_v44, %v2686_v9  ;;  %v2722_v9 = vld [vmem:[#allocation9 + $0x168] sm:$0xff] }
 0x914   :  { %2479 = vmatprep.mubr.f32.mxu1 %v6035_v33  ;;  %2592 = vmatprep.mubr.f32.mxu0 %v6035_v33  ;;  %v2685_v54 = vld [vmem:[#allocation9 + $0x40] sm:$0xff]  ;;  %v2720_v44 = vld [vmem:[#allocation9 + $0x158] sm:$0xff] }
 0x915   :  { %v2689_v55 = vld [vmem:[#allocation9 + $0x60] sm:$0xff] }
 0x916   :  { %4888 = vmatpush1.bf16.msra.mxu1 %v4887_v23  ;;  %4920 = vmatpush1.bf16.msra.mxu0 %v4919_v24  ;;  %v2384_v23 = vld [vmem:[#allocation8 + $0x1b8] sm:$0xff]  ;;  %v4903_v24 = vpack.c.bf16 %v2373_v0, %v2369_v61  ;;  %v2687_v0 = vld [vmem:[#allocation9 + $0x50] sm:$0xff] }
 0x917   :  { %4890 = vmatprep.subr.bf16.mxu1 %v4889_v37  ;;  %4922 = vmatprep.subr.bf16.mxu0 %v4921_v39  ;;  %v2381_v37 = vld [vmem:[#allocation8 + $0x1a0] sm:$0xff]  ;;  %v4905_v39 = vpack.c.bf16 %v2382_v19, %v2378_v12  ;;  %v4937_v45 = vpack.c.bf16 %v2384_v23, %v2380_v20  ;;  %v2696_v12 = vld [vmem:[#allocation9 + $0x98] sm:$0xff]  ;;  %v6889_v19 = vpack.c.bf16 %v2698_v11, %v2694_v8  ;;  %v2719_v8 = vld [vmem:[#allocation9 + $0x150] sm:$0xff] }
 0x918   :  { %v2693_v20 = vld [vmem:[#allocation9 + $0x80] sm:$0xff]  ;;  %v2723_v11 = vld [vmem:[#allocation9 + $0x170] sm:$0xff] }
 0x919   :  { %v2697_v23 = vld [vmem:[#allocation9 + $0xa0] sm:$0xff] }
 0x91a   :  { %4892 = vmatpush1.bf16.msra.mxu1 %v4891_v4  ;;  %4924 = vmatpush1.bf16.msra.mxu0 %v4923_v5  ;;  %v2392_v4 = vld [vmem:[#allocation8 + $0x1f8] sm:$0xff]  ;;  %v4907_v5 = vpack.c.bf16 %v2381_v37, %v2377_v34  ;;  %v2695_v37 = vld [vmem:[#allocation9 + $0x90] sm:$0xff] }
 0x91b   :  { %4894 = vmatprep.subr.bf16.mxu1 %v4893_v21  ;;  %4926 = vmatprep.subr.bf16.mxu0 %v4925_v22  ;;  %v4909_v21 = vpack.c.bf16 %v2390_v63, %v2386_v50  ;;  %v4941_v22 = vpack.c.bf16 %v2392_v4, %v2388_v1  ;;  %v2704_v50 = vld [vmem:[#allocation9 + $0xd8] sm:$0xff]  ;;  %v6901_v63 = vpack.c.bf16 %v2706_v49, %v2702_v46  ;;  %v2701_v1 = vld [vmem:[#allocation9 + $0xc0] sm:$0xff] }
 0x91c   :  { %v2705_v4 = vld [vmem:[#allocation9 + $0xe0] sm:$0xff]  ;;  %v2732_v49 = vld [vmem:[#allocation9 + $0x1b8] sm:$0xff] }
 0x91d   :  { %v2729_v46 = vld [vmem:[#allocation9 + $0x1a0] sm:$0xff] }
 0x91e   :  { %4896 = vmatpush1.bf16.msra.mxu1 %v4895_v6  ;;  %4928 = vmatpush1.bf16.msra.mxu0 %v4927_v41  ;;  %v2677_v6 = vld [vmem:[#allocation9] sm:$0xff] }
 0x91f   :  { %4898 = vmatprep.subr.bf16.mxu1 %v4897_v3  ;;  %4930 = vmatprep.subr.bf16.mxu0 %v4929_v43  ;;  %v2681_v41 = vld [vmem:[#allocation9 + $0x20] sm:$0xff]  ;;  %v2679_v3 = vld [vmem:[#allocation9 + $0x10] sm:$0xff] }
 0x920   :  { %v6867_v58 = vpack.c.bf16 %v2681_v41, %v2677_v6  ;;  %v2683_v43 = vld [vmem:[#allocation9 + $0x30] sm:$0xff] }
 0x921   :  { %v2711_v41 = vld [vmem:[#allocation9 + $0x110] sm:$0xff] }
 0x922   :  { %4900 = vmatpush1.bf16.msra.mxu1 %v4899_v57  ;;  %4932 = vmatpush1.bf16.msra.mxu0 %v4931_v60  ;;  %v2692_v57 = vld [vmem:[#allocation9 + $0x78] sm:$0xff]  ;;  %v6879_v60 = vpack.c.bf16 %v2689_v55, %v2685_v54  ;;  %v2717_v54 = vld [vmem:[#allocation9 + $0x140] sm:$0xff] }
 0x923   :  { %4902 = vmatprep.subr.bf16.mxu1 %v4901_v52  ;;  %4934 = vmatprep.subr.bf16.mxu0 %v4933_v7  ;;  %v6881_v61 = vpack.c.bf16 %v2692_v57, %v2688_v38  ;;  %v2691_v52 = vld [vmem:[#allocation9 + $0x70] sm:$0xff]  ;;  %v2721_v55 = vld [vmem:[#allocation9 + $0x160] sm:$0xff]  ;;  %v2724_v57 = vld [vmem:[#allocation9 + $0x178] sm:$0xff] }
 0x924   :  { %v6884_v7 = vpack.c.bf16 %v2691_v52, %v2687_v0  ;;  %v6927_v0 = vpack.c.bf16 %v2721_v55, %v2717_v54  ;;  %v6929_v52 = vpack.c.bf16 %v2724_v57, %v2720_v44 }
 0x926   :  { %4904 = vmatpush1.bf16.msra.mxu1 %v4903_v24  ;;  %4936 = vmatpush1.bf16.msra.mxu0 %v4935_v32  ;;  %v2700_v24 = vld [vmem:[#allocation9 + $0xb8] sm:$0xff]  ;;  %v6891_v32 = vpack.c.bf16 %v2697_v23, %v2693_v20  ;;  %v2726_v20 = vld [vmem:[#allocation9 + $0x188] sm:$0xff] }
 0x927   :  { %4906 = vmatprep.subr.bf16.mxu1 %v4905_v39  ;;  %4938 = vmatprep.subr.bf16.mxu0 %v4937_v45  ;;  %v6893_v34 = vpack.c.bf16 %v2700_v24, %v2696_v12  ;;  %v2699_v39 = vld [vmem:[#allocation9 + $0xb0] sm:$0xff]  ;;  %v6932_v12 = vpack.c.bf16 %v2723_v11, %v2719_v8  ;;  %v2730_v23 = vld [vmem:[#allocation9 + $0x1a8] sm:$0xff]  ;;  %v2728_v24 = vld [vmem:[#allocation9 + $0x198] sm:$0xff] }
 0x928   :  { %v6896_v45 = vpack.c.bf16 %v2699_v39, %v2695_v37  ;;  %v6937_v37 = vpack.c.bf16 %v2730_v23, %v2726_v20  ;;  %v2725_v39 = vld [vmem:[#allocation9 + $0x180] sm:$0xff] }
 0x92a   :  { %4908 = vmatpush1.bf16.msra.mxu1 %v4907_v5  ;;  %4940 = vmatpush1.bf16.msra.mxu0 %v4939_v16  ;;  %v2708_v5 = vld [vmem:[#allocation9 + $0xf8] sm:$0xff]  ;;  %v6903_v16 = vpack.c.bf16 %v2705_v4, %v2701_v1  ;;  %v6941_v1 = vpack.c.bf16 %v2732_v49, %v2728_v24  ;;  %v2727_v4 = vld [vmem:[#allocation9 + $0x190] sm:$0xff] }
 0x92b   :  { %4910 = vmatprep.subr.bf16.mxu1 %v4909_v21  ;;  %4942 = vmatprep.subr.bf16.mxu0 %v4941_v22  ;;  %v6905_v17 = vpack.c.bf16 %v2708_v5, %v2704_v50  ;;  %v2703_v21 = vld [vmem:[#allocation9 + $0xd0] sm:$0xff]  ;;  %v6939_v50 = vpack.c.bf16 %v2729_v46, %v2725_v39 }
 0x92c   :  { %v2707_v22 = vld [vmem:[#allocation9 + $0xf0] sm:$0xff] }
 0x92d   :  { %v6908_v29 = vpack.c.bf16 %v2707_v22, %v2703_v21  ;;  %v2731_v5 = vld [vmem:[#allocation9 + $0x1b0] sm:$0xff]  ;;  %v2734_v22 = vld [vmem:[#allocation9 + $0x1c8] sm:$0xff] }
 0x92e   :  { %4912 = vmatpush1.bf16.msra.mxu1 %v4911_v14  ;;  %4944 = vmatpush1.bf16.msra.mxu0 %v4943_v28  ;;  %v2712_v14 = vld [vmem:[#allocation9 + $0x118] sm:$0xff]  ;;  %v6913_v28 = vpack.c.bf16 %v2714_v62, %v2710_v30  ;;  %v6944_v21 = vpack.c.bf16 %v2731_v5, %v2727_v4  ;;  %v2738_v30 = vld [vmem:[#allocation9 + $0x1e8] sm:$0xff] }
 0x92f   :  { %v2736_v62 = vld [vmem:[#allocation9 + $0x1d8] sm:$0xff] }
 0x931   :  { %2480 = vmatmul.mubr.f32.vlgmr.msra.gmra.mrb[22].mxu1 %v2321_v26  ;;  %2593 = vmatmul.mubr.f32.vlgmr.msra.gmra.mrb[22].mxu0 %v2321_v26  ;;  %v2709_v26 = vld [vmem:[#allocation9 + $0x100] sm:$0xff] }
 0x932   :  { %2485 = vmatprep.mubr.f32.mxu1 %v6035_v33  ;;  %2598 = vmatprep.mubr.f32.mxu0 %v6035_v33 }
 0x935   :  { %2486 = vmatmul.mubr.f32.gmra.mrb[24].mxu1 %v6585_v25  ;;  %2599 = vmatmul.mubr.f32.gmra.mrb[24].mxu0 %v6585_v25  ;;  %v2678_v25 = vld [vmem:[#allocation9 + $0x8] sm:$0xff] }
 0x936   :  { %2491 = vmatprep.mubr.f32.mxu1 %v6035_v33  ;;  %2604 = vmatprep.mubr.f32.mxu0 %v6035_v33 }
 0x939   :  { %2492 = vmatmul.mubr.f32.gmra.mrb[26].mxu1 %v6635_v13  ;;  %2605 = vmatmul.mubr.f32.gmra.mrb[26].mxu0 %v6635_v13  ;;  %v2682_v13 = vld [vmem:[#allocation9 + $0x28] sm:$0xff] }
 0x93a   :  { %2497 = vmatprep.mubr.f32.mxu1 %v6035_v33  ;;  %2610 = vmatprep.mubr.f32.mxu0 %v6035_v33 }
 0x93d   :  { %2498 = vmatmul.mubr.f32.gmra.mrb[28].mxu1 %v6685_v2  ;;  %2611 = vmatmul.mubr.f32.gmra.mrb[28].mxu0 %v6685_v2  ;;  %v2680_v2 = vld [vmem:[#allocation9 + $0x18] sm:$0xff] }
 0x93e   :  { %2503 = vmatprep.mubr.f32.mxu1 %v6035_v33  ;;  %2616 = vmatprep.mubr.f32.mxu0 %v6035_v33 }
 0x941   :  { %2504 = vmatmul.mubr.f32.gmra.mrb[30].mxu1 %v6735_v53  ;;  %2617 = vmatmul.mubr.f32.gmra.mrb[30].mxu0 %v6735_v53  ;;  %v6865_v53 = vpack.c.bf16 %v2682_v13, %v2678_v25  ;;  %v2713_v25 = vld [vmem:[#allocation9 + $0x120] sm:$0xff]  ;;  %v2716_v13 = vld [vmem:[#allocation9 + $0x138] sm:$0xff] }
 0x942   :  { %2509 = vmatprep.mubr.f32.mxu1 %v6035_v33  ;;  %2622 = vmatprep.mubr.f32.mxu0 %v6035_v33  ;;  %v6917_v6 = vpack.c.bf16 %v2716_v13, %v2712_v14  ;;  %v6949_v14 = vpack.c.bf16 %v2738_v30, %v2734_v22  ;;  %v2740_v13 = vld [vmem:[#allocation9 + $0x1f8] sm:$0xff] }
 0x943   :  { %4946 = vmatprep.subr.bf16.mxu1 %v6865_v53 }
 0x944   :  { %4948 = vmatpush1.bf16.msra.mxu1 %v6867_v58 }
 0x945   :  { %2510 = vmatmul.mubr.f32.gmra.mrb[32].mxu1 %v6785_v10  ;;  %2623 = vmatmul.mubr.f32.gmra.mrb[32].mxu0 %v6785_v10  ;;  %v2684_v10 = vld [vmem:[#allocation9 + $0x38] sm:$0xff] }
 0x946   :  { %2515 = vmatprep.mubr.f32.mxu1 %v6035_v33  ;;  %2628 = vmatprep.mubr.f32.mxu0 %v6035_v33  ;;  %v6869_v18 = vpack.c.bf16 %v2684_v10, %v2680_v2  ;;  %v6915_v2 = vpack.c.bf16 %v2713_v25, %v2709_v26  ;;  %v2715_v10 = vld [vmem:[#allocation9 + $0x130] sm:$0xff]  ;;  %v2733_v26 = vld [vmem:[#allocation9 + $0x1c0] sm:$0xff] }
 0x947   :  { %4950 = vmatprep.subr.bf16.mxu1 %v6877_v15  ;;  %v2737_v25 = vld [vmem:[#allocation9 + $0x1e0] sm:$0xff] }
 0x948   :  { %4978 = vmatprep.subr.bf16.mxu0 %v6869_v18  ;;  %4952 = vmatpush1.bf16.msra.mxu1 %v6879_v60 }
 0x949   :  { %2516 = vmatmul.mubr.f32.gmra.mrb[34].mxu1 %v6833_v42  ;;  %2629 = vmatmul.mubr.f32.gmra.mrb[34].mxu0 %v6833_v42  ;;  %v6872_v42 = vpack.c.bf16 %v2683_v43, %v2679_v3  ;;  %v6920_v3 = vpack.c.bf16 %v2715_v10, %v2711_v41  ;;  %v2718_v43 = vld [vmem:[#allocation9 + $0x148] sm:$0xff]  ;;  %v6951_v41 = vpack.c.bf16 %v2737_v25, %v2733_v26 }
 0x94a   :  { %2521 = vmatprep.mubr.f32.mxu1 %v6035_v33  ;;  %2634 = vmatprep.mubr.f32.mxu0 %v6035_v33  ;;  %v6925_v38 = vpack.c.bf16 %v2722_v9, %v2718_v43  ;;  %v6953_v10 = vpack.c.bf16 %v2740_v13, %v2736_v62  ;;  %v2735_v43 = vld [vmem:[#allocation9 + $0x1d0] sm:$0xff] }
 0x94b   :  { %4980 = vmatpush1.bf16.msra.mxu0 %v6872_v42  ;;  %4954 = vmatprep.subr.bf16.mxu1 %v6889_v19  ;;  %v2739_v9 = vld [vmem:[#allocation9 + $0x1f0] sm:$0xff] }
 0x94c   :  { %4982 = vmatprep.subr.bf16.mxu0 %v6881_v61  ;;  %4956 = vmatpush1.bf16.msra.mxu1 %v6891_v32  ;;  %v6956_v44 = vpack.c.bf16 %v2739_v9, %v2735_v43 }
 0x94d   :  { %4958 = vmatprep.subr.bf16.mxu1 %v6901_v63 }
 0x94f   :  { %4984 = vmatpush1.bf16.msra.mxu0 %v6884_v7 }
 0x950   :  { %4986 = vmatprep.subr.bf16.mxu0 %v6893_v34  ;;  %4960 = vmatpush1.bf16.msra.mxu1 %v6903_v16 }
 0x951   :  { %4962 = vmatprep.subr.bf16.mxu1 %v6913_v28 }
 0x953   :  { %4988 = vmatpush1.bf16.msra.mxu0 %v6896_v45 }
 0x954   :  { %4990 = vmatprep.subr.bf16.mxu0 %v6905_v17  ;;  %4964 = vmatpush1.bf16.msra.mxu1 %v6915_v2 }
 0x955   :  { %4966 = vmatprep.subr.bf16.mxu1 %v6925_v38 }
 0x957   :  { %4992 = vmatpush1.bf16.msra.mxu0 %v6908_v29 }
 0x958   :  { %4994 = vmatprep.subr.bf16.mxu0 %v6917_v6  ;;  %4968 = vmatpush1.bf16.msra.mxu1 %v6927_v0 }
 0x959   :  { %4970 = vmatprep.subr.bf16.mxu1 %v6937_v37 }
 0x95b   :  { %4996 = vmatpush1.bf16.msra.mxu0 %v6920_v3 }
 0x95c   :  { %4998 = vmatprep.subr.bf16.mxu0 %v6929_v52  ;;  %4972 = vmatpush1.bf16.msra.mxu1 %v6939_v50 }
 0x95d   :  { %4974 = vmatprep.subr.bf16.mxu1 %v6949_v14 }
 0x95f   :  { %5000 = vmatpush1.bf16.msra.mxu0 %v6932_v12 }
 0x960   :  { %5002 = vmatprep.subr.bf16.mxu0 %v6941_v1  ;;  %4976 = vmatpush1.bf16.msra.mxu1 %v6951_v41 }
 0x961   :  { %5010 = vmatprep.subr.bf16.mxu1 %v6865_v53 }
 0x963   :  { %5004 = vmatpush1.bf16.msra.mxu0 %v6944_v21 }
 0x964   :  { %5006 = vmatprep.subr.bf16.mxu0 %v6953_v10 }
 0x967   :  { %5008 = vmatpush1.bf16.msra.mxu0 %v6956_v44 }
 0x968   :  { %5042 = vmatprep.subr.bf16.mxu0 %v6869_v18 }
 0x9e4   :  { %v2210_v54 = vpop.f32.mrb[18].mxu1  ;;  %v2281_v55 = vpop.f32.mrb[18].mxu0 }
 0x9e5   :  { %v5479_v57 = vadd.f32 %v2210_v54, %v6511_v47  ;;  %v5495_v8 = vadd.f32 %v2281_v55, %v6515_v27  ;;  %v2212_v11 = vpop.f32.mrb[19].mxu1  ;;  %v2283_v20 = vpop.f32.mrb[19].mxu0 }
 0x9e6   :  { %v5480_v23 = vadd.f32 %v2212_v11, %v6519_v48  ;;  %v5496_v24 = vadd.f32 %v2283_v20, %v6523_v51  ;;  %v4227_v11 = vld [vmem:[%s7352_s2 + $0x8] sm:$0xff]  ;;  %v7368_v20 = vsub.s32 0, %v6500_v40 }
 0x9e7   :  { %v2290_v39 = vadd.f32 %v5479_v57, %v6491_v59  ;;  %v2292_v46 = vadd.f32 %v5495_v8, %v6493_v31 }
 0x9e8   :  { %v2291_v49 = vadd.f32 %v5480_v23, %v6495_v35  ;;  %v2293_v4 = vadd.f32 %v5496_v24, %v6497_v36  ;;  %v7369_v24 = vsub.s32 1, %v6500_v40 }
 0x9e9   :  { %v2294_v5 = vsub.f32 0.0, %v2290_v39 }
 0x9ea   :  { %v2300_v22 = vsub.f32 0.0, %v2291_v49  ;;  %v2307_v27 = vsub.f32 0.0, %v2293_v4 }
 0x9eb   :  { %v2295_v30 = vmul.f32 1.442695, %v2294_v5 }
 0x9ec   :  { %v2301_v47 = vmul.f32 1.442695, %v2300_v22  ;;  %v2308_v62 = vmul.f32 1.442695, %v2307_v27 }
 0x9ed   :  { %5720 = vpow2.f32 %v2295_v30 }
 0x9ee   :  { %5722 = vpow2.f32 %v2301_v47  ;;  %v7370_v47 = vsub.s32 3, %v6500_v40 }
 0x9ef   :  { %5724 = vpow2.f32 %v2308_v62 }
 0x9f0   :  { %5726 = vtanh.f32 %v2292_v46 }
 0x9f7   :  { %v5721_v26 = vpop.eup %5720 }
 0x9f8   :  { %v5723_v48 = vpop.eup %5722  ;;  %v2297_v25 = vadd.f32 1.0, %v5721_v26 }
 0x9f9   :  { %v2303_v59 = vadd.f32 1.0, %v5723_v48  ;;  %v5725_v31 = vpop.eup %5724 }
 0x9fa   :  { %5728 = vrcp.f32 %v2297_v25  ;;  %v5727_v35 = vpop.eup %5726  ;;  %v2310_v43 = vadd.f32 1.0, %v5725_v31 }
 0x9fb   :  { %5730 = vrcp.f32 %v2303_v59 }
 0x9fc   :  { %5732 = vrcp.f32 %v2310_v43 }
 0xa04   :  { %v5729_v51 = vpop.eup %5728 }
 0xa05   :  { %v5731_v36 = vpop.eup %5730  ;;  %v2314_v13 = vmul.f32 %v5729_v51, %v5727_v35  ;;  %v7371_v35 = vsub.s32 2, %v6500_v40 }
 0xa06   :  { %v2313_v9 = vmul.f32 %v5731_v36, %v6830_v56  ;;  %v5733_v55 = vpop.eup %5732  ;;  %v2393_v56 = vld [vmem:[%s7360_s10] sm:$0xf] }
 0xa07   :  { %v7016_v23 = vrot.slane %v2393_v56, %v7368_v20  ;;  %v7020_v39 = vrot.slane %v2393_v56, %v7369_v24  ;;  %v7026_v27 = vrot.slane %v2393_v56, %v7370_v47  ;;  %v7031_v51 = vrot.slane %v2393_v56, %v7371_v35 }
 0xa08   :  { %v2315_v54 = vadd.f32 %v2314_v13, %v2313_v9 }
 0xa0a   :  { %5734 = vtanh.f32 %v2315_v54  ;;  %2320 = vst [vmem:[#allocation14] sm:$0xff] %v2315_v54 }
 0xa14   :  { %v5735_v57 = vpop.eup %5734 }
 0xa15   :  { %v2317_v8 = vmul.f32 %v5735_v57, %v5733_v55 }
 0xa17   :  { %2319 = vst [vmem:[#allocation12] sm:$0xff] %v2317_v8  ;;  %2522 = vmatmul.mubr.f32.gmra.mrb[36].mxu1 %v2317_v8  ;;  %2635 = vmatmul.mubr.f32.gmra.mrb[36].mxu0 %v2317_v8 }
 0xa18   :  { %2809 = vmatprep.mubr.f32.mxu1 %v6035_v33  ;;  %2880 = vmatprep.mubr.f32.mxu0 %v6035_v33 }
 0xa1b   :  { %2810 = vmatmul.mubr.f32.vlgmr.msra.gmra.mrb[22].mxu1 %v4227_v11  ;;  %2881 = vmatmul.mubr.f32.vlgmr.msra.gmra.mrb[22].mxu0 %v4227_v11  ;;  %v4228_v11 = vld [vmem:[%s7353_s3 + $0x8] sm:$0xff]  ;;  %s6036_s3 = smov [#allocation12]  }
 0xa1c   :  { %5012 = vmatpush1.bf16.msra.mxu1 %v6867_v58  ;;  %5044 = vmatpush1.bf16.msra.mxu0 %v6872_v42  ;;  %s4162_s20 = sshll.u32 %s6036_s3, 4  ;;  %s4163_s20 = int_to_ptr.vmem [resolvable:$true] %s4162_s20 }
 0xa1d   :  { %5014 = vmatprep.subr.bf16.mxu1 %v6877_v15  ;;  %5046 = vmatprep.subr.bf16.mxu0 %v6881_v61  ;;  %s5952_s15 = scalar_lea.vmem %s4163_s20, 256  ;;  %p5957_p5 = scmp.lt.s32.totalorder %s4163_s20, %s4163_s20 }
 0xa1e   :  { %2984 = vmatprep.mubr.f32.mxu1 %v6035_v33  ;;  %3055 = vmatprep.mubr.f32.mxu0 %v6035_v33  ;;  %p5953_p4 = scmp.ne.s32.totalorder %s4163_s20, %s5952_s15  ;;  %p5958_p6 = scmp.lt.s32.totalorder %s5952_s15, %s5952_s15 }
 0xa20   :  { %5016 = vmatpush1.bf16.msra.mxu1 %v6879_v60  ;;  %5048 = vmatpush1.bf16.msra.mxu0 %v6884_v7  ;;  %p5959_p7 = por %p5958_p6, %p5957_p5 }
 0xa21   :  { %5018 = vmatprep.subr.bf16.mxu1 %v6889_v19  ;;  %5050 = vmatprep.subr.bf16.mxu0 %v6893_v34 }
 0xa22   :  { %p5960_p8 = pnand %p5959_p7, %p5953_p4 }
 0xa24   :  { %5020 = vmatpush1.bf16.msra.mxu1 %v6891_v32  ;;  %5052 = vmatpush1.bf16.msra.mxu0 %v6896_v45 }
 0xa25   :  { %5022 = vmatprep.subr.bf16.mxu1 %v6901_v63  ;;  %5054 = vmatprep.subr.bf16.mxu0 %v6905_v17 }
 0xa28   :  { %5024 = vmatpush1.bf16.msra.mxu1 %v6903_v16  ;;  %5056 = vmatpush1.bf16.msra.mxu0 %v6908_v29 }
 0xa29   :  { %5026 = vmatprep.subr.bf16.mxu1 %v6913_v28  ;;  %5058 = vmatprep.subr.bf16.mxu0 %v6917_v6 }
 0xa2c   :  { %5028 = vmatpush1.bf16.msra.mxu1 %v6915_v2  ;;  %5060 = vmatpush1.bf16.msra.mxu0 %v6920_v3 }
 0xa2d   :  { %5030 = vmatprep.subr.bf16.mxu1 %v6925_v38  ;;  %5062 = vmatprep.subr.bf16.mxu0 %v6929_v52 }
 0xa30   :  { %5032 = vmatpush1.bf16.msra.mxu1 %v6927_v0  ;;  %5064 = vmatpush1.bf16.msra.mxu0 %v6932_v12 }
 0xa31   :  { %5034 = vmatprep.subr.bf16.mxu1 %v6937_v37  ;;  %5066 = vmatprep.subr.bf16.mxu0 %v6941_v1 }
 0xa34   :  { %5036 = vmatpush1.bf16.msra.mxu1 %v6939_v50  ;;  %5068 = vmatpush1.bf16.msra.mxu0 %v6944_v21 }
 0xa35   :  { %5038 = vmatprep.subr.bf16.mxu1 %v6949_v14  ;;  %5070 = vmatprep.subr.bf16.mxu0 %v6953_v10 }
 0xa38   :  { %5040 = vmatpush1.bf16.msra.mxu1 %v6951_v41  ;;  %5072 = vmatpush1.bf16.msra.mxu0 %v6956_v44 }
 0xa39   :  { %5074 = vmatprep.subr.bf16.mxu1 %v6865_v53  ;;  %5106 = vmatprep.subr.bf16.mxu0 %v6869_v18 }
 0xaee   :  { %v2811_v46 = vpop.f32.mrb[22].mxu1  ;;  %v2882_v49 = vpop.f32.mrb[22].mxu0 }
 0xaef   :  { %v5497_v4 = vadd.f32 %v2811_v46, %v7016_v23  ;;  %v2813_v5 = vpop.f32.mrb[23].mxu1  ;;  %v2884_v22 = vpop.f32.mrb[23].mxu0  ;;  %v5513_v13 = vadd.f32 %v2882_v49, %v7031_v51 }
 0xaf0   :  { %v5498_v30 = vadd.f32 %v2813_v5, %v7020_v39  ;;  %v5514_v59 = vadd.f32 %v2884_v22, %v7026_v27 }
 0xaf1   :  { %v2891_v62 = vsub.f32 0.0, %v5497_v4 }
 0xaf2   :  { %v2897_v26 = vsub.f32 0.0, %v5498_v30  ;;  %v2904_v31 = vsub.f32 0.0, %v5514_v59 }
 0xaf3   :  { %v2892_v48 = vmul.f32 1.442695, %v2891_v62 }
 0xaf4   :  { %v2898_v25 = vmul.f32 1.442695, %v2897_v26  ;;  %v2905_v36 = vmul.f32 1.442695, %v2904_v31 }
 0xaf5   :  { %5736 = vpow2.f32 %v2892_v48 }
 0xaf6   :  { %5738 = vpow2.f32 %v2898_v25 }
 0xaf7   :  { %5740 = vpow2.f32 %v2905_v36 }
 0xaf8   :  { %5742 = vtanh.f32 %v5513_v13 }
 0xaff   :  { %v5737_v43 = vpop.eup %5736 }
 0xb00   :  { %v5739_v9 = vpop.eup %5738  ;;  %v2894_v54 = vadd.f32 1.0, %v5737_v43 }
 0xb01   :  { %v2900_v55 = vadd.f32 1.0, %v5739_v9  ;;  %v5741_v57 = vpop.eup %5740 }
 0xb02   :  { %5744 = vrcp.f32 %v2894_v54  ;;  %v5743_v8 = vpop.eup %5742  ;;  %v2907_v24 = vadd.f32 1.0, %v5741_v57 }
 0xb03   :  { %5746 = vrcp.f32 %v2900_v55 }
 0xb04   :  { %5748 = vrcp.f32 %v2907_v24 }
 0xb0c   :  { %v5745_v40 = vpop.eup %5744 }
 0xb0d   :  { %v5747_v56 = vpop.eup %5746  ;;  %v2911_v20 = vmul.f32 %v5745_v40, %v5743_v8 }
 0xb0e   :  { %v2910_v46 = vmul.f32 %v5747_v56, %v4228_v11  ;;  %v5749_v4 = vpop.eup %5748 }
 0xb10   :  { %v7037_v49 = vadd.f32 %v2911_v20, %v2910_v46 }
 0xb12   :  { %5750 = vtanh.f32 %v7037_v49 }
 0xb1c   :  { %v5751_v5 = vpop.eup %5750 }
 0xb1d   :  { %v2914_v22 = vmul.f32 %v5751_v5, %v5749_v4 }
 0xb1f   :  { %2915 = vst [vmem:[#allocation11] sm:$0xff] %v2914_v22  ;;  %2985 = vmatmul.mubr.f32.vlgmr.msra.gmra.mrb[24].mxu1 %v2914_v22  ;;  %3056 = vmatmul.mubr.f32.vlgmr.msra.gmra.mrb[24].mxu0 %v2914_v22 }
 0xb20   :  { %5076 = vmatpush1.bf16.msra.mxu1 %v6867_v58  ;;  %5108 = vmatpush1.bf16.msra.mxu0 %v6872_v42 }
 0xb21   :  { %5078 = vmatprep.subr.bf16.mxu1 %v6877_v15  ;;  %5110 = vmatprep.subr.bf16.mxu0 %v6881_v61 }
 0xb22   :  { %3159 = vmatprep.mubr.f32.mxu1 %v6035_v33  ;;  %3230 = vmatprep.mubr.f32.mxu0 %v6035_v33 }
 0xb24   :  { %5080 = vmatpush1.bf16.msra.mxu1 %v6879_v60  ;;  %5112 = vmatpush1.bf16.msra.mxu0 %v6884_v7 }
 0xb25   :  { %5082 = vmatprep.subr.bf16.mxu1 %v6889_v19  ;;  %5114 = vmatprep.subr.bf16.mxu0 %v6893_v34 }
 0xb28   :  { %5084 = vmatpush1.bf16.msra.mxu1 %v6891_v32  ;;  %5116 = vmatpush1.bf16.msra.mxu0 %v6896_v45 }
 0xb29   :  { %5086 = vmatprep.subr.bf16.mxu1 %v6901_v63  ;;  %5118 = vmatprep.subr.bf16.mxu0 %v6905_v17 }
 0xb2c   :  { %5088 = vmatpush1.bf16.msra.mxu1 %v6903_v16  ;;  %5120 = vmatpush1.bf16.msra.mxu0 %v6908_v29 }
 0xb2d   :  { %5090 = vmatprep.subr.bf16.mxu1 %v6913_v28  ;;  %5122 = vmatprep.subr.bf16.mxu0 %v6917_v6 }
 0xb30   :  { %5092 = vmatpush1.bf16.msra.mxu1 %v6915_v2  ;;  %5124 = vmatpush1.bf16.msra.mxu0 %v6920_v3 }
 0xb31   :  { %5094 = vmatprep.subr.bf16.mxu1 %v6925_v38  ;;  %5126 = vmatprep.subr.bf16.mxu0 %v6929_v52 }
 0xb34   :  { %5096 = vmatpush1.bf16.msra.mxu1 %v6927_v0  ;;  %5128 = vmatpush1.bf16.msra.mxu0 %v6932_v12 }
 0xb35   :  { %5098 = vmatprep.subr.bf16.mxu1 %v6937_v37  ;;  %5130 = vmatprep.subr.bf16.mxu0 %v6941_v1 }
 0xb38   :  { %5100 = vmatpush1.bf16.msra.mxu1 %v6939_v50  ;;  %5132 = vmatpush1.bf16.msra.mxu0 %v6944_v21 }
 0xb39   :  { %5102 = vmatprep.subr.bf16.mxu1 %v6949_v14  ;;  %5134 = vmatprep.subr.bf16.mxu0 %v6953_v10 }
 0xb3c   :  { %5104 = vmatpush1.bf16.msra.mxu1 %v6951_v41  ;;  %5136 = vmatpush1.bf16.msra.mxu0 %v6956_v44 }
 0xb3d   :  { %5138 = vmatprep.subr.bf16.mxu1 %v6865_v53  ;;  %5170 = vmatprep.subr.bf16.mxu0 %v6869_v18 }
 0xbf2   :  { %v2986_v30 = vpop.f32.mrb[24].mxu1  ;;  %v3057_v47 = vpop.f32.mrb[24].mxu0 }
 0xbf3   :  { %v5499_v62 = vadd.f32 %v2986_v30, %v7016_v23  ;;  %v2988_v26 = vpop.f32.mrb[25].mxu1  ;;  %v3059_v48 = vpop.f32.mrb[25].mxu0  ;;  %v5515_v54 = vadd.f32 %v3057_v47, %v7031_v51 }
 0xbf4   :  { %v5500_v25 = vadd.f32 %v2988_v26, %v7020_v39  ;;  %v5516_v13 = vadd.f32 %v3059_v48, %v7026_v27 }
 0xbf5   :  { %v3066_v59 = vsub.f32 0.0, %v5499_v62 }
 0xbf6   :  { %v3072_v31 = vsub.f32 0.0, %v5500_v25  ;;  %v3079_v43 = vsub.f32 0.0, %v5516_v13 }
 0xbf7   :  { %v3067_v35 = vmul.f32 1.442695, %v3066_v59 }
 0xbf8   :  { %v3073_v36 = vmul.f32 1.442695, %v3072_v31  ;;  %v3080_v9 = vmul.f32 1.442695, %v3079_v43 }
 0xbf9   :  { %5752 = vpow2.f32 %v3067_v35 }
 0xbfa   :  { %5754 = vpow2.f32 %v3073_v36 }
 0xbfb   :  { %5756 = vpow2.f32 %v3080_v9 }
 0xbfc   :  { %5758 = vtanh.f32 %v5515_v54 }
 0xc03   :  { %v5753_v55 = vpop.eup %5752 }
 0xc04   :  { %v5755_v57 = vpop.eup %5754  ;;  %v3069_v8 = vadd.f32 1.0, %v5753_v55 }
 0xc05   :  { %v3075_v11 = vadd.f32 1.0, %v5755_v57  ;;  %v5757_v40 = vpop.eup %5756 }
 0xc06   :  { %5760 = vrcp.f32 %v3069_v8  ;;  %v5759_v56 = vpop.eup %5758  ;;  %v3082_v4 = vadd.f32 1.0, %v5757_v40 }
 0xc07   :  { %5762 = vrcp.f32 %v3075_v11 }
 0xc08   :  { %5764 = vrcp.f32 %v3082_v4 }
 0xc10   :  { %v5761_v20 = vpop.eup %5760 }
 0xc11   :  { %v5763_v24 = vpop.eup %5762  ;;  %v3086_v46 = vmul.f32 %v5761_v20, %v5759_v56 }
 0xc12   :  { %v3085_v5 = vmul.f32 %v5763_v24, %v7037_v49  ;;  %v5765_v30 = vpop.eup %5764 }
 0xc14   :  { %v7079_v22 = vadd.f32 %v3086_v46, %v3085_v5 }
 0xc16   :  { %5766 = vtanh.f32 %v7079_v22 }
 0xc20   :  { %v5767_v47 = vpop.eup %5766 }
 0xc21   :  { %v3089_v62 = vmul.f32 %v5767_v47, %v5765_v30 }
 0xc23   :  { %3090 = vst [vmem:[#allocation11 + $0x8] sm:$0xff] %v3089_v62  ;;  %3160 = vmatmul.mubr.f32.vlgmr.msra.gmra.mrb[26].mxu1 %v3089_v62  ;;  %3231 = vmatmul.mubr.f32.vlgmr.msra.gmra.mrb[26].mxu0 %v3089_v62 }
 0xc24   :  { %5140 = vmatpush1.bf16.msra.mxu1 %v6867_v58  ;;  %5172 = vmatpush1.bf16.msra.mxu0 %v6872_v42 }
 0xc25   :  { %5142 = vmatprep.subr.bf16.mxu1 %v6877_v15  ;;  %5174 = vmatprep.subr.bf16.mxu0 %v6881_v61 }
 0xc26   :  { %3334 = vmatprep.mubr.f32.mxu1 %v6035_v33  ;;  %3405 = vmatprep.mubr.f32.mxu0 %v6035_v33 }
 0xc28   :  { %5144 = vmatpush1.bf16.msra.mxu1 %v6879_v60  ;;  %5176 = vmatpush1.bf16.msra.mxu0 %v6884_v7 }
 0xc29   :  { %5146 = vmatprep.subr.bf16.mxu1 %v6889_v19  ;;  %5178 = vmatprep.subr.bf16.mxu0 %v6893_v34 }
 0xc2c   :  { %5148 = vmatpush1.bf16.msra.mxu1 %v6891_v32  ;;  %5180 = vmatpush1.bf16.msra.mxu0 %v6896_v45 }
 0xc2d   :  { %5150 = vmatprep.subr.bf16.mxu1 %v6901_v63  ;;  %5182 = vmatprep.subr.bf16.mxu0 %v6905_v17 }
 0xc30   :  { %5152 = vmatpush1.bf16.msra.mxu1 %v6903_v16  ;;  %5184 = vmatpush1.bf16.msra.mxu0 %v6908_v29 }
 0xc31   :  { %5154 = vmatprep.subr.bf16.mxu1 %v6913_v28  ;;  %5186 = vmatprep.subr.bf16.mxu0 %v6917_v6 }
 0xc34   :  { %5156 = vmatpush1.bf16.msra.mxu1 %v6915_v2  ;;  %5188 = vmatpush1.bf16.msra.mxu0 %v6920_v3 }
 0xc35   :  { %5158 = vmatprep.subr.bf16.mxu1 %v6925_v38  ;;  %5190 = vmatprep.subr.bf16.mxu0 %v6929_v52 }
 0xc38   :  { %5160 = vmatpush1.bf16.msra.mxu1 %v6927_v0  ;;  %5192 = vmatpush1.bf16.msra.mxu0 %v6932_v12 }
 0xc39   :  { %5162 = vmatprep.subr.bf16.mxu1 %v6937_v37  ;;  %5194 = vmatprep.subr.bf16.mxu0 %v6941_v1 }
 0xc3c   :  { %5164 = vmatpush1.bf16.msra.mxu1 %v6939_v50  ;;  %5196 = vmatpush1.bf16.msra.mxu0 %v6944_v21 }
 0xc3d   :  { %5166 = vmatprep.subr.bf16.mxu1 %v6949_v14  ;;  %5198 = vmatprep.subr.bf16.mxu0 %v6953_v10 }
 0xc40   :  { %5168 = vmatpush1.bf16.msra.mxu1 %v6951_v41  ;;  %5200 = vmatpush1.bf16.msra.mxu0 %v6956_v44 }
 0xc41   :  { %5202 = vmatprep.subr.bf16.mxu1 %v6865_v53  ;;  %5234 = vmatprep.subr.bf16.mxu0 %v6869_v18 }
 0xcf6   :  { %v3161_v49 = vpop.f32.mrb[26].mxu1  ;;  %v3232_v26 = vpop.f32.mrb[26].mxu0 }
 0xcf7   :  { %v5501_v48 = vadd.f32 %v3161_v49, %v7016_v23  ;;  %v3163_v25 = vpop.f32.mrb[27].mxu1  ;;  %v3234_v59 = vpop.f32.mrb[27].mxu0  ;;  %v5517_v57 = vadd.f32 %v3232_v26, %v7031_v51 }
 0xcf8   :  { %v5502_v31 = vadd.f32 %v3163_v25, %v7020_v39  ;;  %v5518_v9 = vadd.f32 %v3234_v59, %v7026_v27 }
 0xcf9   :  { %v3241_v35 = vsub.f32 0.0, %v5501_v48 }
 0xcfa   :  { %v3247_v36 = vsub.f32 0.0, %v5502_v31  ;;  %v3254_v54 = vsub.f32 0.0, %v5518_v9 }
 0xcfb   :  { %v3242_v13 = vmul.f32 1.442695, %v3241_v35 }
 0xcfc   :  { %v3248_v43 = vmul.f32 1.442695, %v3247_v36  ;;  %v3255_v55 = vmul.f32 1.442695, %v3254_v54 }
 0xcfd   :  { %5768 = vpow2.f32 %v3242_v13 }
 0xcfe   :  { %5770 = vpow2.f32 %v3248_v43 }
 0xcff   :  { %5772 = vpow2.f32 %v3255_v55 }
 0xd00   :  { %5774 = vtanh.f32 %v5517_v57 }
 0xd07   :  { %v5769_v8 = vpop.eup %5768 }
 0xd08   :  { %v5771_v11 = vpop.eup %5770  ;;  %v3244_v40 = vadd.f32 1.0, %v5769_v8 }
 0xd09   :  { %v3250_v56 = vadd.f32 1.0, %v5771_v11  ;;  %v5773_v20 = vpop.eup %5772 }
 0xd0a   :  { %5776 = vrcp.f32 %v3244_v40  ;;  %v5775_v24 = vpop.eup %5774  ;;  %v3257_v30 = vadd.f32 1.0, %v5773_v20 }
 0xd0b   :  { %5778 = vrcp.f32 %v3250_v56 }
 0xd0c   :  { %5780 = vrcp.f32 %v3257_v30 }
 0xd14   :  { %v5777_v46 = vpop.eup %5776 }
 0xd15   :  { %v5779_v4 = vpop.eup %5778  ;;  %v3261_v5 = vmul.f32 %v5777_v46, %v5775_v24 }
 0xd16   :  { %v3260_v47 = vmul.f32 %v5779_v4, %v7079_v22  ;;  %v5781_v49 = vpop.eup %5780 }
 0xd18   :  { %v7121_v62 = vadd.f32 %v3261_v5, %v3260_v47 }
 0xd1a   :  { %5782 = vtanh.f32 %v7121_v62 }
 0xd24   :  { %v5783_v26 = vpop.eup %5782 }
 0xd25   :  { %v3264_v48 = vmul.f32 %v5783_v26, %v5781_v49 }
 0xd27   :  { %3265 = vst [vmem:[#allocation11 + $0x10] sm:$0xff] %v3264_v48  ;;  %3335 = vmatmul.mubr.f32.vlgmr.msra.gmra.mrb[28].mxu1 %v3264_v48  ;;  %3406 = vmatmul.mubr.f32.vlgmr.msra.gmra.mrb[28].mxu0 %v3264_v48 }
 0xd28   :  { %5204 = vmatpush1.bf16.msra.mxu1 %v6867_v58  ;;  %5236 = vmatpush1.bf16.msra.mxu0 %v6872_v42 }
 0xd29   :  { %5206 = vmatprep.subr.bf16.mxu1 %v6877_v15  ;;  %5238 = vmatprep.subr.bf16.mxu0 %v6881_v61 }
 0xd2a   :  { %3509 = vmatprep.mubr.f32.mxu1 %v6035_v33  ;;  %3580 = vmatprep.mubr.f32.mxu0 %v6035_v33 }
 0xd2c   :  { %5208 = vmatpush1.bf16.msra.mxu1 %v6879_v60  ;;  %5240 = vmatpush1.bf16.msra.mxu0 %v6884_v7 }
 0xd2d   :  { %5210 = vmatprep.subr.bf16.mxu1 %v6889_v19  ;;  %5242 = vmatprep.subr.bf16.mxu0 %v6893_v34 }
 0xd30   :  { %5212 = vmatpush1.bf16.msra.mxu1 %v6891_v32  ;;  %5244 = vmatpush1.bf16.msra.mxu0 %v6896_v45 }
 0xd31   :  { %5214 = vmatprep.subr.bf16.mxu1 %v6901_v63  ;;  %5246 = vmatprep.subr.bf16.mxu0 %v6905_v17 }
 0xd34   :  { %5216 = vmatpush1.bf16.msra.mxu1 %v6903_v16  ;;  %5248 = vmatpush1.bf16.msra.mxu0 %v6908_v29 }
 0xd35   :  { %5218 = vmatprep.subr.bf16.mxu1 %v6913_v28  ;;  %5250 = vmatprep.subr.bf16.mxu0 %v6917_v6 }
 0xd38   :  { %5220 = vmatpush1.bf16.msra.mxu1 %v6915_v2  ;;  %5252 = vmatpush1.bf16.msra.mxu0 %v6920_v3 }
 0xd39   :  { %5222 = vmatprep.subr.bf16.mxu1 %v6925_v38  ;;  %5254 = vmatprep.subr.bf16.mxu0 %v6929_v52 }
 0xd3c   :  { %5224 = vmatpush1.bf16.msra.mxu1 %v6927_v0  ;;  %5256 = vmatpush1.bf16.msra.mxu0 %v6932_v12 }
 0xd3d   :  { %5226 = vmatprep.subr.bf16.mxu1 %v6937_v37  ;;  %5258 = vmatprep.subr.bf16.mxu0 %v6941_v1 }
 0xd40   :  { %5228 = vmatpush1.bf16.msra.mxu1 %v6939_v50  ;;  %5260 = vmatpush1.bf16.msra.mxu0 %v6944_v21 }
 0xd41   :  { %5230 = vmatprep.subr.bf16.mxu1 %v6949_v14  ;;  %5262 = vmatprep.subr.bf16.mxu0 %v6953_v10 }
 0xd44   :  { %5232 = vmatpush1.bf16.msra.mxu1 %v6951_v41  ;;  %5264 = vmatpush1.bf16.msra.mxu0 %v6956_v44 }
 0xd45   :  { %5266 = vmatprep.subr.bf16.mxu1 %v6865_v53  ;;  %5298 = vmatprep.subr.bf16.mxu0 %v6869_v18 }
 0xdfa   :  { %v3336_v22 = vpop.f32.mrb[28].mxu1  ;;  %v3407_v25 = vpop.f32.mrb[28].mxu0 }
 0xdfb   :  { %v5503_v59 = vadd.f32 %v3336_v22, %v7016_v23  ;;  %v3338_v31 = vpop.f32.mrb[29].mxu1  ;;  %v3409_v35 = vpop.f32.mrb[29].mxu0  ;;  %v5519_v11 = vadd.f32 %v3407_v25, %v7031_v51 }
 0xdfc   :  { %v5504_v36 = vadd.f32 %v3338_v31, %v7020_v39  ;;  %v5520_v55 = vadd.f32 %v3409_v35, %v7026_v27 }
 0xdfd   :  { %v3416_v13 = vsub.f32 0.0, %v5503_v59 }
 0xdfe   :  { %v3422_v43 = vsub.f32 0.0, %v5504_v36  ;;  %v3429_v57 = vsub.f32 0.0, %v5520_v55 }
 0xdff   :  { %v3417_v9 = vmul.f32 1.442695, %v3416_v13 }
 0xe00   :  { %v3423_v54 = vmul.f32 1.442695, %v3422_v43  ;;  %v3430_v8 = vmul.f32 1.442695, %v3429_v57 }
 0xe01   :  { %5784 = vpow2.f32 %v3417_v9 }
 0xe02   :  { %5786 = vpow2.f32 %v3423_v54 }
 0xe03   :  { %5788 = vpow2.f32 %v3430_v8 }
 0xe04   :  { %5790 = vtanh.f32 %v5519_v11 }
 0xe0b   :  { %v5785_v40 = vpop.eup %5784 }
 0xe0c   :  { %v5787_v56 = vpop.eup %5786  ;;  %v3419_v20 = vadd.f32 1.0, %v5785_v40 }
 0xe0d   :  { %v3425_v24 = vadd.f32 1.0, %v5787_v56  ;;  %v5789_v46 = vpop.eup %5788 }
 0xe0e   :  { %5792 = vrcp.f32 %v3419_v20  ;;  %v5791_v4 = vpop.eup %5790  ;;  %v3432_v49 = vadd.f32 1.0, %v5789_v46 }
 0xe0f   :  { %5794 = vrcp.f32 %v3425_v24 }
 0xe10   :  { %5796 = vrcp.f32 %v3432_v49 }
 0xe18   :  { %v5793_v5 = vpop.eup %5792 }
 0xe19   :  { %v5795_v30 = vpop.eup %5794  ;;  %v3436_v47 = vmul.f32 %v5793_v5, %v5791_v4 }
 0xe1a   :  { %v3435_v26 = vmul.f32 %v5795_v30, %v7121_v62  ;;  %v5797_v22 = vpop.eup %5796 }
 0xe1c   :  { %v7163_v48 = vadd.f32 %v3436_v47, %v3435_v26 }
 0xe1e   :  { %5798 = vtanh.f32 %v7163_v48 }
 0xe28   :  { %v5799_v25 = vpop.eup %5798 }
 0xe29   :  { %v3439_v59 = vmul.f32 %v5799_v25, %v5797_v22 }
 0xe2b   :  { %3440 = vst [vmem:[#allocation11 + $0x18] sm:$0xff] %v3439_v59  ;;  %3510 = vmatmul.mubr.f32.vlgmr.msra.gmra.mrb[30].mxu1 %v3439_v59  ;;  %3581 = vmatmul.mubr.f32.vlgmr.msra.gmra.mrb[30].mxu0 %v3439_v59 }
 0xe2c   :  { %5268 = vmatpush1.bf16.msra.mxu1 %v6867_v58  ;;  %5300 = vmatpush1.bf16.msra.mxu0 %v6872_v42 }
 0xe2d   :  { %5270 = vmatprep.subr.bf16.mxu1 %v6877_v15  ;;  %5302 = vmatprep.subr.bf16.mxu0 %v6881_v61 }
 0xe2e   :  { %3684 = vmatprep.mubr.f32.mxu1 %v6035_v33  ;;  %3755 = vmatprep.mubr.f32.mxu0 %v6035_v33 }
 0xe30   :  { %5272 = vmatpush1.bf16.msra.mxu1 %v6879_v60  ;;  %5304 = vmatpush1.bf16.msra.mxu0 %v6884_v7 }
 0xe31   :  { %5274 = vmatprep.subr.bf16.mxu1 %v6889_v19  ;;  %5306 = vmatprep.subr.bf16.mxu0 %v6893_v34 }
 0xe34   :  { %5276 = vmatpush1.bf16.msra.mxu1 %v6891_v32  ;;  %5308 = vmatpush1.bf16.msra.mxu0 %v6896_v45 }
 0xe35   :  { %5278 = vmatprep.subr.bf16.mxu1 %v6901_v63  ;;  %5310 = vmatprep.subr.bf16.mxu0 %v6905_v17 }
 0xe38   :  { %5280 = vmatpush1.bf16.msra.mxu1 %v6903_v16  ;;  %5312 = vmatpush1.bf16.msra.mxu0 %v6908_v29 }
 0xe39   :  { %5282 = vmatprep.subr.bf16.mxu1 %v6913_v28  ;;  %5314 = vmatprep.subr.bf16.mxu0 %v6917_v6 }
 0xe3c   :  { %5284 = vmatpush1.bf16.msra.mxu1 %v6915_v2  ;;  %5316 = vmatpush1.bf16.msra.mxu0 %v6920_v3 }
 0xe3d   :  { %5286 = vmatprep.subr.bf16.mxu1 %v6925_v38  ;;  %5318 = vmatprep.subr.bf16.mxu0 %v6929_v52 }
 0xe40   :  { %5288 = vmatpush1.bf16.msra.mxu1 %v6927_v0  ;;  %5320 = vmatpush1.bf16.msra.mxu0 %v6932_v12 }
 0xe41   :  { %5290 = vmatprep.subr.bf16.mxu1 %v6937_v37  ;;  %5322 = vmatprep.subr.bf16.mxu0 %v6941_v1 }
 0xe44   :  { %5292 = vmatpush1.bf16.msra.mxu1 %v6939_v50  ;;  %5324 = vmatpush1.bf16.msra.mxu0 %v6944_v21 }
 0xe45   :  { %5294 = vmatprep.subr.bf16.mxu1 %v6949_v14  ;;  %5326 = vmatprep.subr.bf16.mxu0 %v6953_v10 }
 0xe48   :  { %5296 = vmatpush1.bf16.msra.mxu1 %v6951_v41  ;;  %5328 = vmatpush1.bf16.msra.mxu0 %v6956_v44 }
 0xe49   :  { %5330 = vmatprep.subr.bf16.mxu1 %v6865_v53  ;;  %5362 = vmatprep.subr.bf16.mxu0 %v6869_v18 }
 0xefe   :  { %v3511_v62 = vpop.f32.mrb[30].mxu1  ;;  %v3582_v31 = vpop.f32.mrb[30].mxu0 }
 0xeff   :  { %v5505_v35 = vadd.f32 %v3511_v62, %v7016_v23  ;;  %v3513_v36 = vpop.f32.mrb[31].mxu1  ;;  %v3584_v13 = vpop.f32.mrb[31].mxu0  ;;  %v5521_v56 = vadd.f32 %v3582_v31, %v7031_v51 }
 0xf00   :  { %v5506_v43 = vadd.f32 %v3513_v36, %v7020_v39  ;;  %v5522_v8 = vadd.f32 %v3584_v13, %v7026_v27 }
 0xf01   :  { %v3591_v9 = vsub.f32 0.0, %v5505_v35 }
 0xf02   :  { %v3597_v54 = vsub.f32 0.0, %v5506_v43  ;;  %v3604_v11 = vsub.f32 0.0, %v5522_v8 }
 0xf03   :  { %v3592_v55 = vmul.f32 1.442695, %v3591_v9 }
 0xf04   :  { %v3598_v57 = vmul.f32 1.442695, %v3597_v54  ;;  %v3605_v40 = vmul.f32 1.442695, %v3604_v11 }
 0xf05   :  { %5800 = vpow2.f32 %v3592_v55 }
 0xf06   :  { %5802 = vpow2.f32 %v3598_v57 }
 0xf07   :  { %5804 = vpow2.f32 %v3605_v40 }
 0xf08   :  { %5806 = vtanh.f32 %v5521_v56 }
 0xf0f   :  { %v5801_v20 = vpop.eup %5800 }
 0xf10   :  { %v5803_v24 = vpop.eup %5802  ;;  %v3594_v46 = vadd.f32 1.0, %v5801_v20 }
 0xf11   :  { %v3600_v4 = vadd.f32 1.0, %v5803_v24  ;;  %v5805_v5 = vpop.eup %5804 }
 0xf12   :  { %5808 = vrcp.f32 %v3594_v46  ;;  %v5807_v30 = vpop.eup %5806  ;;  %v3607_v22 = vadd.f32 1.0, %v5805_v5 }
 0xf13   :  { %5810 = vrcp.f32 %v3600_v4 }
 0xf14   :  { %5812 = vrcp.f32 %v3607_v22 }
 0xf1c   :  { %v5809_v47 = vpop.eup %5808 }
 0xf1d   :  { %v5811_v49 = vpop.eup %5810  ;;  %v3611_v26 = vmul.f32 %v5809_v47, %v5807_v30 }
 0xf1e   :  { %v3610_v25 = vmul.f32 %v5811_v49, %v7163_v48  ;;  %v5813_v62 = vpop.eup %5812 }
 0xf20   :  { %v7205_v59 = vadd.f32 %v3611_v26, %v3610_v25 }
 0xf22   :  { %5814 = vtanh.f32 %v7205_v59 }
 0xf2c   :  { %v5815_v31 = vpop.eup %5814 }
 0xf2d   :  { %v3614_v35 = vmul.f32 %v5815_v31, %v5813_v62 }
 0xf2f   :  { %3615 = vst [vmem:[#allocation11 + $0x20] sm:$0xff] %v3614_v35  ;;  %3685 = vmatmul.mubr.f32.vlgmr.msra.gmra.mrb[32].mxu1 %v3614_v35  ;;  %3756 = vmatmul.mubr.f32.vlgmr.msra.gmra.mrb[32].mxu0 %v3614_v35 }
 0xf30   :  { %5332 = vmatpush1.bf16.msra.mxu1 %v6867_v58  ;;  %5364 = vmatpush1.bf16.msra.mxu0 %v6872_v42 }
 0xf31   :  { %5334 = vmatprep.subr.bf16.mxu1 %v6877_v15  ;;  %5366 = vmatprep.subr.bf16.mxu0 %v6881_v61 }
 0xf32   :  { %3859 = vmatprep.mubr.f32.mxu1 %v6035_v33  ;;  %3930 = vmatprep.mubr.f32.mxu0 %v6035_v33 }
 0xf34   :  { %5336 = vmatpush1.bf16.msra.mxu1 %v6879_v60  ;;  %5368 = vmatpush1.bf16.msra.mxu0 %v6884_v7 }
 0xf35   :  { %5338 = vmatprep.subr.bf16.mxu1 %v6889_v19  ;;  %5370 = vmatprep.subr.bf16.mxu0 %v6893_v34 }
 0xf38   :  { %5340 = vmatpush1.bf16.msra.mxu1 %v6891_v32  ;;  %5372 = vmatpush1.bf16.msra.mxu0 %v6896_v45 }
 0xf39   :  { %5342 = vmatprep.subr.bf16.mxu1 %v6901_v63  ;;  %5374 = vmatprep.subr.bf16.mxu0 %v6905_v17 }
 0xf3c   :  { %5344 = vmatpush1.bf16.msra.mxu1 %v6903_v16  ;;  %5376 = vmatpush1.bf16.msra.mxu0 %v6908_v29 }
 0xf3d   :  { %5346 = vmatprep.subr.bf16.mxu1 %v6913_v28  ;;  %5378 = vmatprep.subr.bf16.mxu0 %v6917_v6 }
 0xf40   :  { %5348 = vmatpush1.bf16.msra.mxu1 %v6915_v2  ;;  %5380 = vmatpush1.bf16.msra.mxu0 %v6920_v3 }
 0xf41   :  { %5350 = vmatprep.subr.bf16.mxu1 %v6925_v38  ;;  %5382 = vmatprep.subr.bf16.mxu0 %v6929_v52 }
 0xf44   :  { %5352 = vmatpush1.bf16.msra.mxu1 %v6927_v0  ;;  %5384 = vmatpush1.bf16.msra.mxu0 %v6932_v12 }
 0xf45   :  { %5354 = vmatprep.subr.bf16.mxu1 %v6937_v37  ;;  %5386 = vmatprep.subr.bf16.mxu0 %v6941_v1 }
 0xf48   :  { %5356 = vmatpush1.bf16.msra.mxu1 %v6939_v50  ;;  %5388 = vmatpush1.bf16.msra.mxu0 %v6944_v21 }
 0xf49   :  { %5358 = vmatprep.subr.bf16.mxu1 %v6949_v14  ;;  %5390 = vmatprep.subr.bf16.mxu0 %v6953_v10 }
 0xf4c   :  { %5360 = vmatpush1.bf16.msra.mxu1 %v6951_v41  ;;  %5392 = vmatpush1.bf16.msra.mxu0 %v6956_v44 }
 0xf4d   :  { %5394 = vmatprep.subr.bf16.mxu1 %v6865_v53  ;;  %5426 = vmatprep.subr.bf16.mxu0 %v6869_v18 }
0x1002   :  { %v3686_v48 = vpop.f32.mrb[32].mxu1  ;;  %v3757_v36 = vpop.f32.mrb[32].mxu0 }
0x1003   :  { %v5507_v13 = vadd.f32 %v3686_v48, %v7016_v23  ;;  %v3688_v43 = vpop.f32.mrb[33].mxu1  ;;  %v3759_v9 = vpop.f32.mrb[33].mxu0  ;;  %v5523_v18 = vadd.f32 %v3757_v36, %v7031_v51 }
0x1004   :  { %v5508_v54 = vadd.f32 %v3688_v43, %v7020_v39  ;;  %v5524_v40 = vadd.f32 %v3759_v9, %v7026_v27 }
0x1005   :  { %v3766_v55 = vsub.f32 0.0, %v5507_v13 }
0x1006   :  { %v3772_v57 = vsub.f32 0.0, %v5508_v54  ;;  %v3779_v56 = vsub.f32 0.0, %v5524_v40 }
0x1007   :  { %v3767_v8 = vmul.f32 1.442695, %v3766_v55 }
0x1008   :  { %v3773_v11 = vmul.f32 1.442695, %v3772_v57  ;;  %v3780_v53 = vmul.f32 1.442695, %v3779_v56 }
0x1009   :  { %5816 = vpow2.f32 %v3767_v8 }
0x100a   :  { %5818 = vpow2.f32 %v3773_v11 }
0x100b   :  { %5820 = vpow2.f32 %v3780_v53 }
0x100c   :  { %5822 = vtanh.f32 %v5523_v18 }
0x1013   :  { %v5817_v20 = vpop.eup %5816 }
0x1014   :  { %v5819_v24 = vpop.eup %5818  ;;  %v3769_v46 = vadd.f32 1.0, %v5817_v20 }
0x1015   :  { %v3775_v4 = vadd.f32 1.0, %v5819_v24  ;;  %v5821_v5 = vpop.eup %5820 }
0x1016   :  { %5824 = vrcp.f32 %v3769_v46  ;;  %v5823_v30 = vpop.eup %5822  ;;  %v3782_v22 = vadd.f32 1.0, %v5821_v5 }
0x1017   :  { %5826 = vrcp.f32 %v3775_v4 }
0x1018   :  { %5828 = vrcp.f32 %v3782_v22 }
0x1020   :  { %v5825_v47 = vpop.eup %5824 }
0x1021   :  { %v5827_v49 = vpop.eup %5826  ;;  %v3786_v26 = vmul.f32 %v5825_v47, %v5823_v30 }
0x1022   :  { %v3785_v25 = vmul.f32 %v5827_v49, %v7205_v59  ;;  %v5829_v31 = vpop.eup %5828 }
0x1024   :  { %v7247_v62 = vadd.f32 %v3786_v26, %v3785_v25 }
0x1026   :  { %5830 = vtanh.f32 %v7247_v62 }
0x1030   :  { %v5831_v35 = vpop.eup %5830 }
0x1031   :  { %v3789_v48 = vmul.f32 %v5831_v35, %v5829_v31 }
0x1033   :  { %3790 = vst [vmem:[#allocation11 + $0x28] sm:$0xff] %v3789_v48  ;;  %3860 = vmatmul.mubr.f32.vlgmr.msra.gmra.mrb[34].mxu1 %v3789_v48  ;;  %3931 = vmatmul.mubr.f32.vlgmr.msra.gmra.mrb[34].mxu0 %v3789_v48 }
0x1034   :  { %5396 = vmatpush1.bf16.msra.mxu1 %v6867_v58  ;;  %5428 = vmatpush1.bf16.msra.mxu0 %v6872_v42 }
0x1035   :  { %5398 = vmatprep.subr.bf16.mxu1 %v6877_v15  ;;  %5430 = vmatprep.subr.bf16.mxu0 %v6881_v61 }
0x1036   :  { %4034 = vmatprep.mubr.f32.mxu1 %v6035_v33  ;;  %4105 = vmatprep.mubr.f32.mxu0 %v6035_v33 }
0x1038   :  { %5400 = vmatpush1.bf16.msra.mxu1 %v6879_v60  ;;  %5432 = vmatpush1.bf16.msra.mxu0 %v6884_v7 }
0x1039   :  { %5402 = vmatprep.subr.bf16.mxu1 %v6889_v19  ;;  %5434 = vmatprep.subr.bf16.mxu0 %v6893_v34 }
0x103c   :  { %5404 = vmatpush1.bf16.msra.mxu1 %v6891_v32  ;;  %5436 = vmatpush1.bf16.msra.mxu0 %v6896_v45 }
0x103d   :  { %5406 = vmatprep.subr.bf16.mxu1 %v6901_v63  ;;  %5438 = vmatprep.subr.bf16.mxu0 %v6905_v17 }
0x1040   :  { %5408 = vmatpush1.bf16.msra.mxu1 %v6903_v16  ;;  %5440 = vmatpush1.bf16.msra.mxu0 %v6908_v29 }
0x1041   :  { %5410 = vmatprep.subr.bf16.mxu1 %v6913_v28  ;;  %5442 = vmatprep.subr.bf16.mxu0 %v6917_v6 }
0x1044   :  { %5412 = vmatpush1.bf16.msra.mxu1 %v6915_v2  ;;  %5444 = vmatpush1.bf16.msra.mxu0 %v6920_v3 }
0x1045   :  { %5414 = vmatprep.subr.bf16.mxu1 %v6925_v38  ;;  %5446 = vmatprep.subr.bf16.mxu0 %v6929_v52 }
0x1048   :  { %5416 = vmatpush1.bf16.msra.mxu1 %v6927_v0  ;;  %5448 = vmatpush1.bf16.msra.mxu0 %v6932_v12 }
0x1049   :  { %5418 = vmatprep.subr.bf16.mxu1 %v6937_v37  ;;  %5450 = vmatprep.subr.bf16.mxu0 %v6941_v1 }
0x104c   :  { %5420 = vmatpush1.bf16.msra.mxu1 %v6939_v50  ;;  %5452 = vmatpush1.bf16.msra.mxu0 %v6944_v21 }
0x104d   :  { %5422 = vmatprep.subr.bf16.mxu1 %v6949_v14  ;;  %5454 = vmatprep.subr.bf16.mxu0 %v6953_v10 }
0x1050   :  { %5424 = vmatpush1.bf16.msra.mxu1 %v6951_v41  ;;  %5456 = vmatpush1.bf16.msra.mxu0 %v6956_v44 }
0x1106   :  { %v3861_v33 = vpop.f32.mrb[34].mxu1  ;;  %v3932_v58 = vpop.f32.mrb[34].mxu0 }
0x1107   :  { %v5509_v42 = vadd.f32 %v3861_v33, %v7016_v23  ;;  %v3863_v15 = vpop.f32.mrb[35].mxu1  ;;  %v3934_v60 = vpop.f32.mrb[35].mxu0  ;;  %v5525_v17 = vadd.f32 %v3932_v58, %v7031_v51 }
0x1108   :  { %v5510_v61 = vadd.f32 %v3863_v15, %v7020_v39  ;;  %v5526_v45 = vadd.f32 %v3934_v60, %v7026_v27 }
0x1109   :  { %v3941_v7 = vsub.f32 0.0, %v5509_v42 }
0x110a   :  { %v3947_v19 = vsub.f32 0.0, %v5510_v61  ;;  %v3954_v63 = vsub.f32 0.0, %v5526_v45 }
0x110b   :  { %v3942_v32 = vmul.f32 1.442695, %v3941_v7 }
0x110c   :  { %v3948_v34 = vmul.f32 1.442695, %v3947_v19  ;;  %v3955_v16 = vmul.f32 1.442695, %v3954_v63 }
0x110d   :  { %5832 = vpow2.f32 %v3942_v32 }
0x110e   :  { %5834 = vpow2.f32 %v3948_v34 }
0x110f   :  { %5836 = vpow2.f32 %v3955_v16 }
0x1110   :  { %5838 = vtanh.f32 %v5525_v17 }
0x1117   :  { %v5833_v29 = vpop.eup %5832 }
0x1118   :  { %v5835_v28 = vpop.eup %5834  ;;  %v3944_v2 = vadd.f32 1.0, %v5833_v29 }
0x1119   :  { %v3950_v6 = vadd.f32 1.0, %v5835_v28  ;;  %v5837_v3 = vpop.eup %5836 }
0x111a   :  { %5840 = vrcp.f32 %v3944_v2  ;;  %v5839_v38 = vpop.eup %5838  ;;  %v3957_v37 = vadd.f32 1.0, %v5837_v3 }
0x111b   :  { %5842 = vrcp.f32 %v3950_v6 }
0x111c   :  { %5844 = vrcp.f32 %v3957_v37 }
0x1124   :  { %v5841_v0 = vpop.eup %5840 }
0x1125   :  { %v5843_v52 = vpop.eup %5842  ;;  %v3961_v12 = vmul.f32 %v5841_v0, %v5839_v38 }
0x1126   :  { %v3960_v50 = vmul.f32 %v5843_v52, %v7247_v62  ;;  %v5845_v21 = vpop.eup %5844 }
0x1128   :  { %v3962_v1 = vadd.f32 %v3961_v12, %v3960_v50 }
0x112a   :  { %5846 = vtanh.f32 %v3962_v1 }
0x1134   :  { %v5847_v14 = vpop.eup %5846 }
0x1135   :  { %v3964_v41 = vmul.f32 %v5847_v14, %v5845_v21 }
0x1137   :  { %3965 = vst [vmem:[#allocation11 + $0x30] sm:$0xff] %v3964_v41  ;;  %4035 = vmatmul.mubr.f32.vlgmr.msra.gmra.mrb[36].mxu1 %v3964_v41  ;;  %4106 = vmatmul.mubr.f32.vlgmr.msra.gmra.mrb[36].mxu0 %v3964_v41 }
0x120a   :  { %v4036_v10 = vpop.f32.mrb[36].mxu1  ;;  %v4107_v44 = vpop.f32.mrb[36].mxu0 }
0x120b   :  { %v5511_v59 = vadd.f32 %v4036_v10, %v7016_v23  ;;  %v4038_v36 = vpop.f32.mrb[37].mxu1  ;;  %v4109_v13 = vpop.f32.mrb[37].mxu0  ;;  %v5527_v56 = vadd.f32 %v4107_v44, %v7031_v51 }
0x120c   :  { %v5512_v43 = vadd.f32 %v4038_v36, %v7020_v39  ;;  %v5528_v8 = vadd.f32 %v4109_v13, %v7026_v27 }
0x120d   :  { %v4116_v9 = vsub.f32 0.0, %v5511_v59 }
0x120e   :  { %v4122_v54 = vsub.f32 0.0, %v5512_v43  ;;  %v4129_v11 = vsub.f32 0.0, %v5528_v8 }
0x120f   :  { %v4117_v55 = vmul.f32 1.442695, %v4116_v9 }
0x1210   :  { %v4123_v57 = vmul.f32 1.442695, %v4122_v54  ;;  %v4130_v40 = vmul.f32 1.442695, %v4129_v11 }
0x1211   :  { %5848 = vpow2.f32 %v4117_v55 }
0x1212   :  { %5850 = vpow2.f32 %v4123_v57 }
0x1213   :  { %5852 = vpow2.f32 %v4130_v40 }
0x1214   :  { %5854 = vtanh.f32 %v5527_v56 }
0x121b   :  { %v5849_v53 = vpop.eup %5848 }
0x121c   :  { %v5851_v18 = vpop.eup %5850  ;;  %v4119_v20 = vadd.f32 1.0, %v5849_v53 }
0x121d   :  { %v4125_v23 = vadd.f32 1.0, %v5851_v18  ;;  %v5853_v39 = vpop.eup %5852 }
0x121e   :  { %5856 = vrcp.f32 %v4119_v20  ;;  %v5855_v24 = vpop.eup %5854  ;;  %v4132_v27 = vadd.f32 1.0, %v5853_v39 }
0x121f   :  { %5858 = vrcp.f32 %v4125_v23 }
0x1220   :  { %5860 = vrcp.f32 %v4132_v27 }
0x1228   :  { %v5857_v46 = vpop.eup %5856 }
0x1229   :  { %v5859_v4 = vpop.eup %5858  ;;  %v4136_v5 = vmul.f32 %v5857_v46, %v5855_v24 }
0x122a   :  { %v4135_v30 = vmul.f32 %v5859_v4, %v3962_v1  ;;  %v5861_v51 = vpop.eup %5860 }
0x122c   :  { %v4137_v47 = vadd.f32 %v4136_v5, %v4135_v30 }
0x122e   :  { %5862 = vtanh.f32 %v4137_v47  ;;  %4144 = vst [vmem:[#allocation14 + $0x8] sm:$0xff] %v4137_v47 }
0x1238   :  { %v5863_v49 = vpop.eup %5862 }
0x1239   :  { %v4139_v26 = vmul.f32 %v5863_v49, %v5861_v51 }
0x123b   :  { %4140 = vst [vmem:[#allocation11 + $0x38] sm:$0xff] %v4139_v26  ;;  %4142 = vst [vmem:[#allocation12 + $0x8] sm:$0xff] %v4139_v26 }
0x123c   :  { %5963 = shalt.err (!%p5960_p8)
}
0x123d   :  { %s5964_s6 = scalar_lea.hbm %s7362_s12, 256 }
0x123e   :  { %p5965_p9 = scmp.ne.s32.totalorder %s7362_s12, %s5964_s6  ;;  %p5968_p10 = scmp.lt.u32.totalorder %s5964_s6, %s7362_s12 }
0x1240   :  { %p5970_p11 = pnand %p5968_p10, %p5965_p9 }
0x1242   :  { %5973 = shalt.err (!%p5970_p11)
}
0x1243   :  { %s6039_s23 = smov 128   ;;  %s6040_s24 = smov 8  }
0x1244   :  { %4168 = dma.vmem_to_hbm [thread:$0]  %s4163_s20, 256, %s7362_s12, [#allocation13], %s6039_s23, %s6039_s23, %s6040_s24  }
0x1245   :  { %s5974_s8 = scalar_lea.vmem %s7291_s22, 1024  ;;  %p5979_p13 = scmp.lt.s32.totalorder %s7291_s22, %s7291_s22 }
0x1246   :  { %p5975_p12 = scmp.ne.s32.totalorder %s7291_s22, %s5974_s8  ;;  %p5980_p0 = scmp.lt.s32.totalorder %s5974_s8, %s5974_s8 }
0x1248   :  { %p5981_p1 = por %p5980_p0, %p5979_p13 }
0x124a   :  { %p5982_p2 = pnand %p5981_p1, %p5975_p12 }
0x124c   :  { %5985 = shalt.err (!%p5982_p2)
}
0x124d   :  { %s5986_s27 = scalar_lea.hbm %s7361_s11, 1024 }
0x124e   :  { %p5987_p3 = scmp.ne.s32.totalorder %s7361_s11, %s5986_s27  ;;  %p5990_p4 = scmp.lt.u32.totalorder %s5986_s27, %s7361_s11 }
0x1250   :  { %p5992_p5 = pnand %p5990_p4, %p5987_p3 }
0x1252   :  { %5995 = shalt.err (!%p5992_p5)
}
0x1253   :  { %4156 = dma.vmem_to_hbm [thread:$0]  %s7291_s22, 1024, %s7361_s11, [#allocation5], %s6039_s23, %s6039_s23, %s6040_s24  }
0x1254   :  { %s5996_s9 = scalar_lea.vmem %s7293_s28, 256  ;;  %p6001_p7 = scmp.lt.s32.totalorder %s7293_s28, %s7293_s28 }
0x1255   :  { %p5997_p6 = scmp.ne.s32.totalorder %s7293_s28, %s5996_s9  ;;  %p6002_p8 = scmp.lt.s32.totalorder %s5996_s9, %s5996_s9 }
0x1257   :  { %p6003_p9 = por %p6002_p8, %p6001_p7 }
0x1259   :  { %p6004_p10 = pnand %p6003_p9, %p5997_p6 }
0x125b   :  { %6007 = shalt.err (!%p6004_p10)
}
0x125c   :  { %s6008_s21 = scalar_lea.hbm %s7363_s13, 256 }
0x125d   :  { %p6009_p11 = scmp.ne.s32.totalorder %s7363_s13, %s6008_s21  ;;  %p6012_p12 = scmp.lt.u32.totalorder %s6008_s21, %s7363_s13 }
0x125f   :  { %p6014_p13 = pnand %p6012_p12, %p6009_p11 }
0x1261   :  { %6017 = shalt.err (!%p6014_p13)
}
0x1262   :  { %4180 = dma.vmem_to_hbm [thread:$0]  %s7293_s28, 256, %s7363_s13, [#allocation13], %s6039_s23, %s6039_s23, %s6040_s24  }
0x1263   :  { %6024 = dma.done.wait [#allocation5], 1024  }
0x1264   :  { %6025 = vsyncadd [#allocation5], 4294966272 }
0x1265   :  { %6026 = dma.done.wait [#allocation13], 512  }
0x1266   :  { %6027 = vsyncadd [#allocation13], 4294966784 }
0x1267   :  { %4190 = vsyncpa [#allocation4], 1 }
0x1268   :  { %4191 = vsyncpa [#allocation7], 1 }
0x1269   :  { %4192 = vsyncpa [#allocation10], 1 }
0x126a   :  { %4193 = vsyncpa [#allocation5], 1 }
0x126b   :  { %4194 = vsyncpa [#allocation13], 1 }

</bundles_post_ra>
